<compile_context>
chip_gen: v7x
topology: tpu7x:2x2x1
jax: 0.10.0
libtpu: 0.0.40
codegen_flags: <defaults>
</compile_context>

<pallas_src>
import functools

import jax
import jax.numpy as jnp
import numpy as np
from jax import lax
from jax.experimental import pallas as pl
from jax.experimental.pallas import tpu as pltpu


# MXU operand dtype (f32 accumulation via preferred_element_type).
MXU_DTYPE = jnp.bfloat16

# Target length (lane) tile: multiple of 128 => unmasked lane-dense stores.
# 512 leaves comfortable headroom under the 32 MiB scoped-VMEM budget below,
# including on v7x (64 MiB physical VMEM), even at 256-512 channels.
DEFAULT_LENGTH_TILE = 512

_COMPILER_PARAMS = pltpu.CompilerParams(
    dimension_semantics=("parallel", "parallel"),   # (batch, length-tile)
    vmem_limit_bytes=32 * 1024 * 1024,
)


# ----------------------------------------------------------------------------
# Pallas kernels
# ----------------------------------------------------------------------------
def _conv_kernel(x_ref, w_ref, b_ref, o_ref, *, taps, step, pre_tanh, post_tanh):
    """Conv1d as `taps` per-tap matmuls accumulated in f32 (no im2col concat).

    x_ref: (1, 1, Cin_eff, Lt + (taps-1)*step)   haloed input tile
    w_ref: (taps, Cout, Cin_eff)                 per-tap weights (MXU_DTYPE)
    b_ref: (Cout, 1) f32
    o_ref: (1, Cout, Lt)
    """
    Lt = o_ref.shape[-1]
    x = x_ref[0, 0]
    if pre_tanh:
        x = jnp.tanh(x)                  # tanh(0)=0 => commutes with padding
    if x.shape[0] == 1:
        # Degenerate Cin (first encoder conv): VPU outer product, no K=1 MXU.
        acc = None
        for t in range(taps):
            off = t * step
            part = w_ref[t].astype(jnp.float32) * x[:, off:off + Lt]
            acc = part if acc is None else acc + part
    else:
        xm = x.astype(MXU_DTYPE)
        acc = None
        for t in range(taps):
            off = t * step
            part = jnp.dot(w_ref[t], xm[:, off:off + Lt],
                           preferred_element_type=jnp.float32)
            acc = part if acc is None else acc + part
    y = acc + b_ref[...]
    if post_tanh:
        y = jnp.tanh(y)
    o_ref[0] = y.astype(o_ref.dtype)


def _resblock_kernel(x_ref, w1_ref, b1_ref, w2_ref, b2_ref, ws_ref, bs_ref,
                     o_ref, *, dilation, pre_tanh):
    """Whole ResnetBlock:
         out = shortcut(x) + conv1x1(tanh(conv3_dil(reflpad(tanh(x)))))
    x_ref: (1, 1, dim, Lt + 2*dilation)  reflection-padded, haloed tile.
    """
    Lt = o_ref.shape[-1]
    d = dilation
    xp = x_ref[0, 0]
    if pre_tanh:
        xp = jnp.tanh(xp)                           # commutes with reflection pad
    xc = xp[:, d:d + Lt].astype(MXU_DTYPE)          # un-padded block input
    sc = jnp.dot(ws_ref[...], xc, preferred_element_type=jnp.float32) + bs_ref[...]
    t = jnp.tanh(xp).astype(MXU_DTYPE)              # block's own leading Tanh
    acc = None
    for k in range(3):
        part = jnp.dot(w1_ref[k], t[:, k * d:k * d + Lt],
                       preferred_element_type=jnp.float32)
        acc = part if acc is None else acc + part
    h = jnp.tanh(acc + b1_ref[...]).astype(MXU_DTYPE)
    y = jnp.dot(w2_ref[...], h, preferred_element_type=jnp.float32) + b2_ref[...]
    o_ref[0] = (sc + y).astype(o_ref.dtype)


def _convT_kernel(x_ref, w_ref, b_ref, o_ref, *, taps, bases, pre_tanh, post_tanh):
    """Polyphase ConvTranspose1d: output phase p (column j = u*stride + p) is a
    stride-1 `taps`-tap conv of the zero-padded input with its own sub-kernel.

    x_ref: (1, 1, Cin, Ut + max(bases) + taps - 1)  haloed input tile
    w_ref: (s*taps, Cout, Cin)                      per-(phase,tap) weights
    b_ref: (Cout, 1) f32
    o_ref: (1, s, Cout, Ut)                         phase-separated output tile
    """
    Ut = o_ref.shape[-1]
    xp = x_ref[0, 0]
    if pre_tanh:
        xp = jnp.tanh(xp)                   # tanh(0)=0, commutes with zero pad
    xm = xp.astype(MXU_DTYPE)
    for p, base in enumerate(bases):
        acc = None
        for t in range(taps):
            off = base + t
            part = jnp.dot(w_ref[p * taps + t], xm[:, off:off + Ut],
                           preferred_element_type=jnp.float32)
            acc = part if acc is None else acc + part
        y = acc + b_ref[...]
        if post_tanh:
            y = jnp.tanh(y)
        o_ref[0, p] = y.astype(o_ref.dtype)


# ----------------------------------------------------------------------------
# Host-side tiling helpers (padding / haloed tiles only; all math in-kernel)
# ----------------------------------------------------------------------------
def _split_length(lout, length_tile):
    """Returns (tile, n_tiles).  Multi-tile => tile is a multiple of 128."""
    if lout <= length_tile:
        return lout, 1
    lt = max(128, (length_tile // 128) * 128)
    return lt, -(-lout // lt)


def _halo_tiles(x, n_tiles, step, win):
    """x: (B, C, L) -> (B, n_tiles, C, win); tile i = x[:, :, i*step : i*step+win],
    zero-padded on the right (padding only feeds output columns sliced away)."""
    B, C, L = x.shape
    need = (n_tiles - 1) * step + win
    if need > L:
        x = jnp.pad(x, ((0, 0), (0, 0), (0, need - L)))
    if n_tiles == 1:
        return x[:, None, :, :win]
    idx = (np.arange(n_tiles, dtype=np.int32)[:, None] * step
           + np.arange(win, dtype=np.int32)[None, :])
    t = jnp.take(x, jnp.asarray(idx), axis=2)        # (B, C, nT, win)
    return t.transpose(0, 2, 1, 3)


# ----------------------------------------------------------------------------
# Pallas wrappers
# ----------------------------------------------------------------------------
def conv1d_pallas(x, w, b, *, stride=1, dilation=1, zero_pad=0, refl_pad=0,
                  pre_tanh=False, post_tanh=False,
                  length_tile=DEFAULT_LENGTH_TILE):
    """PyTorch Conv1d.  x: (B,Cin,L), w: (Cout,Cin,K), b: (Cout,)."""
    B, Cin, _ = x.shape
    Cout, _, K = w.shape
    s = stride
    if refl_pad:
        x = jnp.pad(x, ((0, 0), (0, 0), (refl_pad, refl_pad)), mode="reflect")
    if zero_pad:
        x = jnp.pad(x, ((0, 0), (0, 0), (zero_pad, zero_pad)))
    Lp = x.shape[-1]
    Lout = (Lp - dilation * (K - 1) - 1) // s + 1

    if s == 1:
        T, step, cin_eff = K, dilation, Cin
        xs = x
        w_t = jnp.transpose(w, (2, 0, 1))                       # (K, Cout, Cin)
    else:
        assert dilation == 1 and K % s == 0, "strided path needs s|K, dil=1"
        T, step, cin_eff = K // s, 1, s * Cin
        Lq = -(-Lp // s)
        if Lq * s != Lp:
            x = jnp.pad(x, ((0, 0), (0, 0), (0, Lq * s - Lp)))
        # phase-stack on channels: xs[:, q*Cin+c, m] = xpad[:, c, m*s+q]
        xs = x.reshape(B, Cin, Lq, s).transpose(0, 3, 1, 2).reshape(B, s * Cin, Lq)
        # w_t[t, o, q*Cin+c] = w[o, c, t*s+q]
        w_t = (w.reshape(Cout, Cin, T, s).transpose(2, 0, 3, 1)
                .reshape(T, Cout, s * Cin))

    Lt, nT = _split_length(Lout, length_tile)
    halo = (T - 1) * step
    xt = _halo_tiles(xs, nT, Lt, Lt + halo)
    w_t = w_t.astype(MXU_DTYPE)
    b2 = b.reshape(Cout, 1).astype(jnp.float32)

    kernel = functools.partial(_conv_kernel, taps=T, step=step,
                               pre_tanh=pre_tanh, post_tanh=post_tanh)
    out = pl.pallas_call(
        kernel,
        out_shape=jax.ShapeDtypeStruct((B, Cout, nT * Lt), jnp.float32),
        grid=(B, nT),
        in_specs=[pl.BlockSpec((1, 1, cin_eff, Lt + halo),
                               lambda bi, ti: (bi, ti, 0, 0)),
                  pl.BlockSpec((T, Cout, cin_eff), lambda bi, ti: (0, 0, 0)),
                  pl.BlockSpec((Cout, 1), lambda bi, ti: (0, 0))],
        out_specs=pl.BlockSpec((1, Cout, Lt), lambda bi, ti: (bi, 0, ti)),
        compiler_params=_COMPILER_PARAMS,
    )(xt, w_t, b2)
    return out if nT * Lt == Lout else out[:, :, :Lout]


def resblock_pallas(x, p, *, length_tile=DEFAULT_LENGTH_TILE):
    """Whole ResnetBlock as one pallas_call."""
    B, dim, L = x.shape
    d = p["dilation"]
    xp = jnp.pad(x, ((0, 0), (0, 0), (d, d)), mode="reflect")
    Lt, nT = _split_length(L, length_tile)
    xt = _halo_tiles(xp, nT, Lt, Lt + 2 * d)

    w1 = jnp.transpose(p["w1"], (2, 0, 1)).astype(MXU_DTYPE)    # (3, dim, dim)
    w2 = p["w2"][:, :, 0].astype(MXU_DTYPE)
    ws = p["ws"][:, :, 0].astype(MXU_DTYPE)
    b1 = p["b1"].reshape(dim, 1).astype(jnp.float32)
    b2 = p["b2"].reshape(dim, 1).astype(jnp.float32)
    bs = p["bs"].reshape(dim, 1).astype(jnp.float32)

    kernel = functools.partial(_resblock_kernel, dilation=d,
                               pre_tanh=p["pre_tanh"])
    out = pl.pallas_call(
        kernel,
        out_shape=jax.ShapeDtypeStruct((B, dim, nT * Lt), jnp.float32),
        grid=(B, nT),
        in_specs=[pl.BlockSpec((1, 1, dim, Lt + 2 * d),
                               lambda bi, ti: (bi, ti, 0, 0)),
                  pl.BlockSpec((3, dim, dim), lambda bi, ti: (0, 0, 0)),
                  pl.BlockSpec((dim, 1), lambda bi, ti: (0, 0)),
                  pl.BlockSpec((dim, dim), lambda bi, ti: (0, 0)),
                  pl.BlockSpec((dim, 1), lambda bi, ti: (0, 0)),
                  pl.BlockSpec((dim, dim), lambda bi, ti: (0, 0)),
                  pl.BlockSpec((dim, 1), lambda bi, ti: (0, 0))],
        out_specs=pl.BlockSpec((1, dim, Lt), lambda bi, ti: (bi, 0, ti)),
        compiler_params=_COMPILER_PARAMS,
    )(xt, w1, b1, w2, b2, ws, bs)
    return out if nT * Lt == L else out[:, :, :L]


def conv_transpose1d_pallas(x, w, b, *, stride, padding, output_padding,
                            pre_tanh=False, post_tanh=False,
                            length_tile=DEFAULT_LENGTH_TILE):
    """PyTorch ConvTranspose1d via polyphase decomposition.
    x: (B,Cin,L), w: (Cin,Cout,K), b: (Cout,)."""
    B, Cin, L = x.shape
    _, Cout, K = w.shape
    s = stride
    Lout = (L - 1) * s - 2 * padding + K + output_padding
    assert K % s == 0 and Lout % s == 0, "polyphase path needs s|K and s|Lout"
    T = K // s
    U = Lout // s
    pad_l_eq = K - 1 - padding
    cs = [-((pad_l_eq - p) // s) for p in range(s)]
    left = max(0, -min(cs))
    bases = tuple(c + left for c in cs)
    xp = jnp.pad(x, ((0, 0), (0, 0), (left, 0)))

    # w_all[p*T+t, o, c] = w[c, o, K-1-q_p-t*s],   q_p = (pad_l_eq - p) % s
    w_ph = []
    for p in range(s):
        q = (pad_l_eq - p) % s
        taps = [K - 1 - q - t * s for t in range(T)]
        w_ph.append(jnp.transpose(w[:, :, taps], (2, 1, 0)))    # (T, Cout, Cin)
    w_all = jnp.concatenate(w_ph, axis=0).astype(MXU_DTYPE)     # (s*T, Cout, Cin)
    b2 = b.reshape(Cout, 1).astype(jnp.float32)

    Ut, nT = _split_length(U, length_tile)
    halo = max(bases) + T - 1
    xt = _halo_tiles(xp, nT, Ut, Ut + halo)

    kernel = functools.partial(_convT_kernel, taps=T, bases=bases,
                               pre_tanh=pre_tanh, post_tanh=post_tanh)
    ph = pl.pallas_call(
        kernel,
        out_shape=jax.ShapeDtypeStruct((B, s, Cout, nT * Ut), jnp.float32),
        grid=(B, nT),
        in_specs=[pl.BlockSpec((1, 1, Cin, Ut + halo),
                               lambda bi, ti: (bi, ti, 0, 0)),
                  pl.BlockSpec((s * T, Cout, Cin), lambda bi, ti: (0, 0, 0)),
                  pl.BlockSpec((Cout, 1), lambda bi, ti: (0, 0))],
        out_specs=pl.BlockSpec((1, s, Cout, Ut), lambda bi, ti: (bi, 0, 0, ti)),
        compiler_params=_COMPILER_PARAMS,
    )(xt, w_all, b2)
    if nT * Ut != U:
        ph = ph[:, :, :, :U]
    # interleave phases into the length axis: y[:, :, u*s + p] = ph[:, p, :, u]
    # TODO(synk): fold this de-interleave into the next layer's halo gather.
    return ph.transpose(0, 2, 3, 1).reshape(B, Cout, Lout)


# ----------------------------------------------------------------------------
# Pure-JAX reference (lax.conv_general_dilated), original op order
# ----------------------------------------------------------------------------
def conv1d_ref(x, w, b, *, stride=1, dilation=1, zero_pad=0):
    y = lax.conv_general_dilated(
        x, w, window_strides=(stride,), padding=[(zero_pad, zero_pad)],
        rhs_dilation=(dilation,), dimension_numbers=("NCH", "OIH", "NCH"),
        precision=lax.Precision.HIGHEST)
    return y + b[None, :, None]


def conv_transpose1d_ref(x, w, b, *, stride, padding, output_padding):
    K = w.shape[-1]
    w_eq = jnp.flip(w, axis=-1).transpose(1, 0, 2)
    y = lax.conv_general_dilated(
        x, w_eq, window_strides=(1,),
        padding=[(K - 1 - padding, K - 1 - padding + output_padding)],
        lhs_dilation=(stride,), dimension_numbers=("NCH", "OIH", "NCH"),
        precision=lax.Precision.HIGHEST)
    return y + b[None, :, None]


def resblock_ref(x, p):
    sc = conv1d_ref(x, p["ws"], p["bs"])
    t = jnp.tanh(x)
    t = jnp.pad(t, ((0, 0), (0, 0), (p["dilation"], p["dilation"])), mode="reflect")
    t = conv1d_ref(t, p["w1"], p["b1"], dilation=p["dilation"])
    t = jnp.tanh(t)
    t = conv1d_ref(t, p["w2"], p["b2"])
    return sc + t


# ----------------------------------------------------------------------------
# Parameters (mirrors Autoencoder.__init__; weight_norm at init gives w == v).
# NOTE: if a trained checkpoint with g != ||v|| is loaded, fold g into w first.
# ----------------------------------------------------------------------------
class KeyGen:
    def __init__(self, seed):
        self.key = jax.random.PRNGKey(seed)

    def __call__(self):
        self.key, sub = jax.random.split(self.key)
        return sub


def _weight_norm(v):
    norm = jnp.sqrt(jnp.sum(v * v, axis=(1, 2), keepdims=True))
    g = norm
    return g * v / norm


def init_wn_conv(kg, cout, cin, k):
    v = 0.02 * jax.random.normal(kg(), (cout, cin, k), jnp.float32)
    b = 0.02 * jax.random.normal(kg(), (cout,), jnp.float32)
    return _weight_norm(v), b


def init_wn_convT(kg, cin, cout, k):
    v = 0.02 * jax.random.normal(kg(), (cin, cout, k), jnp.float32)
    b = 0.02 * jax.random.normal(kg(), (cout,), jnp.float32)
    return _weight_norm(v), b


def init_resblock(kg, dim, dilation):
    w1, b1 = init_wn_conv(kg, dim, dim, 3)
    w2, b2 = init_wn_conv(kg, dim, dim, 1)
    ws, bs = init_wn_conv(kg, dim, dim, 1)
    return dict(w1=w1, b1=b1, w2=w2, b2=b2, ws=ws, bs=bs, dilation=dilation)


# Fused op descriptors: standalone nn.Tanh() layers are folded into the
# neighbouring conv / convT / resblock as pre_tanh / post_tanh flags
# (tanh commutes with reflection / zero padding since tanh(0)=0).
def build_encoder(kg, ratios, ngf, n_res):
    ops = []
    w, b = init_wn_conv(kg, ngf, 1, 7)
    ops.append(("conv", dict(w=w, b=b, stride=1, dilation=1, zero_pad=0, refl_pad=3,
                             pre_tanh=False, post_tanh=False)))
    pending_tanh = True                     # Tanh after the first conv
    mult = 1
    for r in ratios:
        mult *= 2
        dim = mult * ngf // 2
        for j in range(n_res - 1, -1, -1):
            rb = init_resblock(kg, dim, 3 ** j)
            rb["pre_tanh"] = pending_tanh
            pending_tanh = False
            ops.append(("resblock", rb))
        if pending_tanh:
            ops[-1][1]["post_tanh"] = True
            pending_tanh = False
        w, b = init_wn_conv(kg, mult * ngf, dim, r * 2)
        ops.append(("conv", dict(w=w, b=b, stride=r, dilation=1,
                                 zero_pad=r // 2 + r % 2, refl_pad=0,
                                 pre_tanh=True, post_tanh=False)))
    ops[-1][1]["post_tanh"] = True          # trailing encoder Tanh
    return ops


def build_decoder(kg, ratios, ngf, n_res):
    ops = []
    mult = int(2 ** len(ratios))
    for r in ratios:
        dim = mult * ngf // 2
        w, b = init_wn_convT(kg, mult * ngf, dim, r * 2)
        ops.append(("convT", dict(w=w, b=b, stride=r, padding=r // 2 + r % 2,
                                  output_padding=r % 2, pre_tanh=True,
                                  post_tanh=False)))
        for j in range(n_res):
            rb = init_resblock(kg, dim, 3 ** j)
            rb["pre_tanh"] = False
            ops.append(("resblock", rb))
        mult //= 2
    w, b = init_wn_conv(kg, 1, ngf, 7)
    ops.append(("conv", dict(w=w, b=b, stride=1, dilation=1, zero_pad=0, refl_pad=3,
                             pre_tanh=True, post_tanh=True)))
    return ops


# ----------------------------------------------------------------------------
# Forward executors
# ----------------------------------------------------------------------------
def run_pallas(ops, x, length_tile=DEFAULT_LENGTH_TILE):
    for kind, p in ops:
        if kind == "conv":
            x = conv1d_pallas(x, p["w"], p["b"], stride=p["stride"],
                              dilation=p["dilation"], zero_pad=p["zero_pad"],
                              refl_pad=p["refl_pad"], pre_tanh=p["pre_tanh"],
                              post_tanh=p["post_tanh"], length_tile=length_tile)
        elif kind == "convT":
            x = conv_transpose1d_pallas(x, p["w"], p["b"], stride=p["stride"],
                                        padding=p["padding"],
                                        output_padding=p["output_padding"],
                                        pre_tanh=p["pre_tanh"],
                                        post_tanh=p["post_tanh"],
                                        length_tile=length_tile)
        else:  # resblock
            x = resblock_pallas(x, p, length_tile=length_tile)
    return x


def run_ref(ops, x):
    for kind, p in ops:
        if kind == "conv":
            if p["pre_tanh"]:
                x = jnp.tanh(x)
            if p["refl_pad"]:
                x = jnp.pad(x, ((0, 0), (0, 0), (p["refl_pad"], p["refl_pad"])),
                            mode="reflect")
            x = conv1d_ref(x, p["w"], p["b"], stride=p["stride"],
                           dilation=p["dilation"], zero_pad=p["zero_pad"])
            if p["post_tanh"]:
                x = jnp.tanh(x)
        elif kind == "convT":
            if p["pre_tanh"]:
                x = jnp.tanh(x)
            x = conv_transpose1d_ref(x, p["w"], p["b"], stride=p["stride"],
                                     padding=p["padding"],
                                     output_padding=p["output_padding"])
            if p["post_tanh"]:
                x = jnp.tanh(x)
        else:
            if p["pre_tanh"]:
                x = jnp.tanh(x)
            x = resblock_ref(x, p)
    return x


# ----------------------------------------------------------------------------
if __name__ == "__main__":
    compress_ratios = [2, 2]
    ngf = 8
    n_residual_layers = 2
    B, L = 2, 512
    LENGTH_TILE = 128   # small tile so the test exercises the multi-tile path

    kg = KeyGen(42)
    enc_ops = build_encoder(kg, compress_ratios, ngf, n_residual_layers)
    dec_ops = build_decoder(kg, [r for r in reversed(compress_ratios)],
                            ngf, n_residual_layers)

    x = jax.random.normal(jax.random.PRNGKey(0), (B, 1, L), jnp.float32)

    @jax.jit
    def forward_pallas(x):
        h = run_pallas(enc_ops, x, LENGTH_TILE)
        return run_pallas(dec_ops, h, LENGTH_TILE)

    @jax.jit
    def forward_ref(x):
        return run_ref(dec_ops, run_ref(enc_ops, x))

    y = jax.block_until_ready(forward_pallas(x))
    y_ref = jax.block_until_ready(forward_ref(x))

    assert y.shape == (B, 1, L), y.shape
    y_np = np.asarray(y, dtype=np.float64)
    r_np = np.asarray(y_ref, dtype=np.float64)
    rel = np.linalg.norm(y_np - r_np) / (np.linalg.norm(r_np) + 1e-30)
    assert np.isfinite(rel) and rel < 5e-2, f"relative L2 error {rel:.3e}"
    print("KERNEL_OK")
</pallas_src>

<mosaic_0001>
module attributes {stable_mosaic.version = 11 : i64} {
  func.func @_conv_kernel(%arg0: i32, %arg1: i32, %arg2: memref<1x1x1x134xf32, #tpu.memory_space<vmem>>, %arg3: memref<7x8x1xbf16, #tpu.memory_space<vmem>>, %arg4: memref<8x1xf32, #tpu.memory_space<vmem>>, %arg5: memref<1x8x128xf32, #tpu.memory_space<vmem>>) attributes {dimension_semantics = [#tpu.dimension_semantics<parallel>, #tpu.dimension_semantics<parallel>], iteration_bounds = array<i64: 2, 4>, scalar_prefetch = 0 : i64, scratch_operands = 0 : i64, tpu.core_type = #tpu.core_type<tc>, window_params = [{transform_indices = @transform_0, window_bounds = array<i64: 1, 1, 1, 134>}, {pipeline_mode = #tpu.pipeline_mode<synchronous>, transform_indices = @transform_1, window_bounds = array<i64: 7, 8, 1>}, {pipeline_mode = #tpu.pipeline_mode<synchronous>, transform_indices = @transform_2, window_bounds = array<i64: 8, 1>}, {transform_indices = @transform_3, window_bounds = array<i64: 1, 8, 128>}]} {
    %c0 = arith.constant 0 : index
    %c0_0 = arith.constant 0 : index
    %c0_1 = arith.constant 0 : index
    %c0_2 = arith.constant 0 : index
    %0 = vector.load %arg2[%c0, %c0_0, %c0_1, %c0_2] : memref<1x1x1x134xf32, #tpu.memory_space<vmem>>, vector<1x1x1x134xf32>
    %1 = vector.shape_cast %0 : vector<1x1x1x134xf32> to vector<1x134xf32>
    %c0_3 = arith.constant 0 : index
    %c0_4 = arith.constant 0 : index
    %c0_5 = arith.constant 0 : index
    %2 = vector.load %arg3[%c0_3, %c0_4, %c0_5] : memref<7x8x1xbf16, #tpu.memory_space<vmem>>, vector<1x8x1xbf16>
    %3 = vector.shape_cast %2 : vector<1x8x1xbf16> to vector<8x1xbf16>
    %4 = arith.extf %3 : vector<8x1xbf16> to vector<8x1xf32>
    %5 = vector.extract_strided_slice %1 {offsets = [0, 0], sizes = [1, 128], strides = [1, 1]} : vector<1x134xf32> to vector<1x128xf32>
    %6 = vector.broadcast %4 : vector<8x1xf32> to vector<8x128xf32>
    %7 = vector.broadcast %5 : vector<1x128xf32> to vector<8x128xf32>
    %8 = arith.mulf %6, %7 : vector<8x128xf32>
    %c1 = arith.constant 1 : index
    %c0_6 = arith.constant 0 : index
    %c0_7 = arith.constant 0 : index
    %9 = vector.load %arg3[%c1, %c0_6, %c0_7] : memref<7x8x1xbf16, #tpu.memory_space<vmem>>, vector<1x8x1xbf16>
    %10 = vector.shape_cast %9 : vector<1x8x1xbf16> to vector<8x1xbf16>
    %11 = arith.extf %10 : vector<8x1xbf16> to vector<8x1xf32>
    %12 = vector.extract_strided_slice %1 {offsets = [0, 1], sizes = [1, 128], strides = [1, 1]} : vector<1x134xf32> to vector<1x128xf32>
    %13 = vector.broadcast %11 : vector<8x1xf32> to vector<8x128xf32>
    %14 = vector.broadcast %12 : vector<1x128xf32> to vector<8x128xf32>
    %15 = arith.mulf %13, %14 : vector<8x128xf32>
    %16 = arith.addf %8, %15 : vector<8x128xf32>
    %c2 = arith.constant 2 : index
    %c0_8 = arith.constant 0 : index
    %c0_9 = arith.constant 0 : index
    %17 = vector.load %arg3[%c2, %c0_8, %c0_9] : memref<7x8x1xbf16, #tpu.memory_space<vmem>>, vector<1x8x1xbf16>
    %18 = vector.shape_cast %17 : vector<1x8x1xbf16> to vector<8x1xbf16>
    %19 = arith.extf %18 : vector<8x1xbf16> to vector<8x1xf32>
    %20 = vector.extract_strided_slice %1 {offsets = [0, 2], sizes = [1, 128], strides = [1, 1]} : vector<1x134xf32> to vector<1x128xf32>
    %21 = vector.broadcast %19 : vector<8x1xf32> to vector<8x128xf32>
    %22 = vector.broadcast %20 : vector<1x128xf32> to vector<8x128xf32>
    %23 = arith.mulf %21, %22 : vector<8x128xf32>
    %24 = arith.addf %16, %23 : vector<8x128xf32>
    %c3 = arith.constant 3 : index
    %c0_10 = arith.constant 0 : index
    %c0_11 = arith.constant 0 : index
    %25 = vector.load %arg3[%c3, %c0_10, %c0_11] : memref<7x8x1xbf16, #tpu.memory_space<vmem>>, vector<1x8x1xbf16>
    %26 = vector.shape_cast %25 : vector<1x8x1xbf16> to vector<8x1xbf16>
    %27 = arith.extf %26 : vector<8x1xbf16> to vector<8x1xf32>
    %28 = vector.extract_strided_slice %1 {offsets = [0, 3], sizes = [1, 128], strides = [1, 1]} : vector<1x134xf32> to vector<1x128xf32>
    %29 = vector.broadcast %27 : vector<8x1xf32> to vector<8x128xf32>
    %30 = vector.broadcast %28 : vector<1x128xf32> to vector<8x128xf32>
    %31 = arith.mulf %29, %30 : vector<8x128xf32>
    %32 = arith.addf %24, %31 : vector<8x128xf32>
    %c4 = arith.constant 4 : index
    %c0_12 = arith.constant 0 : index
    %c0_13 = arith.constant 0 : index
    %33 = vector.load %arg3[%c4, %c0_12, %c0_13] : memref<7x8x1xbf16, #tpu.memory_space<vmem>>, vector<1x8x1xbf16>
    %34 = vector.shape_cast %33 : vector<1x8x1xbf16> to vector<8x1xbf16>
    %35 = arith.extf %34 : vector<8x1xbf16> to vector<8x1xf32>
    %36 = vector.extract_strided_slice %1 {offsets = [0, 4], sizes = [1, 128], strides = [1, 1]} : vector<1x134xf32> to vector<1x128xf32>
    %37 = vector.broadcast %35 : vector<8x1xf32> to vector<8x128xf32>
    %38 = vector.broadcast %36 : vector<1x128xf32> to vector<8x128xf32>
    %39 = arith.mulf %37, %38 : vector<8x128xf32>
    %40 = arith.addf %32, %39 : vector<8x128xf32>
    %c5 = arith.constant 5 : index
    %c0_14 = arith.constant 0 : index
    %c0_15 = arith.constant 0 : index
    %41 = vector.load %arg3[%c5, %c0_14, %c0_15] : memref<7x8x1xbf16, #tpu.memory_space<vmem>>, vector<1x8x1xbf16>
    %42 = vector.shape_cast %41 : vector<1x8x1xbf16> to vector<8x1xbf16>
    %43 = arith.extf %42 : vector<8x1xbf16> to vector<8x1xf32>
    %44 = vector.extract_strided_slice %1 {offsets = [0, 5], sizes = [1, 128], strides = [1, 1]} : vector<1x134xf32> to vector<1x128xf32>
    %45 = vector.broadcast %43 : vector<8x1xf32> to vector<8x128xf32>
    %46 = vector.broadcast %44 : vector<1x128xf32> to vector<8x128xf32>
    %47 = arith.mulf %45, %46 : vector<8x128xf32>
    %48 = arith.addf %40, %47 : vector<8x128xf32>
    %c6 = arith.constant 6 : index
    %c0_16 = arith.constant 0 : index
    %c0_17 = arith.constant 0 : index
    %49 = vector.load %arg3[%c6, %c0_16, %c0_17] : memref<7x8x1xbf16, #tpu.memory_space<vmem>>, vector<1x8x1xbf16>
    %50 = vector.shape_cast %49 : vector<1x8x1xbf16> to vector<8x1xbf16>
    %51 = arith.extf %50 : vector<8x1xbf16> to vector<8x1xf32>
    %52 = vector.extract_strided_slice %1 {offsets = [0, 6], sizes = [1, 128], strides = [1, 1]} : vector<1x134xf32> to vector<1x128xf32>
    %53 = vector.broadcast %51 : vector<8x1xf32> to vector<8x128xf32>
    %54 = vector.broadcast %52 : vector<1x128xf32> to vector<8x128xf32>
    %55 = arith.mulf %53, %54 : vector<8x128xf32>
    %56 = arith.addf %48, %55 : vector<8x128xf32>
    %c0_18 = arith.constant 0 : index
    %c0_19 = arith.constant 0 : index
    %57 = vector.load %arg4[%c0_18, %c0_19] : memref<8x1xf32, #tpu.memory_space<vmem>>, vector<8x1xf32>
    %58 = vector.broadcast %57 : vector<8x1xf32> to vector<8x128xf32>
    %59 = arith.addf %56, %58 : vector<8x128xf32>
    %c0_20 = arith.constant 0 : index
    %c0_21 = arith.constant 0 : index
    %c0_22 = arith.constant 0 : index
    %60 = vector.load %arg5[%c0_20, %c0_21, %c0_22] : memref<1x8x128xf32, #tpu.memory_space<vmem>>, vector<1x8x128xf32>
    %61 = vector.shape_cast %60 : vector<1x8x128xf32> to vector<8x128xf32>
    %62 = vector.shape_cast %59 : vector<8x128xf32> to vector<1x8x128xf32>
    tpu.vector_store %arg5[%c0_20, %c0_21, %c0_22], %62 {strides = array<i32>} : memref<1x8x128xf32, #tpu.memory_space<vmem>>, vector<1x8x128xf32>,
    return
  }
  func.func @transform_0(%arg0: i32, %arg1: i32) -> (i32, i32, i32, i32) {
    %c0_i32 = arith.constant 0 : i32
    %c0_i32_0 = arith.constant 0 : i32
    %c0_i32_1 = arith.constant 0 : i32
    return %arg0, %arg1, %c0_i32, %c0_i32_0 : i32, i32, i32, i32
  }
  func.func @transform_1(%arg0: i32, %arg1: i32) -> (i32, i32, i32) {
    %c0_i32 = arith.constant 0 : i32
    %c0_i32_0 = arith.constant 0 : i32
    %c0_i32_1 = arith.constant 0 : i32
    %c0_i32_2 = arith.constant 0 : i32
    return %c0_i32, %c0_i32_0, %c0_i32_1 : i32, i32, i32
  }
  func.func @transform_2(%arg0: i32, %arg1: i32) -> (i32, i32) {
    %c0_i32 = arith.constant 0 : i32
    %c0_i32_0 = arith.constant 0 : i32
    %c0_i32_1 = arith.constant 0 : i32
    return %c0_i32, %c0_i32_0 : i32, i32
  }
  func.func @transform_3(%arg0: i32, %arg1: i32) -> (i32, i32, i32) {
    %c0_i32 = arith.constant 0 : i32
    %c0_i32_0 = arith.constant 0 : i32
    return %arg0, %c0_i32, %arg1 : i32, i32, i32
  }
}

module attributes {stable_mosaic.version = 11 : i64} {
  func.func @_resblock_kernel(%arg0: i32, %arg1: i32, %arg2: memref<1x1x8x134xf32, #tpu.memory_space<vmem>>, %arg3: memref<3x8x8xbf16, #tpu.memory_space<vmem>>, %arg4: memref<8x1xf32, #tpu.memory_space<vmem>>, %arg5: memref<8x8xbf16, #tpu.memory_space<vmem>>, %arg6: memref<8x1xf32, #tpu.memory_space<vmem>>, %arg7: memref<8x8xbf16, #tpu.memory_space<vmem>>, %arg8: memref<8x1xf32, #tpu.memory_space<vmem>>, %arg9: memref<1x8x128xf32, #tpu.memory_space<vmem>>) attributes {dimension_semantics = [#tpu.dimension_semantics<parallel>, #tpu.dimension_semantics<parallel>], iteration_bounds = array<i64: 2, 4>, scalar_prefetch = 0 : i64, scratch_operands = 0 : i64, tpu.core_type = #tpu.core_type<tc>, window_params = [{transform_indices = @transform_0, window_bounds = array<i64: 1, 1, 8, 134>}, {pipeline_mode = #tpu.pipeline_mode<synchronous>, transform_indices = @transform_1, window_bounds = array<i64: 3, 8, 8>}, {pipeline_mode = #tpu.pipeline_mode<synchronous>, transform_indices = @transform_2, window_bounds = array<i64: 8, 1>}, {pipeline_mode = #tpu.pipeline_mode<synchronous>, transform_indices = @transform_3, window_bounds = array<i64: 8, 8>}, {pipeline_mode = #tpu.pipeline_mode<synchronous>, transform_indices = @transform_4, window_bounds = array<i64: 8, 1>}, {pipeline_mode = #tpu.pipeline_mode<synchronous>, transform_indices = @transform_5, window_bounds = array<i64: 8, 8>}, {pipeline_mode = #tpu.pipeline_mode<synchronous>, transform_indices = @transform_6, window_bounds = array<i64: 8, 1>}, {transform_indices = @transform_7, window_bounds = array<i64: 1, 8, 128>}]} {
    %c0 = arith.constant 0 : index
    %c0_0 = arith.constant 0 : index
    %c0_1 = arith.constant 0 : index
    %c0_2 = arith.constant 0 : index
    %0 = vector.load %arg2[%c0, %c0_0, %c0_1, %c0_2] : memref<1x1x8x134xf32, #tpu.memory_space<vmem>>, vector<1x1x8x134xf32>
    %1 = vector.shape_cast %0 : vector<1x1x8x134xf32> to vector<8x134xf32>
    %2 = math.tanh %1 : vector<8x134xf32>
    %3 = vector.extract_strided_slice %2 {offsets = [0, 3], sizes = [8, 128], strides = [1, 1]} : vector<8x134xf32> to vector<8x128xf32>
    %4 = arith.truncf %3 : vector<8x128xf32> to vector<8x128xbf16>
    %c0_3 = arith.constant 0 : index
    %c0_4 = arith.constant 0 : index
    %5 = vector.load %arg7[%c0_3, %c0_4] : memref<8x8xbf16, #tpu.memory_space<vmem>>, vector<8x8xbf16>
    %cst = arith.constant dense<0.000000e+00> : vector<8x128xf32>
    %6 = tpu.matmul %5, %4, %cst {dimension_numbers = #tpu.dot_dimension_numbers<[1], [0], [0], [1], [0, 0, 1, 1], [], []>} : vector<8x8xbf16>, vector<8x128xbf16>, vector<8x128xf32> -> vector<8x128xf32>
    %c0_5 = arith.constant 0 : index
    %c0_6 = arith.constant 0 : index
    %7 = vector.load %arg8[%c0_5, %c0_6] : memref<8x1xf32, #tpu.memory_space<vmem>>, vector<8x1xf32>
    %8 = vector.broadcast %7 : vector<8x1xf32> to vector<8x128xf32>
    %9 = arith.addf %6, %8 : vector<8x128xf32>
    %10 = math.tanh %2 : vector<8x134xf32>
    %11 = arith.truncf %10 : vector<8x134xf32> to vector<8x134xbf16>
    %c0_7 = arith.constant 0 : index
    %c0_8 = arith.constant 0 : index
    %c0_9 = arith.constant 0 : index
    %12 = vector.load %arg3[%c0_7, %c0_8, %c0_9] : memref<3x8x8xbf16, #tpu.memory_space<vmem>>, vector<1x8x8xbf16>
    %13 = vector.shape_cast %12 : vector<1x8x8xbf16> to vector<8x8xbf16>
    %14 = vector.extract_strided_slice %11 {offsets = [0, 0], sizes = [8, 128], strides = [1, 1]} : vector<8x134xbf16> to vector<8x128xbf16>
    %cst_10 = arith.constant dense<0.000000e+00> : vector<8x128xf32>
    %15 = tpu.matmul %13, %14, %cst_10 {dimension_numbers = #tpu.dot_dimension_numbers<[1], [0], [0], [1], [0, 0, 1, 1], [], []>} : vector<8x8xbf16>, vector<8x128xbf16>, vector<8x128xf32> -> vector<8x128xf32>
    %c1 = arith.constant 1 : index
    %c0_11 = arith.constant 0 : index
    %c0_12 = arith.constant 0 : index
    %16 = vector.load %arg3[%c1, %c0_11, %c0_12] : memref<3x8x8xbf16, #tpu.memory_space<vmem>>, vector<1x8x8xbf16>
    %17 = vector.shape_cast %16 : vector<1x8x8xbf16> to vector<8x8xbf16>
    %18 = vector.extract_strided_slice %11 {offsets = [0, 3], sizes = [8, 128], strides = [1, 1]} : vector<8x134xbf16> to vector<8x128xbf16>
    %cst_13 = arith.constant dense<0.000000e+00> : vector<8x128xf32>
    %19 = tpu.matmul %17, %18, %cst_13 {dimension_numbers = #tpu.dot_dimension_numbers<[1], [0], [0], [1], [0, 0, 1, 1], [], []>} : vector<8x8xbf16>, vector<8x128xbf16>, vector<8x128xf32> -> vector<8x128xf32>
    %20 = arith.addf %15, %19 : vector<8x128xf32>
    %c2 = arith.constant 2 : index
    %c0_14 = arith.constant 0 : index
    %c0_15 = arith.constant 0 : index
    %21 = vector.load %arg3[%c2, %c0_14, %c0_15] : memref<3x8x8xbf16, #tpu.memory_space<vmem>>, vector<1x8x8xbf16>
    %22 = vector.shape_cast %21 : vector<1x8x8xbf16> to vector<8x8xbf16>
    %23 = vector.extract_strided_slice %11 {offsets = [0, 6], sizes = [8, 128], strides = [1, 1]} : vector<8x134xbf16> to vector<8x128xbf16>
    %cst_16 = arith.constant dense<0.000000e+00> : vector<8x128xf32>
    %24 = tpu.matmul %22, %23, %cst_16 {dimension_numbers = #tpu.dot_dimension_numbers<[1], [0], [0], [1], [0, 0, 1, 1], [], []>} : vector<8x8xbf16>, vector<8x128xbf16>, vector<8x128xf32> -> vector<8x128xf32>
    %25 = arith.addf %20, %24 : vector<8x128xf32>
    %c0_17 = arith.constant 0 : index
    %c0_18 = arith.constant 0 : index
    %26 = vector.load %arg4[%c0_17, %c0_18] : memref<8x1xf32, #tpu.memory_space<vmem>>, vector<8x1xf32>
    %27 = vector.broadcast %26 : vector<8x1xf32> to vector<8x128xf32>
    %28 = arith.addf %25, %27 : vector<8x128xf32>
    %29 = math.tanh %28 : vector<8x128xf32>
    %30 = arith.truncf %29 : vector<8x128xf32> to vector<8x128xbf16>
    %c0_19 = arith.constant 0 : index
    %c0_20 = arith.constant 0 : index
    %31 = vector.load %arg5[%c0_19, %c0_20] : memref<8x8xbf16, #tpu.memory_space<vmem>>, vector<8x8xbf16>
    %cst_21 = arith.constant dense<0.000000e+00> : vector<8x128xf32>
    %32 = tpu.matmul %31, %30, %cst_21 {dimension_numbers = #tpu.dot_dimension_numbers<[1], [0], [0], [1], [0, 0, 1, 1], [], []>} : vector<8x8xbf16>, vector<8x128xbf16>, vector<8x128xf32> -> vector<8x128xf32>
    %c0_22 = arith.constant 0 : index
    %c0_23 = arith.constant 0 : index
    %33 = vector.load %arg6[%c0_22, %c0_23] : memref<8x1xf32, #tpu.memory_space<vmem>>, vector<8x1xf32>
    %34 = vector.broadcast %33 : vector<8x1xf32> to vector<8x128xf32>
    %35 = arith.addf %32, %34 : vector<8x128xf32>
    %36 = arith.addf %9, %35 : vector<8x128xf32>
    %c0_24 = arith.constant 0 : index
    %c0_25 = arith.constant 0 : index
    %c0_26 = arith.constant 0 : index
    %37 = vector.load %arg9[%c0_24, %c0_25, %c0_26] : memref<1x8x128xf32, #tpu.memory_space<vmem>>, vector<1x8x128xf32>
    %38 = vector.shape_cast %37 : vector<1x8x128xf32> to vector<8x128xf32>
    %39 = vector.shape_cast %36 : vector<8x128xf32> to vector<1x8x128xf32>
    tpu.vector_store %arg9[%c0_24, %c0_25, %c0_26], %39 {strides = array<i32>} : memref<1x8x128xf32, #tpu.memory_space<vmem>>, vector<1x8x128xf32>,
    return
  }
  func.func @transform_0(%arg0: i32, %arg1: i32) -> (i32, i32, i32, i32) {
    %c0_i32 = arith.constant 0 : i32
    %c0_i32_0 = arith.constant 0 : i32
    %c0_i32_1 = arith.constant 0 : i32
    return %arg0, %arg1, %c0_i32, %c0_i32_0 : i32, i32, i32, i32
  }
  func.func @transform_1(%arg0: i32, %arg1: i32) -> (i32, i32, i32) {
    %c0_i32 = arith.constant 0 : i32
    %c0_i32_0 = arith.constant 0 : i32
    %c0_i32_1 = arith.constant 0 : i32
    %c0_i32_2 = arith.constant 0 : i32
    return %c0_i32, %c0_i32_0, %c0_i32_1 : i32, i32, i32
  }
  func.func @transform_2(%arg0: i32, %arg1: i32) -> (i32, i32) {
    %c0_i32 = arith.constant 0 : i32
    %c0_i32_0 = arith.constant 0 : i32
    %c0_i32_1 = arith.constant 0 : i32
    return %c0_i32, %c0_i32_0 : i32, i32
  }
  func.func @transform_3(%arg0: i32, %arg1: i32) -> (i32, i32) {
    %c0_i32 = arith.constant 0 : i32
    %c0_i32_0 = arith.constant 0 : i32
    %c0_i32_1 = arith.constant 0 : i32
    return %c0_i32, %c0_i32_0 : i32, i32
  }
  func.func @transform_4(%arg0: i32, %arg1: i32) -> (i32, i32) {
    %c0_i32 = arith.constant 0 : i32
    %c0_i32_0 = arith.constant 0 : i32
    %c0_i32_1 = arith.constant 0 : i32
    return %c0_i32, %c0_i32_0 : i32, i32
  }
  func.func @transform_5(%arg0: i32, %arg1: i32) -> (i32, i32) {
    %c0_i32 = arith.constant 0 : i32
    %c0_i32_0 = arith.constant 0 : i32
    %c0_i32_1 = arith.constant 0 : i32
    return %c0_i32, %c0_i32_0 : i32, i32
  }
  func.func @transform_6(%arg0: i32, %arg1: i32) -> (i32, i32) {
    %c0_i32 = arith.constant 0 : i32
    %c0_i32_0 = arith.constant 0 : i32
    %c0_i32_1 = arith.constant 0 : i32
    return %c0_i32, %c0_i32_0 : i32, i32
  }
  func.func @transform_7(%arg0: i32, %arg1: i32) -> (i32, i32, i32) {
    %c0_i32 = arith.constant 0 : i32
    %c0_i32_0 = arith.constant 0 : i32
    return %arg0, %c0_i32, %arg1 : i32, i32, i32
  }
}

module attributes {stable_mosaic.version = 11 : i64} {
  func.func @_resblock_kernel(%arg0: i32, %arg1: i32, %arg2: memref<1x1x8x130xf32, #tpu.memory_space<vmem>>, %arg3: memref<3x8x8xbf16, #tpu.memory_space<vmem>>, %arg4: memref<8x1xf32, #tpu.memory_space<vmem>>, %arg5: memref<8x8xbf16, #tpu.memory_space<vmem>>, %arg6: memref<8x1xf32, #tpu.memory_space<vmem>>, %arg7: memref<8x8xbf16, #tpu.memory_space<vmem>>, %arg8: memref<8x1xf32, #tpu.memory_space<vmem>>, %arg9: memref<1x8x128xf32, #tpu.memory_space<vmem>>) attributes {dimension_semantics = [#tpu.dimension_semantics<parallel>, #tpu.dimension_semantics<parallel>], iteration_bounds = array<i64: 2, 4>, scalar_prefetch = 0 : i64, scratch_operands = 0 : i64, tpu.core_type = #tpu.core_type<tc>, window_params = [{transform_indices = @transform_0, window_bounds = array<i64: 1, 1, 8, 130>}, {pipeline_mode = #tpu.pipeline_mode<synchronous>, transform_indices = @transform_1, window_bounds = array<i64: 3, 8, 8>}, {pipeline_mode = #tpu.pipeline_mode<synchronous>, transform_indices = @transform_2, window_bounds = array<i64: 8, 1>}, {pipeline_mode = #tpu.pipeline_mode<synchronous>, transform_indices = @transform_3, window_bounds = array<i64: 8, 8>}, {pipeline_mode = #tpu.pipeline_mode<synchronous>, transform_indices = @transform_4, window_bounds = array<i64: 8, 1>}, {pipeline_mode = #tpu.pipeline_mode<synchronous>, transform_indices = @transform_5, window_bounds = array<i64: 8, 8>}, {pipeline_mode = #tpu.pipeline_mode<synchronous>, transform_indices = @transform_6, window_bounds = array<i64: 8, 1>}, {transform_indices = @transform_7, window_bounds = array<i64: 1, 8, 128>}]} {
    %c0 = arith.constant 0 : index
    %c0_0 = arith.constant 0 : index
    %c0_1 = arith.constant 0 : index
    %c0_2 = arith.constant 0 : index
    %0 = vector.load %arg2[%c0, %c0_0, %c0_1, %c0_2] : memref<1x1x8x130xf32, #tpu.memory_space<vmem>>, vector<1x1x8x130xf32>
    %1 = vector.shape_cast %0 : vector<1x1x8x130xf32> to vector<8x130xf32>
    %2 = vector.extract_strided_slice %1 {offsets = [0, 1], sizes = [8, 128], strides = [1, 1]} : vector<8x130xf32> to vector<8x128xf32>
    %3 = arith.truncf %2 : vector<8x128xf32> to vector<8x128xbf16>
    %c0_3 = arith.constant 0 : index
    %c0_4 = arith.constant 0 : index
    %4 = vector.load %arg7[%c0_3, %c0_4] : memref<8x8xbf16, #tpu.memory_space<vmem>>, vector<8x8xbf16>
    %cst = arith.constant dense<0.000000e+00> : vector<8x128xf32>
    %5 = tpu.matmul %4, %3, %cst {dimension_numbers = #tpu.dot_dimension_numbers<[1], [0], [0], [1], [0, 0, 1, 1], [], []>} : vector<8x8xbf16>, vector<8x128xbf16>, vector<8x128xf32> -> vector<8x128xf32>
    %c0_5 = arith.constant 0 : index
    %c0_6 = arith.constant 0 : index
    %6 = vector.load %arg8[%c0_5, %c0_6] : memref<8x1xf32, #tpu.memory_space<vmem>>, vector<8x1xf32>
    %7 = vector.broadcast %6 : vector<8x1xf32> to vector<8x128xf32>
    %8 = arith.addf %5, %7 : vector<8x128xf32>
    %9 = math.tanh %1 : vector<8x130xf32>
    %10 = arith.truncf %9 : vector<8x130xf32> to vector<8x130xbf16>
    %c0_7 = arith.constant 0 : index
    %c0_8 = arith.constant 0 : index
    %c0_9 = arith.constant 0 : index
    %11 = vector.load %arg3[%c0_7, %c0_8, %c0_9] : memref<3x8x8xbf16, #tpu.memory_space<vmem>>, vector<1x8x8xbf16>
    %12 = vector.shape_cast %11 : vector<1x8x8xbf16> to vector<8x8xbf16>
    %13 = vector.extract_strided_slice %10 {offsets = [0, 0], sizes = [8, 128], strides = [1, 1]} : vector<8x130xbf16> to vector<8x128xbf16>
    %cst_10 = arith.constant dense<0.000000e+00> : vector<8x128xf32>
    %14 = tpu.matmul %12, %13, %cst_10 {dimension_numbers = #tpu.dot_dimension_numbers<[1], [0], [0], [1], [0, 0, 1, 1], [], []>} : vector<8x8xbf16>, vector<8x128xbf16>, vector<8x128xf32> -> vector<8x128xf32>
    %c1 = arith.constant 1 : index
    %c0_11 = arith.constant 0 : index
    %c0_12 = arith.constant 0 : index
    %15 = vector.load %arg3[%c1, %c0_11, %c0_12] : memref<3x8x8xbf16, #tpu.memory_space<vmem>>, vector<1x8x8xbf16>
    %16 = vector.shape_cast %15 : vector<1x8x8xbf16> to vector<8x8xbf16>
    %17 = vector.extract_strided_slice %10 {offsets = [0, 1], sizes = [8, 128], strides = [1, 1]} : vector<8x130xbf16> to vector<8x128xbf16>
    %cst_13 = arith.constant dense<0.000000e+00> : vector<8x128xf32>
    %18 = tpu.matmul %16, %17, %cst_13 {dimension_numbers = #tpu.dot_dimension_numbers<[1], [0], [0], [1], [0, 0, 1, 1], [], []>} : vector<8x8xbf16>, vector<8x128xbf16>, vector<8x128xf32> -> vector<8x128xf32>
    %19 = arith.addf %14, %18 : vector<8x128xf32>
    %c2 = arith.constant 2 : index
    %c0_14 = arith.constant 0 : index
    %c0_15 = arith.constant 0 : index
    %20 = vector.load %arg3[%c2, %c0_14, %c0_15] : memref<3x8x8xbf16, #tpu.memory_space<vmem>>, vector<1x8x8xbf16>
    %21 = vector.shape_cast %20 : vector<1x8x8xbf16> to vector<8x8xbf16>
    %22 = vector.extract_strided_slice %10 {offsets = [0, 2], sizes = [8, 128], strides = [1, 1]} : vector<8x130xbf16> to vector<8x128xbf16>
    %cst_16 = arith.constant dense<0.000000e+00> : vector<8x128xf32>
    %23 = tpu.matmul %21, %22, %cst_16 {dimension_numbers = #tpu.dot_dimension_numbers<[1], [0], [0], [1], [0, 0, 1, 1], [], []>} : vector<8x8xbf16>, vector<8x128xbf16>, vector<8x128xf32> -> vector<8x128xf32>
    %24 = arith.addf %19, %23 : vector<8x128xf32>
    %c0_17 = arith.constant 0 : index
    %c0_18 = arith.constant 0 : index
    %25 = vector.load %arg4[%c0_17, %c0_18] : memref<8x1xf32, #tpu.memory_space<vmem>>, vector<8x1xf32>
    %26 = vector.broadcast %25 : vector<8x1xf32> to vector<8x128xf32>
    %27 = arith.addf %24, %26 : vector<8x128xf32>
    %28 = math.tanh %27 : vector<8x128xf32>
    %29 = arith.truncf %28 : vector<8x128xf32> to vector<8x128xbf16>
    %c0_19 = arith.constant 0 : index
    %c0_20 = arith.constant 0 : index
    %30 = vector.load %arg5[%c0_19, %c0_20] : memref<8x8xbf16, #tpu.memory_space<vmem>>, vector<8x8xbf16>
    %cst_21 = arith.constant dense<0.000000e+00> : vector<8x128xf32>
    %31 = tpu.matmul %30, %29, %cst_21 {dimension_numbers = #tpu.dot_dimension_numbers<[1], [0], [0], [1], [0, 0, 1, 1], [], []>} : vector<8x8xbf16>, vector<8x128xbf16>, vector<8x128xf32> -> vector<8x128xf32>
    %c0_22 = arith.constant 0 : index
    %c0_23 = arith.constant 0 : index
    %32 = vector.load %arg6[%c0_22, %c0_23] : memref<8x1xf32, #tpu.memory_space<vmem>>, vector<8x1xf32>
    %33 = vector.broadcast %32 : vector<8x1xf32> to vector<8x128xf32>
    %34 = arith.addf %31, %33 : vector<8x128xf32>
    %35 = arith.addf %8, %34 : vector<8x128xf32>
    %c0_24 = arith.constant 0 : index
    %c0_25 = arith.constant 0 : index
    %c0_26 = arith.constant 0 : index
    %36 = vector.load %arg9[%c0_24, %c0_25, %c0_26] : memref<1x8x128xf32, #tpu.memory_space<vmem>>, vector<1x8x128xf32>
    %37 = vector.shape_cast %36 : vector<1x8x128xf32> to vector<8x128xf32>
    %38 = vector.shape_cast %35 : vector<8x128xf32> to vector<1x8x128xf32>
    tpu.vector_store %arg9[%c0_24, %c0_25, %c0_26], %38 {strides = array<i32>} : memref<1x8x128xf32, #tpu.memory_space<vmem>>, vector<1x8x128xf32>,
    return
  }
  func.func @transform_0(%arg0: i32, %arg1: i32) -> (i32, i32, i32, i32) {
    %c0_i32 = arith.constant 0 : i32
    %c0_i32_0 = arith.constant 0 : i32
    %c0_i32_1 = arith.constant 0 : i32
    return %arg0, %arg1, %c0_i32, %c0_i32_0 : i32, i32, i32, i32
  }
  func.func @transform_1(%arg0: i32, %arg1: i32) -> (i32, i32, i32) {
    %c0_i32 = arith.constant 0 : i32
    %c0_i32_0 = arith.constant 0 : i32
    %c0_i32_1 = arith.constant 0 : i32
    %c0_i32_2 = arith.constant 0 : i32
    return %c0_i32, %c0_i32_0, %c0_i32_1 : i32, i32, i32
  }
  func.func @transform_2(%arg0: i32, %arg1: i32) -> (i32, i32) {
    %c0_i32 = arith.constant 0 : i32
    %c0_i32_0 = arith.constant 0 : i32
    %c0_i32_1 = arith.constant 0 : i32
    return %c0_i32, %c0_i32_0 : i32, i32
  }
  func.func @transform_3(%arg0: i32, %arg1: i32) -> (i32, i32) {
    %c0_i32 = arith.constant 0 : i32
    %c0_i32_0 = arith.constant 0 : i32
    %c0_i32_1 = arith.constant 0 : i32
    return %c0_i32, %c0_i32_0 : i32, i32
  }
  func.func @transform_4(%arg0: i32, %arg1: i32) -> (i32, i32) {
    %c0_i32 = arith.constant 0 : i32
    %c0_i32_0 = arith.constant 0 : i32
    %c0_i32_1 = arith.constant 0 : i32
    return %c0_i32, %c0_i32_0 : i32, i32
  }
  func.func @transform_5(%arg0: i32, %arg1: i32) -> (i32, i32) {
    %c0_i32 = arith.constant 0 : i32
    %c0_i32_0 = arith.constant 0 : i32
    %c0_i32_1 = arith.constant 0 : i32
    return %c0_i32, %c0_i32_0 : i32, i32
  }
  func.func @transform_6(%arg0: i32, %arg1: i32) -> (i32, i32) {
    %c0_i32 = arith.constant 0 : i32
    %c0_i32_0 = arith.constant 0 : i32
    %c0_i32_1 = arith.constant 0 : i32
    return %c0_i32, %c0_i32_0 : i32, i32
  }
  func.func @transform_7(%arg0: i32, %arg1: i32) -> (i32, i32, i32) {
    %c0_i32 = arith.constant 0 : i32
    %c0_i32_0 = arith.constant 0 : i32
    return %arg0, %c0_i32, %arg1 : i32, i32, i32
  }
}

module attributes {stable_mosaic.version = 11 : i64} {
  func.func @_conv_kernel(%arg0: i32, %arg1: i32, %arg2: memref<1x1x16x129xf32, #tpu.memory_space<vmem>>, %arg3: memref<2x16x16xbf16, #tpu.memory_space<vmem>>, %arg4: memref<16x1xf32, #tpu.memory_space<vmem>>, %arg5: memref<1x16x128xf32, #tpu.memory_space<vmem>>) attributes {dimension_semantics = [#tpu.dimension_semantics<parallel>, #tpu.dimension_semantics<parallel>], iteration_bounds = array<i64: 2, 2>, scalar_prefetch = 0 : i64, scratch_operands = 0 : i64, tpu.core_type = #tpu.core_type<tc>, window_params = [{transform_indices = @transform_0, window_bounds = array<i64: 1, 1, 16, 129>}, {pipeline_mode = #tpu.pipeline_mode<synchronous>, transform_indices = @transform_1, window_bounds = array<i64: 2, 16, 16>}, {pipeline_mode = #tpu.pipeline_mode<synchronous>, transform_indices = @transform_2, window_bounds = array<i64: 16, 1>}, {transform_indices = @transform_3, window_bounds = array<i64: 1, 16, 128>}]} {
    %c0 = arith.constant 0 : index
    %c0_0 = arith.constant 0 : index
    %c0_1 = arith.constant 0 : index
    %c0_2 = arith.constant 0 : index
    %0 = vector.load %arg2[%c0, %c0_0, %c0_1, %c0_2] : memref<1x1x16x129xf32, #tpu.memory_space<vmem>>, vector<1x1x16x129xf32>
    %1 = vector.shape_cast %0 : vector<1x1x16x129xf32> to vector<16x129xf32>
    %2 = math.tanh %1 : vector<16x129xf32>
    %3 = arith.truncf %2 : vector<16x129xf32> to vector<16x129xbf16>
    %c0_3 = arith.constant 0 : index
    %c0_4 = arith.constant 0 : index
    %c0_5 = arith.constant 0 : index
    %4 = vector.load %arg3[%c0_3, %c0_4, %c0_5] : memref<2x16x16xbf16, #tpu.memory_space<vmem>>, vector<1x16x16xbf16>
    %5 = vector.shape_cast %4 : vector<1x16x16xbf16> to vector<16x16xbf16>
    %6 = vector.extract_strided_slice %3 {offsets = [0, 0], sizes = [16, 128], strides = [1, 1]} : vector<16x129xbf16> to vector<16x128xbf16>
    %cst = arith.constant dense<0.000000e+00> : vector<16x128xf32>
    %7 = tpu.matmul %5, %6, %cst {dimension_numbers = #tpu.dot_dimension_numbers<[1], [0], [0], [1], [0, 0, 1, 1], [], []>} : vector<16x16xbf16>, vector<16x128xbf16>, vector<16x128xf32> -> vector<16x128xf32>
    %c1 = arith.constant 1 : index
    %c0_6 = arith.constant 0 : index
    %c0_7 = arith.constant 0 : index
    %8 = vector.load %arg3[%c1, %c0_6, %c0_7] : memref<2x16x16xbf16, #tpu.memory_space<vmem>>, vector<1x16x16xbf16>
    %9 = vector.shape_cast %8 : vector<1x16x16xbf16> to vector<16x16xbf16>
    %10 = vector.extract_strided_slice %3 {offsets = [0, 1], sizes = [16, 128], strides = [1, 1]} : vector<16x129xbf16> to vector<16x128xbf16>
    %cst_8 = arith.constant dense<0.000000e+00> : vector<16x128xf32>
    %11 = tpu.matmul %9, %10, %cst_8 {dimension_numbers = #tpu.dot_dimension_numbers<[1], [0], [0], [1], [0, 0, 1, 1], [], []>} : vector<16x16xbf16>, vector<16x128xbf16>, vector<16x128xf32> -> vector<16x128xf32>
    %12 = arith.addf %7, %11 : vector<16x128xf32>
    %c0_9 = arith.constant 0 : index
    %c0_10 = arith.constant 0 : index
    %13 = vector.load %arg4[%c0_9, %c0_10] : memref<16x1xf32, #tpu.memory_space<vmem>>, vector<16x1xf32>
    %14 = vector.broadcast %13 : vector<16x1xf32> to vector<16x128xf32>
    %15 = arith.addf %12, %14 : vector<16x128xf32>
    %c0_11 = arith.constant 0 : index
    %c0_12 = arith.constant 0 : index
    %c0_13 = arith.constant 0 : index
    %16 = vector.load %arg5[%c0_11, %c0_12, %c0_13] : memref<1x16x128xf32, #tpu.memory_space<vmem>>, vector<1x16x128xf32>
    %17 = vector.shape_cast %16 : vector<1x16x128xf32> to vector<16x128xf32>
    %18 = vector.shape_cast %15 : vector<16x128xf32> to vector<1x16x128xf32>
    tpu.vector_store %arg5[%c0_11, %c0_12, %c0_13], %18 {strides = array<i32>} : memref<1x16x128xf32, #tpu.memory_space<vmem>>, vector<1x16x128xf32>,
    return
  }
  func.func @transform_0(%arg0: i32, %arg1: i32) -> (i32, i32, i32, i32) {
    %c0_i32 = arith.constant 0 : i32
    %c0_i32_0 = arith.constant 0 : i32
    %c0_i32_1 = arith.constant 0 : i32
    return %arg0, %arg1, %c0_i32, %c0_i32_0 : i32, i32, i32, i32
  }
  func.func @transform_1(%arg0: i32, %arg1: i32) -> (i32, i32, i32) {
    %c0_i32 = arith.constant 0 : i32
    %c0_i32_0 = arith.constant 0 : i32
    %c0_i32_1 = arith.constant 0 : i32
    %c0_i32_2 = arith.constant 0 : i32
    return %c0_i32, %c0_i32_0, %c0_i32_1 : i32, i32, i32
  }
  func.func @transform_2(%arg0: i32, %arg1: i32) -> (i32, i32) {
    %c0_i32 = arith.constant 0 : i32
    %c0_i32_0 = arith.constant 0 : i32
    %c0_i32_1 = arith.constant 0 : i32
    return %c0_i32, %c0_i32_0 : i32, i32
  }
  func.func @transform_3(%arg0: i32, %arg1: i32) -> (i32, i32, i32) {
    %c0_i32 = arith.constant 0 : i32
    %c0_i32_0 = arith.constant 0 : i32
    return %arg0, %c0_i32, %arg1 : i32, i32, i32
  }
}

module attributes {stable_mosaic.version = 11 : i64} {
  func.func @_resblock_kernel(%arg0: i32, %arg1: i32, %arg2: memref<1x1x16x134xf32, #tpu.memory_space<vmem>>, %arg3: memref<3x16x16xbf16, #tpu.memory_space<vmem>>, %arg4: memref<16x1xf32, #tpu.memory_space<vmem>>, %arg5: memref<16x16xbf16, #tpu.memory_space<vmem>>, %arg6: memref<16x1xf32, #tpu.memory_space<vmem>>, %arg7: memref<16x16xbf16, #tpu.memory_space<vmem>>, %arg8: memref<16x1xf32, #tpu.memory_space<vmem>>, %arg9: memref<1x16x128xf32, #tpu.memory_space<vmem>>) attributes {dimension_semantics = [#tpu.dimension_semantics<parallel>, #tpu.dimension_semantics<parallel>], iteration_bounds = array<i64: 2, 2>, scalar_prefetch = 0 : i64, scratch_operands = 0 : i64, tpu.core_type = #tpu.core_type<tc>, window_params = [{transform_indices = @transform_0, window_bounds = array<i64: 1, 1, 16, 134>}, {pipeline_mode = #tpu.pipeline_mode<synchronous>, transform_indices = @transform_1, window_bounds = array<i64: 3, 16, 16>}, {pipeline_mode = #tpu.pipeline_mode<synchronous>, transform_indices = @transform_2, window_bounds = array<i64: 16, 1>}, {pipeline_mode = #tpu.pipeline_mode<synchronous>, transform_indices = @transform_3, window_bounds = array<i64: 16, 16>}, {pipeline_mode = #tpu.pipeline_mode<synchronous>, transform_indices = @transform_4, window_bounds = array<i64: 16, 1>}, {pipeline_mode = #tpu.pipeline_mode<synchronous>, transform_indices = @transform_5, window_bounds = array<i64: 16, 16>}, {pipeline_mode = #tpu.pipeline_mode<synchronous>, transform_indices = @transform_6, window_bounds = array<i64: 16, 1>}, {transform_indices = @transform_7, window_bounds = array<i64: 1, 16, 128>}]} {
    %c0 = arith.constant 0 : index
    %c0_0 = arith.constant 0 : index
    %c0_1 = arith.constant 0 : index
    %c0_2 = arith.constant 0 : index
    %0 = vector.load %arg2[%c0, %c0_0, %c0_1, %c0_2] : memref<1x1x16x134xf32, #tpu.memory_space<vmem>>, vector<1x1x16x134xf32>
    %1 = vector.shape_cast %0 : vector<1x1x16x134xf32> to vector<16x134xf32>
    %2 = vector.extract_strided_slice %1 {offsets = [0, 3], sizes = [16, 128], strides = [1, 1]} : vector<16x134xf32> to vector<16x128xf32>
    %3 = arith.truncf %2 : vector<16x128xf32> to vector<16x128xbf16>
    %c0_3 = arith.constant 0 : index
    %c0_4 = arith.constant 0 : index
    %4 = vector.load %arg7[%c0_3, %c0_4] : memref<16x16xbf16, #tpu.memory_space<vmem>>, vector<16x16xbf16>
    %cst = arith.constant dense<0.000000e+00> : vector<16x128xf32>
    %5 = tpu.matmul %4, %3, %cst {dimension_numbers = #tpu.dot_dimension_numbers<[1], [0], [0], [1], [0, 0, 1, 1], [], []>} : vector<16x16xbf16>, vector<16x128xbf16>, vector<16x128xf32> -> vector<16x128xf32>
    %c0_5 = arith.constant 0 : index
    %c0_6 = arith.constant 0 : index
    %6 = vector.load %arg8[%c0_5, %c0_6] : memref<16x1xf32, #tpu.memory_space<vmem>>, vector<16x1xf32>
    %7 = vector.broadcast %6 : vector<16x1xf32> to vector<16x128xf32>
    %8 = arith.addf %5, %7 : vector<16x128xf32>
    %9 = math.tanh %1 : vector<16x134xf32>
    %10 = arith.truncf %9 : vector<16x134xf32> to vector<16x134xbf16>
    %c0_7 = arith.constant 0 : index
    %c0_8 = arith.constant 0 : index
    %c0_9 = arith.constant 0 : index
    %11 = vector.load %arg3[%c0_7, %c0_8, %c0_9] : memref<3x16x16xbf16, #tpu.memory_space<vmem>>, vector<1x16x16xbf16>
    %12 = vector.shape_cast %11 : vector<1x16x16xbf16> to vector<16x16xbf16>
    %13 = vector.extract_strided_slice %10 {offsets = [0, 0], sizes = [16, 128], strides = [1, 1]} : vector<16x134xbf16> to vector<16x128xbf16>
    %cst_10 = arith.constant dense<0.000000e+00> : vector<16x128xf32>
    %14 = tpu.matmul %12, %13, %cst_10 {dimension_numbers = #tpu.dot_dimension_numbers<[1], [0], [0], [1], [0, 0, 1, 1], [], []>} : vector<16x16xbf16>, vector<16x128xbf16>, vector<16x128xf32> -> vector<16x128xf32>
    %c1 = arith.constant 1 : index
    %c0_11 = arith.constant 0 : index
    %c0_12 = arith.constant 0 : index
    %15 = vector.load %arg3[%c1, %c0_11, %c0_12] : memref<3x16x16xbf16, #tpu.memory_space<vmem>>, vector<1x16x16xbf16>
    %16 = vector.shape_cast %15 : vector<1x16x16xbf16> to vector<16x16xbf16>
    %17 = vector.extract_strided_slice %10 {offsets = [0, 3], sizes = [16, 128], strides = [1, 1]} : vector<16x134xbf16> to vector<16x128xbf16>
    %cst_13 = arith.constant dense<0.000000e+00> : vector<16x128xf32>
    %18 = tpu.matmul %16, %17, %cst_13 {dimension_numbers = #tpu.dot_dimension_numbers<[1], [0], [0], [1], [0, 0, 1, 1], [], []>} : vector<16x16xbf16>, vector<16x128xbf16>, vector<16x128xf32> -> vector<16x128xf32>
    %19 = arith.addf %14, %18 : vector<16x128xf32>
    %c2 = arith.constant 2 : index
    %c0_14 = arith.constant 0 : index
    %c0_15 = arith.constant 0 : index
    %20 = vector.load %arg3[%c2, %c0_14, %c0_15] : memref<3x16x16xbf16, #tpu.memory_space<vmem>>, vector<1x16x16xbf16>
    %21 = vector.shape_cast %20 : vector<1x16x16xbf16> to vector<16x16xbf16>
    %22 = vector.extract_strided_slice %10 {offsets = [0, 6], sizes = [16, 128], strides = [1, 1]} : vector<16x134xbf16> to vector<16x128xbf16>
    %cst_16 = arith.constant dense<0.000000e+00> : vector<16x128xf32>
    %23 = tpu.matmul %21, %22, %cst_16 {dimension_numbers = #tpu.dot_dimension_numbers<[1], [0], [0], [1], [0, 0, 1, 1], [], []>} : vector<16x16xbf16>, vector<16x128xbf16>, vector<16x128xf32> -> vector<16x128xf32>
    %24 = arith.addf %19, %23 : vector<16x128xf32>
    %c0_17 = arith.constant 0 : index
    %c0_18 = arith.constant 0 : index
    %25 = vector.load %arg4[%c0_17, %c0_18] : memref<16x1xf32, #tpu.memory_space<vmem>>, vector<16x1xf32>
    %26 = vector.broadcast %25 : vector<16x1xf32> to vector<16x128xf32>
    %27 = arith.addf %24, %26 : vector<16x128xf32>
    %28 = math.tanh %27 : vector<16x128xf32>
    %29 = arith.truncf %28 : vector<16x128xf32> to vector<16x128xbf16>
    %c0_19 = arith.constant 0 : index
    %c0_20 = arith.constant 0 : index
    %30 = vector.load %arg5[%c0_19, %c0_20] : memref<16x16xbf16, #tpu.memory_space<vmem>>, vector<16x16xbf16>
    %cst_21 = arith.constant dense<0.000000e+00> : vector<16x128xf32>
    %31 = tpu.matmul %30, %29, %cst_21 {dimension_numbers = #tpu.dot_dimension_numbers<[1], [0], [0], [1], [0, 0, 1, 1], [], []>} : vector<16x16xbf16>, vector<16x128xbf16>, vector<16x128xf32> -> vector<16x128xf32>
    %c0_22 = arith.constant 0 : index
    %c0_23 = arith.constant 0 : index
    %32 = vector.load %arg6[%c0_22, %c0_23] : memref<16x1xf32, #tpu.memory_space<vmem>>, vector<16x1xf32>
    %33 = vector.broadcast %32 : vector<16x1xf32> to vector<16x128xf32>
    %34 = arith.addf %31, %33 : vector<16x128xf32>
    %35 = arith.addf %8, %34 : vector<16x128xf32>
    %c0_24 = arith.constant 0 : index
    %c0_25 = arith.constant 0 : index
    %c0_26 = arith.constant 0 : index
    %36 = vector.load %arg9[%c0_24, %c0_25, %c0_26] : memref<1x16x128xf32, #tpu.memory_space<vmem>>, vector<1x16x128xf32>
    %37 = vector.shape_cast %36 : vector<1x16x128xf32> to vector<16x128xf32>
    %38 = vector.shape_cast %35 : vector<16x128xf32> to vector<1x16x128xf32>
    tpu.vector_store %arg9[%c0_24, %c0_25, %c0_26], %38 {strides = array<i32>} : memref<1x16x128xf32, #tpu.memory_space<vmem>>, vector<1x16x128xf32>,
    return
  }
  func.func @transform_0(%arg0: i32, %arg1: i32) -> (i32, i32, i32, i32) {
    %c0_i32 = arith.constant 0 : i32
    %c0_i32_0 = arith.constant 0 : i32
    %c0_i32_1 = arith.constant 0 : i32
    return %arg0, %arg1, %c0_i32, %c0_i32_0 : i32, i32, i32, i32
  }
  func.func @transform_1(%arg0: i32, %arg1: i32) -> (i32, i32, i32) {
    %c0_i32 = arith.constant 0 : i32
    %c0_i32_0 = arith.constant 0 : i32
    %c0_i32_1 = arith.constant 0 : i32
    %c0_i32_2 = arith.constant 0 : i32
    return %c0_i32, %c0_i32_0, %c0_i32_1 : i32, i32, i32
  }
  func.func @transform_2(%arg0: i32, %arg1: i32) -> (i32, i32) {
    %c0_i32 = arith.constant 0 : i32
    %c0_i32_0 = arith.constant 0 : i32
    %c0_i32_1 = arith.constant 0 : i32
    return %c0_i32, %c0_i32_0 : i32, i32
  }
  func.func @transform_3(%arg0: i32, %arg1: i32) -> (i32, i32) {
    %c0_i32 = arith.constant 0 : i32
    %c0_i32_0 = arith.constant 0 : i32
    %c0_i32_1 = arith.constant 0 : i32
    return %c0_i32, %c0_i32_0 : i32, i32
  }
  func.func @transform_4(%arg0: i32, %arg1: i32) -> (i32, i32) {
    %c0_i32 = arith.constant 0 : i32
    %c0_i32_0 = arith.constant 0 : i32
    %c0_i32_1 = arith.constant 0 : i32
    return %c0_i32, %c0_i32_0 : i32, i32
  }
  func.func @transform_5(%arg0: i32, %arg1: i32) -> (i32, i32) {
    %c0_i32 = arith.constant 0 : i32
    %c0_i32_0 = arith.constant 0 : i32
    %c0_i32_1 = arith.constant 0 : i32
    return %c0_i32, %c0_i32_0 : i32, i32
  }
  func.func @transform_6(%arg0: i32, %arg1: i32) -> (i32, i32) {
    %c0_i32 = arith.constant 0 : i32
    %c0_i32_0 = arith.constant 0 : i32
    %c0_i32_1 = arith.constant 0 : i32
    return %c0_i32, %c0_i32_0 : i32, i32
  }
  func.func @transform_7(%arg0: i32, %arg1: i32) -> (i32, i32, i32) {
    %c0_i32 = arith.constant 0 : i32
    %c0_i32_0 = arith.constant 0 : i32
    return %arg0, %c0_i32, %arg1 : i32, i32, i32
  }
}

module attributes {stable_mosaic.version = 11 : i64} {
  func.func @_resblock_kernel(%arg0: i32, %arg1: i32, %arg2: memref<1x1x16x130xf32, #tpu.memory_space<vmem>>, %arg3: memref<3x16x16xbf16, #tpu.memory_space<vmem>>, %arg4: memref<16x1xf32, #tpu.memory_space<vmem>>, %arg5: memref<16x16xbf16, #tpu.memory_space<vmem>>, %arg6: memref<16x1xf32, #tpu.memory_space<vmem>>, %arg7: memref<16x16xbf16, #tpu.memory_space<vmem>>, %arg8: memref<16x1xf32, #tpu.memory_space<vmem>>, %arg9: memref<1x16x128xf32, #tpu.memory_space<vmem>>) attributes {dimension_semantics = [#tpu.dimension_semantics<parallel>, #tpu.dimension_semantics<parallel>], iteration_bounds = array<i64: 2, 2>, scalar_prefetch = 0 : i64, scratch_operands = 0 : i64, tpu.core_type = #tpu.core_type<tc>, window_params = [{transform_indices = @transform_0, window_bounds = array<i64: 1, 1, 16, 130>}, {pipeline_mode = #tpu.pipeline_mode<synchronous>, transform_indices = @transform_1, window_bounds = array<i64: 3, 16, 16>}, {pipeline_mode = #tpu.pipeline_mode<synchronous>, transform_indices = @transform_2, window_bounds = array<i64: 16, 1>}, {pipeline_mode = #tpu.pipeline_mode<synchronous>, transform_indices = @transform_3, window_bounds = array<i64: 16, 16>}, {pipeline_mode = #tpu.pipeline_mode<synchronous>, transform_indices = @transform_4, window_bounds = array<i64: 16, 1>}, {pipeline_mode = #tpu.pipeline_mode<synchronous>, transform_indices = @transform_5, window_bounds = array<i64: 16, 16>}, {pipeline_mode = #tpu.pipeline_mode<synchronous>, transform_indices = @transform_6, window_bounds = array<i64: 16, 1>}, {transform_indices = @transform_7, window_bounds = array<i64: 1, 16, 128>}]} {
    %c0 = arith.constant 0 : index
    %c0_0 = arith.constant 0 : index
    %c0_1 = arith.constant 0 : index
    %c0_2 = arith.constant 0 : index
    %0 = vector.load %arg2[%c0, %c0_0, %c0_1, %c0_2] : memref<1x1x16x130xf32, #tpu.memory_space<vmem>>, vector<1x1x16x130xf32>
    %1 = vector.shape_cast %0 : vector<1x1x16x130xf32> to vector<16x130xf32>
    %2 = vector.extract_strided_slice %1 {offsets = [0, 1], sizes = [16, 128], strides = [1, 1]} : vector<16x130xf32> to vector<16x128xf32>
    %3 = arith.truncf %2 : vector<16x128xf32> to vector<16x128xbf16>
    %c0_3 = arith.constant 0 : index
    %c0_4 = arith.constant 0 : index
    %4 = vector.load %arg7[%c0_3, %c0_4] : memref<16x16xbf16, #tpu.memory_space<vmem>>, vector<16x16xbf16>
    %cst = arith.constant dense<0.000000e+00> : vector<16x128xf32>
    %5 = tpu.matmul %4, %3, %cst {dimension_numbers = #tpu.dot_dimension_numbers<[1], [0], [0], [1], [0, 0, 1, 1], [], []>} : vector<16x16xbf16>, vector<16x128xbf16>, vector<16x128xf32> -> vector<16x128xf32>
    %c0_5 = arith.constant 0 : index
    %c0_6 = arith.constant 0 : index
    %6 = vector.load %arg8[%c0_5, %c0_6] : memref<16x1xf32, #tpu.memory_space<vmem>>, vector<16x1xf32>
    %7 = vector.broadcast %6 : vector<16x1xf32> to vector<16x128xf32>
    %8 = arith.addf %5, %7 : vector<16x128xf32>
    %9 = math.tanh %1 : vector<16x130xf32>
    %10 = arith.truncf %9 : vector<16x130xf32> to vector<16x130xbf16>
    %c0_7 = arith.constant 0 : index
    %c0_8 = arith.constant 0 : index
    %c0_9 = arith.constant 0 : index
    %11 = vector.load %arg3[%c0_7, %c0_8, %c0_9] : memref<3x16x16xbf16, #tpu.memory_space<vmem>>, vector<1x16x16xbf16>
    %12 = vector.shape_cast %11 : vector<1x16x16xbf16> to vector<16x16xbf16>
    %13 = vector.extract_strided_slice %10 {offsets = [0, 0], sizes = [16, 128], strides = [1, 1]} : vector<16x130xbf16> to vector<16x128xbf16>
    %cst_10 = arith.constant dense<0.000000e+00> : vector<16x128xf32>
    %14 = tpu.matmul %12, %13, %cst_10 {dimension_numbers = #tpu.dot_dimension_numbers<[1], [0], [0], [1], [0, 0, 1, 1], [], []>} : vector<16x16xbf16>, vector<16x128xbf16>, vector<16x128xf32> -> vector<16x128xf32>
    %c1 = arith.constant 1 : index
    %c0_11 = arith.constant 0 : index
    %c0_12 = arith.constant 0 : index
    %15 = vector.load %arg3[%c1, %c0_11, %c0_12] : memref<3x16x16xbf16, #tpu.memory_space<vmem>>, vector<1x16x16xbf16>
    %16 = vector.shape_cast %15 : vector<1x16x16xbf16> to vector<16x16xbf16>
    %17 = vector.extract_strided_slice %10 {offsets = [0, 1], sizes = [16, 128], strides = [1, 1]} : vector<16x130xbf16> to vector<16x128xbf16>
    %cst_13 = arith.constant dense<0.000000e+00> : vector<16x128xf32>
    %18 = tpu.matmul %16, %17, %cst_13 {dimension_numbers = #tpu.dot_dimension_numbers<[1], [0], [0], [1], [0, 0, 1, 1], [], []>} : vector<16x16xbf16>, vector<16x128xbf16>, vector<16x128xf32> -> vector<16x128xf32>
    %19 = arith.addf %14, %18 : vector<16x128xf32>
    %c2 = arith.constant 2 : index
    %c0_14 = arith.constant 0 : index
    %c0_15 = arith.constant 0 : index
    %20 = vector.load %arg3[%c2, %c0_14, %c0_15] : memref<3x16x16xbf16, #tpu.memory_space<vmem>>, vector<1x16x16xbf16>
    %21 = vector.shape_cast %20 : vector<1x16x16xbf16> to vector<16x16xbf16>
    %22 = vector.extract_strided_slice %10 {offsets = [0, 2], sizes = [16, 128], strides = [1, 1]} : vector<16x130xbf16> to vector<16x128xbf16>
    %cst_16 = arith.constant dense<0.000000e+00> : vector<16x128xf32>
    %23 = tpu.matmul %21, %22, %cst_16 {dimension_numbers = #tpu.dot_dimension_numbers<[1], [0], [0], [1], [0, 0, 1, 1], [], []>} : vector<16x16xbf16>, vector<16x128xbf16>, vector<16x128xf32> -> vector<16x128xf32>
    %24 = arith.addf %19, %23 : vector<16x128xf32>
    %c0_17 = arith.constant 0 : index
    %c0_18 = arith.constant 0 : index
    %25 = vector.load %arg4[%c0_17, %c0_18] : memref<16x1xf32, #tpu.memory_space<vmem>>, vector<16x1xf32>
    %26 = vector.broadcast %25 : vector<16x1xf32> to vector<16x128xf32>
    %27 = arith.addf %24, %26 : vector<16x128xf32>
    %28 = math.tanh %27 : vector<16x128xf32>
    %29 = arith.truncf %28 : vector<16x128xf32> to vector<16x128xbf16>
    %c0_19 = arith.constant 0 : index
    %c0_20 = arith.constant 0 : index
    %30 = vector.load %arg5[%c0_19, %c0_20] : memref<16x16xbf16, #tpu.memory_space<vmem>>, vector<16x16xbf16>
    %cst_21 = arith.constant dense<0.000000e+00> : vector<16x128xf32>
    %31 = tpu.matmul %30, %29, %cst_21 {dimension_numbers = #tpu.dot_dimension_numbers<[1], [0], [0], [1], [0, 0, 1, 1], [], []>} : vector<16x16xbf16>, vector<16x128xbf16>, vector<16x128xf32> -> vector<16x128xf32>
    %c0_22 = arith.constant 0 : index
    %c0_23 = arith.constant 0 : index
    %32 = vector.load %arg6[%c0_22, %c0_23] : memref<16x1xf32, #tpu.memory_space<vmem>>, vector<16x1xf32>
    %33 = vector.broadcast %32 : vector<16x1xf32> to vector<16x128xf32>
    %34 = arith.addf %31, %33 : vector<16x128xf32>
    %35 = arith.addf %8, %34 : vector<16x128xf32>
    %c0_24 = arith.constant 0 : index
    %c0_25 = arith.constant 0 : index
    %c0_26 = arith.constant 0 : index
    %36 = vector.load %arg9[%c0_24, %c0_25, %c0_26] : memref<1x16x128xf32, #tpu.memory_space<vmem>>, vector<1x16x128xf32>
    %37 = vector.shape_cast %36 : vector<1x16x128xf32> to vector<16x128xf32>
    %38 = vector.shape_cast %35 : vector<16x128xf32> to vector<1x16x128xf32>
    tpu.vector_store %arg9[%c0_24, %c0_25, %c0_26], %38 {strides = array<i32>} : memref<1x16x128xf32, #tpu.memory_space<vmem>>, vector<1x16x128xf32>,
    return
  }
  func.func @transform_0(%arg0: i32, %arg1: i32) -> (i32, i32, i32, i32) {
    %c0_i32 = arith.constant 0 : i32
    %c0_i32_0 = arith.constant 0 : i32
    %c0_i32_1 = arith.constant 0 : i32
    return %arg0, %arg1, %c0_i32, %c0_i32_0 : i32, i32, i32, i32
  }
  func.func @transform_1(%arg0: i32, %arg1: i32) -> (i32, i32, i32) {
    %c0_i32 = arith.constant 0 : i32
    %c0_i32_0 = arith.constant 0 : i32
    %c0_i32_1 = arith.constant 0 : i32
    %c0_i32_2 = arith.constant 0 : i32
    return %c0_i32, %c0_i32_0, %c0_i32_1 : i32, i32, i32
  }
  func.func @transform_2(%arg0: i32, %arg1: i32) -> (i32, i32) {
    %c0_i32 = arith.constant 0 : i32
    %c0_i32_0 = arith.constant 0 : i32
    %c0_i32_1 = arith.constant 0 : i32
    return %c0_i32, %c0_i32_0 : i32, i32
  }
  func.func @transform_3(%arg0: i32, %arg1: i32) -> (i32, i32) {
    %c0_i32 = arith.constant 0 : i32
    %c0_i32_0 = arith.constant 0 : i32
    %c0_i32_1 = arith.constant 0 : i32
    return %c0_i32, %c0_i32_0 : i32, i32
  }
  func.func @transform_4(%arg0: i32, %arg1: i32) -> (i32, i32) {
    %c0_i32 = arith.constant 0 : i32
    %c0_i32_0 = arith.constant 0 : i32
    %c0_i32_1 = arith.constant 0 : i32
    return %c0_i32, %c0_i32_0 : i32, i32
  }
  func.func @transform_5(%arg0: i32, %arg1: i32) -> (i32, i32) {
    %c0_i32 = arith.constant 0 : i32
    %c0_i32_0 = arith.constant 0 : i32
    %c0_i32_1 = arith.constant 0 : i32
    return %c0_i32, %c0_i32_0 : i32, i32
  }
  func.func @transform_6(%arg0: i32, %arg1: i32) -> (i32, i32) {
    %c0_i32 = arith.constant 0 : i32
    %c0_i32_0 = arith.constant 0 : i32
    %c0_i32_1 = arith.constant 0 : i32
    return %c0_i32, %c0_i32_0 : i32, i32
  }
  func.func @transform_7(%arg0: i32, %arg1: i32) -> (i32, i32, i32) {
    %c0_i32 = arith.constant 0 : i32
    %c0_i32_0 = arith.constant 0 : i32
    return %arg0, %c0_i32, %arg1 : i32, i32, i32
  }
}

module attributes {stable_mosaic.version = 11 : i64} {
  func.func @_conv_kernel(%arg0: i32, %arg1: i32, %arg2: memref<1x1x32x129xf32, #tpu.memory_space<vmem>>, %arg3: memref<2x32x32xbf16, #tpu.memory_space<vmem>>, %arg4: memref<32x1xf32, #tpu.memory_space<vmem>>, %arg5: memref<1x32x128xf32, #tpu.memory_space<vmem>>) attributes {dimension_semantics = [#tpu.dimension_semantics<parallel>, #tpu.dimension_semantics<parallel>], iteration_bounds = array<i64: 2, 1>, scalar_prefetch = 0 : i64, scratch_operands = 0 : i64, tpu.core_type = #tpu.core_type<tc>, window_params = [{transform_indices = @transform_0, window_bounds = array<i64: 1, 1, 32, 129>}, {pipeline_mode = #tpu.pipeline_mode<synchronous>, transform_indices = @transform_1, window_bounds = array<i64: 2, 32, 32>}, {pipeline_mode = #tpu.pipeline_mode<synchronous>, transform_indices = @transform_2, window_bounds = array<i64: 32, 1>}, {transform_indices = @transform_3, window_bounds = array<i64: 1, 32, 128>}]} {
    %c0 = arith.constant 0 : index
    %c0_0 = arith.constant 0 : index
    %c0_1 = arith.constant 0 : index
    %c0_2 = arith.constant 0 : index
    %0 = vector.load %arg2[%c0, %c0_0, %c0_1, %c0_2] : memref<1x1x32x129xf32, #tpu.memory_space<vmem>>, vector<1x1x32x129xf32>
    %1 = vector.shape_cast %0 : vector<1x1x32x129xf32> to vector<32x129xf32>
    %2 = math.tanh %1 : vector<32x129xf32>
    %3 = arith.truncf %2 : vector<32x129xf32> to vector<32x129xbf16>
    %c0_3 = arith.constant 0 : index
    %c0_4 = arith.constant 0 : index
    %c0_5 = arith.constant 0 : index
    %4 = vector.load %arg3[%c0_3, %c0_4, %c0_5] : memref<2x32x32xbf16, #tpu.memory_space<vmem>>, vector<1x32x32xbf16>
    %5 = vector.shape_cast %4 : vector<1x32x32xbf16> to vector<32x32xbf16>
    %6 = vector.extract_strided_slice %3 {offsets = [0, 0], sizes = [32, 128], strides = [1, 1]} : vector<32x129xbf16> to vector<32x128xbf16>
    %cst = arith.constant dense<0.000000e+00> : vector<32x128xf32>
    %7 = tpu.matmul %5, %6, %cst {dimension_numbers = #tpu.dot_dimension_numbers<[1], [0], [0], [1], [0, 0, 1, 1], [], []>} : vector<32x32xbf16>, vector<32x128xbf16>, vector<32x128xf32> -> vector<32x128xf32>
    %c1 = arith.constant 1 : index
    %c0_6 = arith.constant 0 : index
    %c0_7 = arith.constant 0 : index
    %8 = vector.load %arg3[%c1, %c0_6, %c0_7] : memref<2x32x32xbf16, #tpu.memory_space<vmem>>, vector<1x32x32xbf16>
    %9 = vector.shape_cast %8 : vector<1x32x32xbf16> to vector<32x32xbf16>
    %10 = vector.extract_strided_slice %3 {offsets = [0, 1], sizes = [32, 128], strides = [1, 1]} : vector<32x129xbf16> to vector<32x128xbf16>
    %cst_8 = arith.constant dense<0.000000e+00> : vector<32x128xf32>
    %11 = tpu.matmul %9, %10, %cst_8 {dimension_numbers = #tpu.dot_dimension_numbers<[1], [0], [0], [1], [0, 0, 1, 1], [], []>} : vector<32x32xbf16>, vector<32x128xbf16>, vector<32x128xf32> -> vector<32x128xf32>
    %12 = arith.addf %7, %11 : vector<32x128xf32>
    %c0_9 = arith.constant 0 : index
    %c0_10 = arith.constant 0 : index
    %13 = vector.load %arg4[%c0_9, %c0_10] : memref<32x1xf32, #tpu.memory_space<vmem>>, vector<32x1xf32>
    %14 = vector.broadcast %13 : vector<32x1xf32> to vector<32x128xf32>
    %15 = arith.addf %12, %14 : vector<32x128xf32>
    %16 = math.tanh %15 : vector<32x128xf32>
    %c0_11 = arith.constant 0 : index
    %c0_12 = arith.constant 0 : index
    %c0_13 = arith.constant 0 : index
    %17 = vector.load %arg5[%c0_11, %c0_12, %c0_13] : memref<1x32x128xf32, #tpu.memory_space<vmem>>, vector<1x32x128xf32>
    %18 = vector.shape_cast %17 : vector<1x32x128xf32> to vector<32x128xf32>
    %19 = vector.shape_cast %16 : vector<32x128xf32> to vector<1x32x128xf32>
    tpu.vector_store %arg5[%c0_11, %c0_12, %c0_13], %19 {strides = array<i32>} : memref<1x32x128xf32, #tpu.memory_space<vmem>>, vector<1x32x128xf32>,
    return
  }
  func.func @transform_0(%arg0: i32, %arg1: i32) -> (i32, i32, i32, i32) {
    %c0_i32 = arith.constant 0 : i32
    %c0_i32_0 = arith.constant 0 : i32
    %c0_i32_1 = arith.constant 0 : i32
    return %arg0, %arg1, %c0_i32, %c0_i32_0 : i32, i32, i32, i32
  }
  func.func @transform_1(%arg0: i32, %arg1: i32) -> (i32, i32, i32) {
    %c0_i32 = arith.constant 0 : i32
    %c0_i32_0 = arith.constant 0 : i32
    %c0_i32_1 = arith.constant 0 : i32
    %c0_i32_2 = arith.constant 0 : i32
    return %c0_i32, %c0_i32_0, %c0_i32_1 : i32, i32, i32
  }
  func.func @transform_2(%arg0: i32, %arg1: i32) -> (i32, i32) {
    %c0_i32 = arith.constant 0 : i32
    %c0_i32_0 = arith.constant 0 : i32
    %c0_i32_1 = arith.constant 0 : i32
    return %c0_i32, %c0_i32_0 : i32, i32
  }
  func.func @transform_3(%arg0: i32, %arg1: i32) -> (i32, i32, i32) {
    %c0_i32 = arith.constant 0 : i32
    %c0_i32_0 = arith.constant 0 : i32
    return %arg0, %c0_i32, %arg1 : i32, i32, i32
  }
}

module attributes {stable_mosaic.version = 11 : i64} {
  func.func @_convT_kernel(%arg0: i32, %arg1: i32, %arg2: memref<1x1x32x130xf32, #tpu.memory_space<vmem>>, %arg3: memref<4x16x32xbf16, #tpu.memory_space<vmem>>, %arg4: memref<16x1xf32, #tpu.memory_space<vmem>>, %arg5: memref<1x2x16x128xf32, #tpu.memory_space<vmem>>) attributes {dimension_semantics = [#tpu.dimension_semantics<parallel>, #tpu.dimension_semantics<parallel>], iteration_bounds = array<i64: 2, 1>, scalar_prefetch = 0 : i64, scratch_operands = 0 : i64, tpu.core_type = #tpu.core_type<tc>, window_params = [{transform_indices = @transform_0, window_bounds = array<i64: 1, 1, 32, 130>}, {pipeline_mode = #tpu.pipeline_mode<synchronous>, transform_indices = @transform_1, window_bounds = array<i64: 4, 16, 32>}, {pipeline_mode = #tpu.pipeline_mode<synchronous>, transform_indices = @transform_2, window_bounds = array<i64: 16, 1>}, {transform_indices = @transform_3, window_bounds = array<i64: 1, 2, 16, 128>}]} {
    %c0 = arith.constant 0 : index
    %c0_0 = arith.constant 0 : index
    %c0_1 = arith.constant 0 : index
    %c0_2 = arith.constant 0 : index
    %0 = vector.load %arg2[%c0, %c0_0, %c0_1, %c0_2] : memref<1x1x32x130xf32, #tpu.memory_space<vmem>>, vector<1x1x32x130xf32>
    %1 = vector.shape_cast %0 : vector<1x1x32x130xf32> to vector<32x130xf32>
    %2 = math.tanh %1 : vector<32x130xf32>
    %3 = arith.truncf %2 : vector<32x130xf32> to vector<32x130xbf16>
    %c0_3 = arith.constant 0 : index
    %c0_4 = arith.constant 0 : index
    %c0_5 = arith.constant 0 : index
    %4 = vector.load %arg3[%c0_3, %c0_4, %c0_5] : memref<4x16x32xbf16, #tpu.memory_space<vmem>>, vector<1x16x32xbf16>
    %5 = vector.shape_cast %4 : vector<1x16x32xbf16> to vector<16x32xbf16>
    %6 = vector.extract_strided_slice %3 {offsets = [0, 0], sizes = [32, 128], strides = [1, 1]} : vector<32x130xbf16> to vector<32x128xbf16>
    %cst = arith.constant dense<0.000000e+00> : vector<16x128xf32>
    %7 = tpu.matmul %5, %6, %cst {dimension_numbers = #tpu.dot_dimension_numbers<[1], [0], [0], [1], [0, 0, 1, 1], [], []>} : vector<16x32xbf16>, vector<32x128xbf16>, vector<16x128xf32> -> vector<16x128xf32>
    %c1 = arith.constant 1 : index
    %c0_6 = arith.constant 0 : index
    %c0_7 = arith.constant 0 : index
    %8 = vector.load %arg3[%c1, %c0_6, %c0_7] : memref<4x16x32xbf16, #tpu.memory_space<vmem>>, vector<1x16x32xbf16>
    %9 = vector.shape_cast %8 : vector<1x16x32xbf16> to vector<16x32xbf16>
    %10 = vector.extract_strided_slice %3 {offsets = [0, 1], sizes = [32, 128], strides = [1, 1]} : vector<32x130xbf16> to vector<32x128xbf16>
    %cst_8 = arith.constant dense<0.000000e+00> : vector<16x128xf32>
    %11 = tpu.matmul %9, %10, %cst_8 {dimension_numbers = #tpu.dot_dimension_numbers<[1], [0], [0], [1], [0, 0, 1, 1], [], []>} : vector<16x32xbf16>, vector<32x128xbf16>, vector<16x128xf32> -> vector<16x128xf32>
    %12 = arith.addf %7, %11 : vector<16x128xf32>
    %c0_9 = arith.constant 0 : index
    %c0_10 = arith.constant 0 : index
    %13 = vector.load %arg4[%c0_9, %c0_10] : memref<16x1xf32, #tpu.memory_space<vmem>>, vector<16x1xf32>
    %14 = vector.broadcast %13 : vector<16x1xf32> to vector<16x128xf32>
    %15 = arith.addf %12, %14 : vector<16x128xf32>
    %c0_11 = arith.constant 0 : index
    %c0_12 = arith.constant 0 : index
    %c0_13 = arith.constant 0 : index
    %c0_14 = arith.constant 0 : index
    %16 = vector.load %arg5[%c0_11, %c0_12, %c0_13, %c0_14] : memref<1x2x16x128xf32, #tpu.memory_space<vmem>>, vector<1x1x16x128xf32>
    %17 = vector.shape_cast %16 : vector<1x1x16x128xf32> to vector<16x128xf32>
    %18 = vector.shape_cast %15 : vector<16x128xf32> to vector<1x1x16x128xf32>
    tpu.vector_store %arg5[%c0_11, %c0_12, %c0_13, %c0_14], %18 {strides = array<i32>} : memref<1x2x16x128xf32, #tpu.memory_space<vmem>>, vector<1x1x16x128xf32>,
    %c2 = arith.constant 2 : index
    %c0_15 = arith.constant 0 : index
    %c0_16 = arith.constant 0 : index
    %19 = vector.load %arg3[%c2, %c0_15, %c0_16] : memref<4x16x32xbf16, #tpu.memory_space<vmem>>, vector<1x16x32xbf16>
    %20 = vector.shape_cast %19 : vector<1x16x32xbf16> to vector<16x32xbf16>
    %21 = vector.extract_strided_slice %3 {offsets = [0, 1], sizes = [32, 128], strides = [1, 1]} : vector<32x130xbf16> to vector<32x128xbf16>
    %cst_17 = arith.constant dense<0.000000e+00> : vector<16x128xf32>
    %22 = tpu.matmul %20, %21, %cst_17 {dimension_numbers = #tpu.dot_dimension_numbers<[1], [0], [0], [1], [0, 0, 1, 1], [], []>} : vector<16x32xbf16>, vector<32x128xbf16>, vector<16x128xf32> -> vector<16x128xf32>
    %c3 = arith.constant 3 : index
    %c0_18 = arith.constant 0 : index
    %c0_19 = arith.constant 0 : index
    %23 = vector.load %arg3[%c3, %c0_18, %c0_19] : memref<4x16x32xbf16, #tpu.memory_space<vmem>>, vector<1x16x32xbf16>
    %24 = vector.shape_cast %23 : vector<1x16x32xbf16> to vector<16x32xbf16>
    %25 = vector.extract_strided_slice %3 {offsets = [0, 2], sizes = [32, 128], strides = [1, 1]} : vector<32x130xbf16> to vector<32x128xbf16>
    %cst_20 = arith.constant dense<0.000000e+00> : vector<16x128xf32>
    %26 = tpu.matmul %24, %25, %cst_20 {dimension_numbers = #tpu.dot_dimension_numbers<[1], [0], [0], [1], [0, 0, 1, 1], [], []>} : vector<16x32xbf16>, vector<32x128xbf16>, vector<16x128xf32> -> vector<16x128xf32>
    %27 = arith.addf %22, %26 : vector<16x128xf32>
    %c0_21 = arith.constant 0 : index
    %c0_22 = arith.constant 0 : index
    %28 = vector.load %arg4[%c0_21, %c0_22] : memref<16x1xf32, #tpu.memory_space<vmem>>, vector<16x1xf32>
    %29 = vector.broadcast %28 : vector<16x1xf32> to vector<16x128xf32>
    %30 = arith.addf %27, %29 : vector<16x128xf32>
    %c0_23 = arith.constant 0 : index
    %c1_24 = arith.constant 1 : index
    %c0_25 = arith.constant 0 : index
    %c0_26 = arith.constant 0 : index
    %31 = vector.load %arg5[%c0_23, %c1_24, %c0_25, %c0_26] : memref<1x2x16x128xf32, #tpu.memory_space<vmem>>, vector<1x1x16x128xf32>
    %32 = vector.shape_cast %31 : vector<1x1x16x128xf32> to vector<16x128xf32>
    %33 = vector.shape_cast %30 : vector<16x128xf32> to vector<1x1x16x128xf32>
    tpu.vector_store %arg5[%c0_23, %c1_24, %c0_25, %c0_26], %33 {strides = array<i32>} : memref<1x2x16x128xf32, #tpu.memory_space<vmem>>, vector<1x1x16x128xf32>,
    return
  }
  func.func @transform_0(%arg0: i32, %arg1: i32) -> (i32, i32, i32, i32) {
    %c0_i32 = arith.constant 0 : i32
    %c0_i32_0 = arith.constant 0 : i32
    %c0_i32_1 = arith.constant 0 : i32
    return %arg0, %arg1, %c0_i32, %c0_i32_0 : i32, i32, i32, i32
  }
  func.func @transform_1(%arg0: i32, %arg1: i32) -> (i32, i32, i32) {
    %c0_i32 = arith.constant 0 : i32
    %c0_i32_0 = arith.constant 0 : i32
    %c0_i32_1 = arith.constant 0 : i32
    %c0_i32_2 = arith.constant 0 : i32
    return %c0_i32, %c0_i32_0, %c0_i32_1 : i32, i32, i32
  }
  func.func @transform_2(%arg0: i32, %arg1: i32) -> (i32, i32) {
    %c0_i32 = arith.constant 0 : i32
    %c0_i32_0 = arith.constant 0 : i32
    %c0_i32_1 = arith.constant 0 : i32
    return %c0_i32, %c0_i32_0 : i32, i32
  }
  func.func @transform_3(%arg0: i32, %arg1: i32) -> (i32, i32, i32, i32) {
    %c0_i32 = arith.constant 0 : i32
    %c0_i32_0 = arith.constant 0 : i32
    %c0_i32_1 = arith.constant 0 : i32
    return %arg0, %c0_i32, %c0_i32_0, %arg1 : i32, i32, i32, i32
  }
}

module attributes {stable_mosaic.version = 11 : i64} {
  func.func @_convT_kernel(%arg0: i32, %arg1: i32, %arg2: memref<1x1x16x130xf32, #tpu.memory_space<vmem>>, %arg3: memref<4x8x16xbf16, #tpu.memory_space<vmem>>, %arg4: memref<8x1xf32, #tpu.memory_space<vmem>>, %arg5: memref<1x2x8x128xf32, #tpu.memory_space<vmem>>) attributes {dimension_semantics = [#tpu.dimension_semantics<parallel>, #tpu.dimension_semantics<parallel>], iteration_bounds = array<i64: 2, 2>, scalar_prefetch = 0 : i64, scratch_operands = 0 : i64, tpu.core_type = #tpu.core_type<tc>, window_params = [{transform_indices = @transform_0, window_bounds = array<i64: 1, 1, 16, 130>}, {pipeline_mode = #tpu.pipeline_mode<synchronous>, transform_indices = @transform_1, window_bounds = array<i64: 4, 8, 16>}, {pipeline_mode = #tpu.pipeline_mode<synchronous>, transform_indices = @transform_2, window_bounds = array<i64: 8, 1>}, {transform_indices = @transform_3, window_bounds = array<i64: 1, 2, 8, 128>}]} {
    %c0 = arith.constant 0 : index
    %c0_0 = arith.constant 0 : index
    %c0_1 = arith.constant 0 : index
    %c0_2 = arith.constant 0 : index
    %0 = vector.load %arg2[%c0, %c0_0, %c0_1, %c0_2] : memref<1x1x16x130xf32, #tpu.memory_space<vmem>>, vector<1x1x16x130xf32>
    %1 = vector.shape_cast %0 : vector<1x1x16x130xf32> to vector<16x130xf32>
    %2 = math.tanh %1 : vector<16x130xf32>
    %3 = arith.truncf %2 : vector<16x130xf32> to vector<16x130xbf16>
    %c0_3 = arith.constant 0 : index
    %c0_4 = arith.constant 0 : index
    %c0_5 = arith.constant 0 : index
    %4 = vector.load %arg3[%c0_3, %c0_4, %c0_5] : memref<4x8x16xbf16, #tpu.memory_space<vmem>>, vector<1x8x16xbf16>
    %5 = vector.shape_cast %4 : vector<1x8x16xbf16> to vector<8x16xbf16>
    %6 = vector.extract_strided_slice %3 {offsets = [0, 0], sizes = [16, 128], strides = [1, 1]} : vector<16x130xbf16> to vector<16x128xbf16>
    %cst = arith.constant dense<0.000000e+00> : vector<8x128xf32>
    %7 = tpu.matmul %5, %6, %cst {dimension_numbers = #tpu.dot_dimension_numbers<[1], [0], [0], [1], [0, 0, 1, 1], [], []>} : vector<8x16xbf16>, vector<16x128xbf16>, vector<8x128xf32> -> vector<8x128xf32>
    %c1 = arith.constant 1 : index
    %c0_6 = arith.constant 0 : index
    %c0_7 = arith.constant 0 : index
    %8 = vector.load %arg3[%c1, %c0_6, %c0_7] : memref<4x8x16xbf16, #tpu.memory_space<vmem>>, vector<1x8x16xbf16>
    %9 = vector.shape_cast %8 : vector<1x8x16xbf16> to vector<8x16xbf16>
    %10 = vector.extract_strided_slice %3 {offsets = [0, 1], sizes = [16, 128], strides = [1, 1]} : vector<16x130xbf16> to vector<16x128xbf16>
    %cst_8 = arith.constant dense<0.000000e+00> : vector<8x128xf32>
    %11 = tpu.matmul %9, %10, %cst_8 {dimension_numbers = #tpu.dot_dimension_numbers<[1], [0], [0], [1], [0, 0, 1, 1], [], []>} : vector<8x16xbf16>, vector<16x128xbf16>, vector<8x128xf32> -> vector<8x128xf32>
    %12 = arith.addf %7, %11 : vector<8x128xf32>
    %c0_9 = arith.constant 0 : index
    %c0_10 = arith.constant 0 : index
    %13 = vector.load %arg4[%c0_9, %c0_10] : memref<8x1xf32, #tpu.memory_space<vmem>>, vector<8x1xf32>
    %14 = vector.broadcast %13 : vector<8x1xf32> to vector<8x128xf32>
    %15 = arith.addf %12, %14 : vector<8x128xf32>
    %c0_11 = arith.constant 0 : index
    %c0_12 = arith.constant 0 : index
    %c0_13 = arith.constant 0 : index
    %c0_14 = arith.constant 0 : index
    %16 = vector.load %arg5[%c0_11, %c0_12, %c0_13, %c0_14] : memref<1x2x8x128xf32, #tpu.memory_space<vmem>>, vector<1x1x8x128xf32>
    %17 = vector.shape_cast %16 : vector<1x1x8x128xf32> to vector<8x128xf32>
    %18 = vector.shape_cast %15 : vector<8x128xf32> to vector<1x1x8x128xf32>
    tpu.vector_store %arg5[%c0_11, %c0_12, %c0_13, %c0_14], %18 {strides = array<i32>} : memref<1x2x8x128xf32, #tpu.memory_space<vmem>>, vector<1x1x8x128xf32>,
    %c2 = arith.constant 2 : index
    %c0_15 = arith.constant 0 : index
    %c0_16 = arith.constant 0 : index
    %19 = vector.load %arg3[%c2, %c0_15, %c0_16] : memref<4x8x16xbf16, #tpu.memory_space<vmem>>, vector<1x8x16xbf16>
    %20 = vector.shape_cast %19 : vector<1x8x16xbf16> to vector<8x16xbf16>
    %21 = vector.extract_strided_slice %3 {offsets = [0, 1], sizes = [16, 128], strides = [1, 1]} : vector<16x130xbf16> to vector<16x128xbf16>
    %cst_17 = arith.constant dense<0.000000e+00> : vector<8x128xf32>
    %22 = tpu.matmul %20, %21, %cst_17 {dimension_numbers = #tpu.dot_dimension_numbers<[1], [0], [0], [1], [0, 0, 1, 1], [], []>} : vector<8x16xbf16>, vector<16x128xbf16>, vector<8x128xf32> -> vector<8x128xf32>
    %c3 = arith.constant 3 : index
    %c0_18 = arith.constant 0 : index
    %c0_19 = arith.constant 0 : index
    %23 = vector.load %arg3[%c3, %c0_18, %c0_19] : memref<4x8x16xbf16, #tpu.memory_space<vmem>>, vector<1x8x16xbf16>
    %24 = vector.shape_cast %23 : vector<1x8x16xbf16> to vector<8x16xbf16>
    %25 = vector.extract_strided_slice %3 {offsets = [0, 2], sizes = [16, 128], strides = [1, 1]} : vector<16x130xbf16> to vector<16x128xbf16>
    %cst_20 = arith.constant dense<0.000000e+00> : vector<8x128xf32>
    %26 = tpu.matmul %24, %25, %cst_20 {dimension_numbers = #tpu.dot_dimension_numbers<[1], [0], [0], [1], [0, 0, 1, 1], [], []>} : vector<8x16xbf16>, vector<16x128xbf16>, vector<8x128xf32> -> vector<8x128xf32>
    %27 = arith.addf %22, %26 : vector<8x128xf32>
    %c0_21 = arith.constant 0 : index
    %c0_22 = arith.constant 0 : index
    %28 = vector.load %arg4[%c0_21, %c0_22] : memref<8x1xf32, #tpu.memory_space<vmem>>, vector<8x1xf32>
    %29 = vector.broadcast %28 : vector<8x1xf32> to vector<8x128xf32>
    %30 = arith.addf %27, %29 : vector<8x128xf32>
    %c0_23 = arith.constant 0 : index
    %c1_24 = arith.constant 1 : index
    %c0_25 = arith.constant 0 : index
    %c0_26 = arith.constant 0 : index
    %31 = vector.load %arg5[%c0_23, %c1_24, %c0_25, %c0_26] : memref<1x2x8x128xf32, #tpu.memory_space<vmem>>, vector<1x1x8x128xf32>
    %32 = vector.shape_cast %31 : vector<1x1x8x128xf32> to vector<8x128xf32>
    %33 = vector.shape_cast %30 : vector<8x128xf32> to vector<1x1x8x128xf32>
    tpu.vector_store %arg5[%c0_23, %c1_24, %c0_25, %c0_26], %33 {strides = array<i32>} : memref<1x2x8x128xf32, #tpu.memory_space<vmem>>, vector<1x1x8x128xf32>,
    return
  }
  func.func @transform_0(%arg0: i32, %arg1: i32) -> (i32, i32, i32, i32) {
    %c0_i32 = arith.constant 0 : i32
    %c0_i32_0 = arith.constant 0 : i32
    %c0_i32_1 = arith.constant 0 : i32
    return %arg0, %arg1, %c0_i32, %c0_i32_0 : i32, i32, i32, i32
  }
  func.func @transform_1(%arg0: i32, %arg1: i32) -> (i32, i32, i32) {
    %c0_i32 = arith.constant 0 : i32
    %c0_i32_0 = arith.constant 0 : i32
    %c0_i32_1 = arith.constant 0 : i32
    %c0_i32_2 = arith.constant 0 : i32
    return %c0_i32, %c0_i32_0, %c0_i32_1 : i32, i32, i32
  }
  func.func @transform_2(%arg0: i32, %arg1: i32) -> (i32, i32) {
    %c0_i32 = arith.constant 0 : i32
    %c0_i32_0 = arith.constant 0 : i32
    %c0_i32_1 = arith.constant 0 : i32
    return %c0_i32, %c0_i32_0 : i32, i32
  }
  func.func @transform_3(%arg0: i32, %arg1: i32) -> (i32, i32, i32, i32) {
    %c0_i32 = arith.constant 0 : i32
    %c0_i32_0 = arith.constant 0 : i32
    %c0_i32_1 = arith.constant 0 : i32
    return %arg0, %c0_i32, %c0_i32_0, %arg1 : i32, i32, i32, i32
  }
}

module attributes {stable_mosaic.version = 11 : i64} {
  func.func @_resblock_kernel(%arg0: i32, %arg1: i32, %arg2: memref<1x1x8x134xf32, #tpu.memory_space<vmem>>, %arg3: memref<3x8x8xbf16, #tpu.memory_space<vmem>>, %arg4: memref<8x1xf32, #tpu.memory_space<vmem>>, %arg5: memref<8x8xbf16, #tpu.memory_space<vmem>>, %arg6: memref<8x1xf32, #tpu.memory_space<vmem>>, %arg7: memref<8x8xbf16, #tpu.memory_space<vmem>>, %arg8: memref<8x1xf32, #tpu.memory_space<vmem>>, %arg9: memref<1x8x128xf32, #tpu.memory_space<vmem>>) attributes {dimension_semantics = [#tpu.dimension_semantics<parallel>, #tpu.dimension_semantics<parallel>], iteration_bounds = array<i64: 2, 4>, scalar_prefetch = 0 : i64, scratch_operands = 0 : i64, tpu.core_type = #tpu.core_type<tc>, window_params = [{transform_indices = @transform_0, window_bounds = array<i64: 1, 1, 8, 134>}, {pipeline_mode = #tpu.pipeline_mode<synchronous>, transform_indices = @transform_1, window_bounds = array<i64: 3, 8, 8>}, {pipeline_mode = #tpu.pipeline_mode<synchronous>, transform_indices = @transform_2, window_bounds = array<i64: 8, 1>}, {pipeline_mode = #tpu.pipeline_mode<synchronous>, transform_indices = @transform_3, window_bounds = array<i64: 8, 8>}, {pipeline_mode = #tpu.pipeline_mode<synchronous>, transform_indices = @transform_4, window_bounds = array<i64: 8, 1>}, {pipeline_mode = #tpu.pipeline_mode<synchronous>, transform_indices = @transform_5, window_bounds = array<i64: 8, 8>}, {pipeline_mode = #tpu.pipeline_mode<synchronous>, transform_indices = @transform_6, window_bounds = array<i64: 8, 1>}, {transform_indices = @transform_7, window_bounds = array<i64: 1, 8, 128>}]} {
    %c0 = arith.constant 0 : index
    %c0_0 = arith.constant 0 : index
    %c0_1 = arith.constant 0 : index
    %c0_2 = arith.constant 0 : index
    %0 = vector.load %arg2[%c0, %c0_0, %c0_1, %c0_2] : memref<1x1x8x134xf32, #tpu.memory_space<vmem>>, vector<1x1x8x134xf32>
    %1 = vector.shape_cast %0 : vector<1x1x8x134xf32> to vector<8x134xf32>
    %2 = vector.extract_strided_slice %1 {offsets = [0, 3], sizes = [8, 128], strides = [1, 1]} : vector<8x134xf32> to vector<8x128xf32>
    %3 = arith.truncf %2 : vector<8x128xf32> to vector<8x128xbf16>
    %c0_3 = arith.constant 0 : index
    %c0_4 = arith.constant 0 : index
    %4 = vector.load %arg7[%c0_3, %c0_4] : memref<8x8xbf16, #tpu.memory_space<vmem>>, vector<8x8xbf16>
    %cst = arith.constant dense<0.000000e+00> : vector<8x128xf32>
    %5 = tpu.matmul %4, %3, %cst {dimension_numbers = #tpu.dot_dimension_numbers<[1], [0], [0], [1], [0, 0, 1, 1], [], []>} : vector<8x8xbf16>, vector<8x128xbf16>, vector<8x128xf32> -> vector<8x128xf32>
    %c0_5 = arith.constant 0 : index
    %c0_6 = arith.constant 0 : index
    %6 = vector.load %arg8[%c0_5, %c0_6] : memref<8x1xf32, #tpu.memory_space<vmem>>, vector<8x1xf32>
    %7 = vector.broadcast %6 : vector<8x1xf32> to vector<8x128xf32>
    %8 = arith.addf %5, %7 : vector<8x128xf32>
    %9 = math.tanh %1 : vector<8x134xf32>
    %10 = arith.truncf %9 : vector<8x134xf32> to vector<8x134xbf16>
    %c0_7 = arith.constant 0 : index
    %c0_8 = arith.constant 0 : index
    %c0_9 = arith.constant 0 : index
    %11 = vector.load %arg3[%c0_7, %c0_8, %c0_9] : memref<3x8x8xbf16, #tpu.memory_space<vmem>>, vector<1x8x8xbf16>
    %12 = vector.shape_cast %11 : vector<1x8x8xbf16> to vector<8x8xbf16>
    %13 = vector.extract_strided_slice %10 {offsets = [0, 0], sizes = [8, 128], strides = [1, 1]} : vector<8x134xbf16> to vector<8x128xbf16>
    %cst_10 = arith.constant dense<0.000000e+00> : vector<8x128xf32>
    %14 = tpu.matmul %12, %13, %cst_10 {dimension_numbers = #tpu.dot_dimension_numbers<[1], [0], [0], [1], [0, 0, 1, 1], [], []>} : vector<8x8xbf16>, vector<8x128xbf16>, vector<8x128xf32> -> vector<8x128xf32>
    %c1 = arith.constant 1 : index
    %c0_11 = arith.constant 0 : index
    %c0_12 = arith.constant 0 : index
    %15 = vector.load %arg3[%c1, %c0_11, %c0_12] : memref<3x8x8xbf16, #tpu.memory_space<vmem>>, vector<1x8x8xbf16>
    %16 = vector.shape_cast %15 : vector<1x8x8xbf16> to vector<8x8xbf16>
    %17 = vector.extract_strided_slice %10 {offsets = [0, 3], sizes = [8, 128], strides = [1, 1]} : vector<8x134xbf16> to vector<8x128xbf16>
    %cst_13 = arith.constant dense<0.000000e+00> : vector<8x128xf32>
    %18 = tpu.matmul %16, %17, %cst_13 {dimension_numbers = #tpu.dot_dimension_numbers<[1], [0], [0], [1], [0, 0, 1, 1], [], []>} : vector<8x8xbf16>, vector<8x128xbf16>, vector<8x128xf32> -> vector<8x128xf32>
    %19 = arith.addf %14, %18 : vector<8x128xf32>
    %c2 = arith.constant 2 : index
    %c0_14 = arith.constant 0 : index
    %c0_15 = arith.constant 0 : index
    %20 = vector.load %arg3[%c2, %c0_14, %c0_15] : memref<3x8x8xbf16, #tpu.memory_space<vmem>>, vector<1x8x8xbf16>
    %21 = vector.shape_cast %20 : vector<1x8x8xbf16> to vector<8x8xbf16>
    %22 = vector.extract_strided_slice %10 {offsets = [0, 6], sizes = [8, 128], strides = [1, 1]} : vector<8x134xbf16> to vector<8x128xbf16>
    %cst_16 = arith.constant dense<0.000000e+00> : vector<8x128xf32>
    %23 = tpu.matmul %21, %22, %cst_16 {dimension_numbers = #tpu.dot_dimension_numbers<[1], [0], [0], [1], [0, 0, 1, 1], [], []>} : vector<8x8xbf16>, vector<8x128xbf16>, vector<8x128xf32> -> vector<8x128xf32>
    %24 = arith.addf %19, %23 : vector<8x128xf32>
    %c0_17 = arith.constant 0 : index
    %c0_18 = arith.constant 0 : index
    %25 = vector.load %arg4[%c0_17, %c0_18] : memref<8x1xf32, #tpu.memory_space<vmem>>, vector<8x1xf32>
    %26 = vector.broadcast %25 : vector<8x1xf32> to vector<8x128xf32>
    %27 = arith.addf %24, %26 : vector<8x128xf32>
    %28 = math.tanh %27 : vector<8x128xf32>
    %29 = arith.truncf %28 : vector<8x128xf32> to vector<8x128xbf16>
    %c0_19 = arith.constant 0 : index
    %c0_20 = arith.constant 0 : index
    %30 = vector.load %arg5[%c0_19, %c0_20] : memref<8x8xbf16, #tpu.memory_space<vmem>>, vector<8x8xbf16>
    %cst_21 = arith.constant dense<0.000000e+00> : vector<8x128xf32>
    %31 = tpu.matmul %30, %29, %cst_21 {dimension_numbers = #tpu.dot_dimension_numbers<[1], [0], [0], [1], [0, 0, 1, 1], [], []>} : vector<8x8xbf16>, vector<8x128xbf16>, vector<8x128xf32> -> vector<8x128xf32>
    %c0_22 = arith.constant 0 : index
    %c0_23 = arith.constant 0 : index
    %32 = vector.load %arg6[%c0_22, %c0_23] : memref<8x1xf32, #tpu.memory_space<vmem>>, vector<8x1xf32>
    %33 = vector.broadcast %32 : vector<8x1xf32> to vector<8x128xf32>
    %34 = arith.addf %31, %33 : vector<8x128xf32>
    %35 = arith.addf %8, %34 : vector<8x128xf32>
    %c0_24 = arith.constant 0 : index
    %c0_25 = arith.constant 0 : index
    %c0_26 = arith.constant 0 : index
    %36 = vector.load %arg9[%c0_24, %c0_25, %c0_26] : memref<1x8x128xf32, #tpu.memory_space<vmem>>, vector<1x8x128xf32>
    %37 = vector.shape_cast %36 : vector<1x8x128xf32> to vector<8x128xf32>
    %38 = vector.shape_cast %35 : vector<8x128xf32> to vector<1x8x128xf32>
    tpu.vector_store %arg9[%c0_24, %c0_25, %c0_26], %38 {strides = array<i32>} : memref<1x8x128xf32, #tpu.memory_space<vmem>>, vector<1x8x128xf32>,
    return
  }
  func.func @transform_0(%arg0: i32, %arg1: i32) -> (i32, i32, i32, i32) {
    %c0_i32 = arith.constant 0 : i32
    %c0_i32_0 = arith.constant 0 : i32
    %c0_i32_1 = arith.constant 0 : i32
    return %arg0, %arg1, %c0_i32, %c0_i32_0 : i32, i32, i32, i32
  }
  func.func @transform_1(%arg0: i32, %arg1: i32) -> (i32, i32, i32) {
    %c0_i32 = arith.constant 0 : i32
    %c0_i32_0 = arith.constant 0 : i32
    %c0_i32_1 = arith.constant 0 : i32
    %c0_i32_2 = arith.constant 0 : i32
    return %c0_i32, %c0_i32_0, %c0_i32_1 : i32, i32, i32
  }
  func.func @transform_2(%arg0: i32, %arg1: i32) -> (i32, i32) {
    %c0_i32 = arith.constant 0 : i32
    %c0_i32_0 = arith.constant 0 : i32
    %c0_i32_1 = arith.constant 0 : i32
    return %c0_i32, %c0_i32_0 : i32, i32
  }
  func.func @transform_3(%arg0: i32, %arg1: i32) -> (i32, i32) {
    %c0_i32 = arith.constant 0 : i32
    %c0_i32_0 = arith.constant 0 : i32
    %c0_i32_1 = arith.constant 0 : i32
    return %c0_i32, %c0_i32_0 : i32, i32
  }
  func.func @transform_4(%arg0: i32, %arg1: i32) -> (i32, i32) {
    %c0_i32 = arith.constant 0 : i32
    %c0_i32_0 = arith.constant 0 : i32
    %c0_i32_1 = arith.constant 0 : i32
    return %c0_i32, %c0_i32_0 : i32, i32
  }
  func.func @transform_5(%arg0: i32, %arg1: i32) -> (i32, i32) {
    %c0_i32 = arith.constant 0 : i32
    %c0_i32_0 = arith.constant 0 : i32
    %c0_i32_1 = arith.constant 0 : i32
    return %c0_i32, %c0_i32_0 : i32, i32
  }
  func.func @transform_6(%arg0: i32, %arg1: i32) -> (i32, i32) {
    %c0_i32 = arith.constant 0 : i32
    %c0_i32_0 = arith.constant 0 : i32
    %c0_i32_1 = arith.constant 0 : i32
    return %c0_i32, %c0_i32_0 : i32, i32
  }
  func.func @transform_7(%arg0: i32, %arg1: i32) -> (i32, i32, i32) {
    %c0_i32 = arith.constant 0 : i32
    %c0_i32_0 = arith.constant 0 : i32
    return %arg0, %c0_i32, %arg1 : i32, i32, i32
  }
}

module attributes {stable_mosaic.version = 11 : i64} {
  func.func @_conv_kernel(%arg0: i32, %arg1: i32, %arg2: memref<1x1x8x134xf32, #tpu.memory_space<vmem>>, %arg3: memref<7x1x8xbf16, #tpu.memory_space<vmem>>, %arg4: memref<1x1xf32, #tpu.memory_space<vmem>>, %arg5: memref<1x1x128xf32, #tpu.memory_space<vmem>>) attributes {dimension_semantics = [#tpu.dimension_semantics<parallel>, #tpu.dimension_semantics<parallel>], iteration_bounds = array<i64: 2, 4>, scalar_prefetch = 0 : i64, scratch_operands = 0 : i64, tpu.core_type = #tpu.core_type<tc>, window_params = [{transform_indices = @transform_0, window_bounds = array<i64: 1, 1, 8, 134>}, {pipeline_mode = #tpu.pipeline_mode<synchronous>, transform_indices = @transform_1, window_bounds = array<i64: 7, 1, 8>}, {pipeline_mode = #tpu.pipeline_mode<synchronous>, transform_indices = @transform_2, window_bounds = array<i64: 1, 1>}, {transform_indices = @transform_3, window_bounds = array<i64: 1, 1, 128>}]} {
    %c0 = arith.constant 0 : index
    %c0_0 = arith.constant 0 : index
    %c0_1 = arith.constant 0 : index
    %c0_2 = arith.constant 0 : index
    %0 = vector.load %arg2[%c0, %c0_0, %c0_1, %c0_2] : memref<1x1x8x134xf32, #tpu.memory_space<vmem>>, vector<1x1x8x134xf32>
    %1 = vector.shape_cast %0 : vector<1x1x8x134xf32> to vector<8x134xf32>
    %2 = math.tanh %1 : vector<8x134xf32>
    %3 = arith.truncf %2 : vector<8x134xf32> to vector<8x134xbf16>
    %c0_3 = arith.constant 0 : index
    %c0_4 = arith.constant 0 : index
    %c0_5 = arith.constant 0 : index
    %4 = vector.load %arg3[%c0_3, %c0_4, %c0_5] : memref<7x1x8xbf16, #tpu.memory_space<vmem>>, vector<1x1x8xbf16>
    %5 = vector.shape_cast %4 : vector<1x1x8xbf16> to vector<1x8xbf16>
    %6 = vector.extract_strided_slice %3 {offsets = [0, 0], sizes = [8, 128], strides = [1, 1]} : vector<8x134xbf16> to vector<8x128xbf16>
    %cst = arith.constant dense<0.000000e+00> : vector<1x128xf32>
    %7 = tpu.matmul %5, %6, %cst {dimension_numbers = #tpu.dot_dimension_numbers<[1], [0], [0], [1], [0, 0, 1, 1], [], []>} : vector<1x8xbf16>, vector<8x128xbf16>, vector<1x128xf32> -> vector<1x128xf32>
    %c1 = arith.constant 1 : index
    %c0_6 = arith.constant 0 : index
    %c0_7 = arith.constant 0 : index
    %8 = vector.load %arg3[%c1, %c0_6, %c0_7] : memref<7x1x8xbf16, #tpu.memory_space<vmem>>, vector<1x1x8xbf16>
    %9 = vector.shape_cast %8 : vector<1x1x8xbf16> to vector<1x8xbf16>
    %10 = vector.extract_strided_slice %3 {offsets = [0, 1], sizes = [8, 128], strides = [1, 1]} : vector<8x134xbf16> to vector<8x128xbf16>
    %cst_8 = arith.constant dense<0.000000e+00> : vector<1x128xf32>
    %11 = tpu.matmul %9, %10, %cst_8 {dimension_numbers = #tpu.dot_dimension_numbers<[1], [0], [0], [1], [0, 0, 1, 1], [], []>} : vector<1x8xbf16>, vector<8x128xbf16>, vector<1x128xf32> -> vector<1x128xf32>
    %12 = arith.addf %7, %11 : vector<1x128xf32>
    %c2 = arith.constant 2 : index
    %c0_9 = arith.constant 0 : index
    %c0_10 = arith.constant 0 : index
    %13 = vector.load %arg3[%c2, %c0_9, %c0_10] : memref<7x1x8xbf16, #tpu.memory_space<vmem>>, vector<1x1x8xbf16>
    %14 = vector.shape_cast %13 : vector<1x1x8xbf16> to vector<1x8xbf16>
    %15 = vector.extract_strided_slice %3 {offsets = [0, 2], sizes = [8, 128], strides = [1, 1]} : vector<8x134xbf16> to vector<8x128xbf16>
    %cst_11 = arith.constant dense<0.000000e+00> : vector<1x128xf32>
    %16 = tpu.matmul %14, %15, %cst_11 {dimension_numbers = #tpu.dot_dimension_numbers<[1], [0], [0], [1], [0, 0, 1, 1], [], []>} : vector<1x8xbf16>, vector<8x128xbf16>, vector<1x128xf32> -> vector<1x128xf32>
    %17 = arith.addf %12, %16 : vector<1x128xf32>
    %c3 = arith.constant 3 : index
    %c0_12 = arith.constant 0 : index
    %c0_13 = arith.constant 0 : index
    %18 = vector.load %arg3[%c3, %c0_12, %c0_13] : memref<7x1x8xbf16, #tpu.memory_space<vmem>>, vector<1x1x8xbf16>
    %19 = vector.shape_cast %18 : vector<1x1x8xbf16> to vector<1x8xbf16>
    %20 = vector.extract_strided_slice %3 {offsets = [0, 3], sizes = [8, 128], strides = [1, 1]} : vector<8x134xbf16> to vector<8x128xbf16>
    %cst_14 = arith.constant dense<0.000000e+00> : vector<1x128xf32>
    %21 = tpu.matmul %19, %20, %cst_14 {dimension_numbers = #tpu.dot_dimension_numbers<[1], [0], [0], [1], [0, 0, 1, 1], [], []>} : vector<1x8xbf16>, vector<8x128xbf16>, vector<1x128xf32> -> vector<1x128xf32>
    %22 = arith.addf %17, %21 : vector<1x128xf32>
    %c4 = arith.constant 4 : index
    %c0_15 = arith.constant 0 : index
    %c0_16 = arith.constant 0 : index
    %23 = vector.load %arg3[%c4, %c0_15, %c0_16] : memref<7x1x8xbf16, #tpu.memory_space<vmem>>, vector<1x1x8xbf16>
    %24 = vector.shape_cast %23 : vector<1x1x8xbf16> to vector<1x8xbf16>
    %25 = vector.extract_strided_slice %3 {offsets = [0, 4], sizes = [8, 128], strides = [1, 1]} : vector<8x134xbf16> to vector<8x128xbf16>
    %cst_17 = arith.constant dense<0.000000e+00> : vector<1x128xf32>
    %26 = tpu.matmul %24, %25, %cst_17 {dimension_numbers = #tpu.dot_dimension_numbers<[1], [0], [0], [1], [0, 0, 1, 1], [], []>} : vector<1x8xbf16>, vector<8x128xbf16>, vector<1x128xf32> -> vector<1x128xf32>
    %27 = arith.addf %22, %26 : vector<1x128xf32>
    %c5 = arith.constant 5 : index
    %c0_18 = arith.constant 0 : index
    %c0_19 = arith.constant 0 : index
    %28 = vector.load %arg3[%c5, %c0_18, %c0_19] : memref<7x1x8xbf16, #tpu.memory_space<vmem>>, vector<1x1x8xbf16>
    %29 = vector.shape_cast %28 : vector<1x1x8xbf16> to vector<1x8xbf16>
    %30 = vector.extract_strided_slice %3 {offsets = [0, 5], sizes = [8, 128], strides = [1, 1]} : vector<8x134xbf16> to vector<8x128xbf16>
    %cst_20 = arith.constant dense<0.000000e+00> : vector<1x128xf32>
    %31 = tpu.matmul %29, %30, %cst_20 {dimension_numbers = #tpu.dot_dimension_numbers<[1], [0], [0], [1], [0, 0, 1, 1], [], []>} : vector<1x8xbf16>, vector<8x128xbf16>, vector<1x128xf32> -> vector<1x128xf32>
    %32 = arith.addf %27, %31 : vector<1x128xf32>
    %c6 = arith.constant 6 : index
    %c0_21 = arith.constant 0 : index
    %c0_22 = arith.constant 0 : index
    %33 = vector.load %arg3[%c6, %c0_21, %c0_22] : memref<7x1x8xbf16, #tpu.memory_space<vmem>>, vector<1x1x8xbf16>
    %34 = vector.shape_cast %33 : vector<1x1x8xbf16> to vector<1x8xbf16>
    %35 = vector.extract_strided_slice %3 {offsets = [0, 6], sizes = [8, 128], strides = [1, 1]} : vector<8x134xbf16> to vector<8x128xbf16>
    %cst_23 = arith.constant dense<0.000000e+00> : vector<1x128xf32>
    %36 = tpu.matmul %34, %35, %cst_23 {dimension_numbers = #tpu.dot_dimension_numbers<[1], [0], [0], [1], [0, 0, 1, 1], [], []>} : vector<1x8xbf16>, vector<8x128xbf16>, vector<1x128xf32> -> vector<1x128xf32>
    %37 = arith.addf %32, %36 : vector<1x128xf32>
    %c0_24 = arith.constant 0 : index
    %c0_25 = arith.constant 0 : index
    %38 = vector.load %arg4[%c0_24, %c0_25] : memref<1x1xf32, #tpu.memory_space<vmem>>, vector<1x1xf32>
    %39 = vector.broadcast %38 : vector<1x1xf32> to vector<1x128xf32>
    %40 = arith.addf %37, %39 : vector<1x128xf32>
    %41 = math.tanh %40 : vector<1x128xf32>
    %c0_26 = arith.constant 0 : index
    %c0_27 = arith.constant 0 : index
    %c0_28 = arith.constant 0 : index
    %42 = vector.load %arg5[%c0_26, %c0_27, %c0_28] : memref<1x1x128xf32, #tpu.memory_space<vmem>>, vector<1x1x128xf32>
    %43 = vector.shape_cast %42 : vector<1x1x128xf32> to vector<1x128xf32>
    %44 = vector.shape_cast %41 : vector<1x128xf32> to vector<1x1x128xf32>
    tpu.vector_store %arg5[%c0_26, %c0_27, %c0_28], %44 {strides = array<i32>} : memref<1x1x128xf32, #tpu.memory_space<vmem>>, vector<1x1x128xf32>,
    return
  }
  func.func @transform_0(%arg0: i32, %arg1: i32) -> (i32, i32, i32, i32) {
    %c0_i32 = arith.constant 0 : i32
    %c0_i32_0 = arith.constant 0 : i32
    %c0_i32_1 = arith.constant 0 : i32
    return %arg0, %arg1, %c0_i32, %c0_i32_0 : i32, i32, i32, i32
  }
  func.func @transform_1(%arg0: i32, %arg1: i32) -> (i32, i32, i32) {
    %c0_i32 = arith.constant 0 : i32
    %c0_i32_0 = arith.constant 0 : i32
    %c0_i32_1 = arith.constant 0 : i32
    %c0_i32_2 = arith.constant 0 : i32
    return %c0_i32, %c0_i32_0, %c0_i32_1 : i32, i32, i32
  }
  func.func @transform_2(%arg0: i32, %arg1: i32) -> (i32, i32) {
    %c0_i32 = arith.constant 0 : i32
    %c0_i32_0 = arith.constant 0 : i32
    %c0_i32_1 = arith.constant 0 : i32
    return %c0_i32, %c0_i32_0 : i32, i32
  }
  func.func @transform_3(%arg0: i32, %arg1: i32) -> (i32, i32, i32) {
    %c0_i32 = arith.constant 0 : i32
    %c0_i32_0 = arith.constant 0 : i32
    return %arg0, %c0_i32, %arg1 : i32, i32, i32
  }
}

</mosaic_0001>

<bundles_post_ra>
// kernel: forward_pallas.14
= control target key start
LH: loop header
LB: loop body
LE: loop exit
PB: predicated region body
PF: predicated region fallthrough
CT: control target
= control target key end

     0   :  { %s569_s12 = smov 0   ;;  %s571_s13 = smov 0   ;;  %s651_s0 = inlined_call_operand.vmem [shape: f32[2,4,1,134], index: 0, kind: input, shape index: {}]   ;;  %s652_s1 = inlined_call_operand.vmem [shape: bf16[7,8,1], index: 1, kind: input, shape index: {}]   ;;  %s653_s2 = inlined_call_operand.vmem [shape: f32[8,1], index: 2, kind: input, shape index: {}]   ;;  %s654_s3 = inlined_call_operand.vmem [shape: f32[2,8,512], index: 3, kind: output, shape index: {}]  }
   0x1   :  { %s573_s14 = smov 0   ;;  %s575_s15 = smov 0  }
   0x2   :  { %s577_s16 = smov 0  }
   0x3 LB: > { %s22_s17 = sadd.s32 1, %s532_s14  ;;  %s25_s18 = sadd.s32 1, %s536_s15  ;;  %s540_s16 = sphi %s577_s16, %s13_s16   ;;  %s536_s15 = sphi %s575_s15, %s658_s15   ;;  %s532_s14 = sphi %s573_s14, %s657_s14   ;;  %s528_s13 = sphi %s571_s13, %s656_s13   ;;  %s524_s12 = sphi %s569_s12, %s655_s12  }
   0x4   : > { %p23_p0 = scmp.ge.s32.totalorder %s22_s17, 4  ;;  %p440_p1 = scmp.ge.s32.totalorder %s540_s16, 1 }
   0x5   : > { %p156_p2 = scmp.lt.s32.totalorder %s540_s16, 9 }
   0x6   : > { %s660_s17 = smov (%p23_p0, %s22_s17), 0  ;;  %s662_s18 = smov (!%p23_p0, %s25_s18), %s536_s15 }
   0x7   : > { %p157_p3 = pnand %p440_p1, %p156_p2  ;;  %p27_p4 = scmp.ge.s32.totalorder %s662_s18, 2 }
   0x8   : > { %v447_v0 = vld [vmem:[%s652_s1 + $0xc] sm:$0xff] (!%p157_p3)   ;;  %v445_v1 = vld [vmem:[%s652_s1 + $0x4] sm:$0xff] (!%p157_p3)   ;;  %v542_v2 = vmov (!%p157_p3), 0   ;;  %v450_v7 = vld [vmem:[%s652_s1 + $0x14] sm:$0xff] (!%p157_p3)   ;;  %p186_p5 = scmp.lt.s32.totalorder (!%p157_p3), %s528_s13, 1  ;;  %p188_p6 = scmp.lt.s32.totalorder (!%p157_p3), %s524_s12, 3  ;;  %v211_v13 = vlaneseq (!%p157_p3) }
   0x9   : > { %s664_s18 = smov (%p27_p4, %s662_s18), 0  ;;  %160 = sbr.rel (%p157_p3) target bundleno = 283 (0x11b), region = 32 }
   0xa   : > { %501 = vset.pattern.permute.xlu1 (!%p157_p3), %v542_v2  ;;  %500 = vset.pattern.permute.xlu0 (!%p157_p3), %v542_v2  ;;  %v264_v3 = vunpack.c.l.bf16 (!%p157_p3), %v447_v0  ;;  %v219_v4 = vunpack.c.l.bf16 (!%p157_p3), %v445_v1  ;;  %v284_v5 = vunpack.c.h.bf16 (!%p157_p3), %v447_v0  ;;  %v244_v6 = vunpack.c.h.bf16 (!%p157_p3), %v445_v1  ;;  %v203_v10 = vld [vmem:[%s652_s1] sm:$0xf] (!%p157_p3)  ;;  %s543_s8 = smov (!%p157_p3), 127   ;;  %s544_s9 = smov (!%p157_p3), 126  }
   0xb   : > { %v324_v8 = vunpack.c.h.bf16 (!%p157_p3), %v450_v7  ;;  %v304_v9 = vunpack.c.l.bf16 (!%p157_p3), %v450_v7  ;;  %v204_v11 = vunpack.c.l.bf16 (!%p157_p3), %v203_v10  ;;  %v342_v12 = vld [vmem:[%s653_s2] sm:$0xff] (!%p157_p3)  ;;  %v212_v14 = vshrl.u32 (!%p157_p3), %v211_v13, 7  ;;  %s545_s10 = smov (!%p157_p3), 125   ;;  %s546_s11 = smov (!%p157_p3), 124  }
   0xc   : > { %267 = vperm.xlu1 (!%p157_p3), %501, %v264_v3   ;;  %222 = vperm.xlu0 (!%p157_p3), %500, %v219_v4   ;;  %s547_s19 = smov (!%p157_p3), 123   ;;  %s548_s20 = smov (!%p157_p3), 122   ;;  %vm238_vm0 = vcmask (!%p157_p3), 1039360   ;;  %vm258_vm1 = vcmask (!%p157_p3), 1031168   ;;  %vm278_vm2 = vcmask (!%p157_p3), 1022976   ;;  %vm298_vm3 = vcmask (!%p157_p3), 1014784  }
   0xd   : > { %v213_v15 = vsub.s32 (!%p157_p3), 0, %v212_v14  ;;  %v227_v16 = vsub.s32 (!%p157_p3), 1, %v212_v14  ;;  %vm318_vm4 = vcmask (!%p157_p3), 1006592   ;;  %vm338_vm5 = vcmask (!%p157_p3), 998400  }
  0x10   : > { %287 = vperm.xlu1 %501, %v284_v5   ;;  %247 = vperm.xlu0 %500, %v244_v6   ;;  %s666_s13 = smov (!%p186_p5, %s528_s13), 1  ;;  %s668_s12 = smov (!%p188_p6, %s524_s12), 3 }
  0x11   : > { %s441_s29 = sshll.u32 %s668_s12, 1  ;;  %s442_s30 = sshll.u32 %s666_s13, 3 }
  0x12   : > { %s192_s4 = sadd.s32 %s442_s30, %s441_s29  ;;  %s443_s21 = sshll.u32 %s666_s13, 2 }
  0x13   : > { %s193_s7 = scalar_lea.vmem %s651_s0, %s192_s4  ;;  %s199_s22 = sadd.s32 %s443_s21, %s668_s12 }
  0x14   : > { %327 = vperm.xlu1 %501, %v324_v8   ;;  %307 = vperm.xlu0 %500, %v304_v9   ;;  %v202_v17 = vld [vmem:[%s193_s7] sm:$0x3]  ;;  %s444_s23 = sshll.u32 %s199_s22, 3 }
  0x15   : > { %v214_v18 = vrot.slane %v202_v17, %v213_v15  ;;  %v228_v19 = vrot.slane %v202_v17, %v227_v16  ;;  %s201_s26 = scalar_lea.vmem %s654_s3, %s444_s23 }
  0x18   : > { %345 = vperm.xlu1 %501, %v342_v12   ;;  %207 = vperm.xlu0 %500, %v204_v11  }
  0x8b   : > { %v223_v20 = vpop.permute.xlu0 %222  ;;  %v268_v26 = vpop.permute.xlu1 %267 }
  0x8c   : > { %v230_v21 = vmul.f32 %v223_v20, %v214_v18  ;;  %v231_v22 = vmul.f32 %v228_v19, %v223_v20  ;;  %v270_v27 = vmul.f32 %v268_v26, %v214_v18  ;;  %v271_v28 = vmul.f32 %v268_v26, %v228_v19 }
  0x8e   : > { %236 = vrot.lane.b32.xlu0 %v231_v22, %s543_s8  ;;  %234 = vrot.lane.b32.xlu1 %v230_v21, %s543_s8 }
  0x8f   : > { %v248_v23 = vpop.permute.xlu0 %247  ;;  %v288_v29 = vpop.permute.xlu1 %287 }
  0x90   : > { %v250_v24 = vmul.f32 %v248_v23, %v214_v18  ;;  %v251_v25 = vmul.f32 %v248_v23, %v228_v19  ;;  %v290_v30 = vmul.f32 %v288_v29, %v214_v18  ;;  %v291_v31 = vmul.f32 %v288_v29, %v228_v19 }
  0x92   : > { %256 = vrot.lane.b32.xlu0 %v251_v25, %s544_s9  ;;  %254 = vrot.lane.b32.xlu1 %v250_v24, %s544_s9 }
  0x93   : > { %v308_v32 = vpop.permute.xlu0 %307  ;;  %v328_v35 = vpop.permute.xlu1 %327 }
  0x94   : > { %v310_v33 = vmul.f32 %v308_v32, %v214_v18  ;;  %v311_v34 = vmul.f32 %v308_v32, %v228_v19  ;;  %v330_v36 = vmul.f32 %v328_v35, %v214_v18  ;;  %v331_v37 = vmul.f32 %v328_v35, %v228_v19 }
  0x96   : > { %276 = vrot.lane.b32.xlu0 %v271_v28, %s545_s10  ;;  %274 = vrot.lane.b32.xlu1 %v270_v27, %s545_s10 }
  0x97   : > { %v346_v38 = vpop.permute.xlu1 %345  ;;  %v208_v39 = vpop.permute.xlu0 %207 }
  0x98   : > { %v216_v47 = vmul.f32 %v214_v18, %v208_v39 }
  0x9a   : > { %296 = vrot.lane.b32.xlu0 %v291_v31, %s546_s11  ;;  %294 = vrot.lane.b32.xlu1 %v290_v30, %s546_s11 }
  0x9e   : > { %314 = vrot.lane.b32.xlu0 %v310_v33, %s547_s19  ;;  %316 = vrot.lane.b32.xlu1 %v311_v34, %s547_s19 }
  0xa2   : > { %334 = vrot.lane.b32.xlu0 %v330_v36, %s548_s20  ;;  %336 = vrot.lane.b32.xlu1 %v331_v37, %s548_s20 }
 0x100   : > { %v237_v40 = vpop.permute.xlu0 %236  ;;  %v235_v41 = vpop.permute.xlu1 %234 }
 0x101   : > { %v239_v46 = vsel %vm238_vm0, %v235_v41, %v237_v40 }
 0x102   : > { %v241_v49 = vadd.f32 %v239_v46, %v216_v47 }
 0x104   : > { %v257_v42 = vpop.permute.xlu0 %256  ;;  %v255_v43 = vpop.permute.xlu1 %254 }
 0x105   : > { %v259_v48 = vsel %vm258_vm1, %v255_v43, %v257_v42 }
 0x106   : > { %v261_v53 = vadd.f32 %v259_v48, %v241_v49 }
 0x108   : > { %v277_v44 = vpop.permute.xlu0 %276  ;;  %v275_v45 = vpop.permute.xlu1 %274 }
 0x109   : > { %v279_v52 = vsel %vm278_vm2, %v275_v45, %v277_v44 }
 0x10a   : > { %v281_v55 = vadd.f32 %v279_v52, %v261_v53 }
 0x10c   : > { %v297_v50 = vpop.permute.xlu0 %296  ;;  %v295_v51 = vpop.permute.xlu1 %294 }
 0x10d   : > { %v299_v54 = vsel %vm298_vm3, %v295_v51, %v297_v50 }
 0x10e   : > { %v301_v59 = vadd.f32 %v299_v54, %v281_v55 }
 0x110   : > { %v315_v56 = vpop.permute.xlu0 %314  ;;  %v317_v57 = vpop.permute.xlu1 %316 }
 0x111   : > { %v319_v58 = vsel %vm318_vm4, %v315_v56, %v317_v57 }
 0x112   : > { %v321_v60 = vadd.f32 %v319_v58, %v301_v59 }
 0x114   : > { %v335_v61 = vpop.permute.xlu0 %334  ;;  %v337_v62 = vpop.permute.xlu1 %336 }
 0x115   : > { %v339_v63 = vsel %vm338_vm5, %v335_v61, %v337_v62 }
 0x116   : > { %v341_v0 = vadd.f32 %v339_v63, %v321_v60 }
 0x118   : > { %v348_v1 = vadd.f32 %v346_v38, %v341_v0 }
 0x11a   : > { %349 = vst [vmem:[%s201_s26] sm:$0xff] %v348_v1 }
 0x11b PF: > { %s13_s16 = sadd.s32 1, %s540_s16   ;;  %s655_s12 = smov %s532_s14 }
 0x11c   : > { %p10_p7 = scmp.ge.s32.totalorder %s13_s16, 10   ;;  %s656_s13 = smov %s536_s15 }
 0x11d   : > { %s657_s14 = smov %s660_s17  ;;  %s658_s15 = smov %s664_s18 }
 0x11e   :  { %12 = sbr.rel (!%p10_p7) target bundleno = 3 (0x3), region = 68 }

// kernel: forward_pallas.15
= control target key start
LH: loop header
LB: loop body
LE: loop exit
PB: predicated region body
PF: predicated region fallthrough
CT: control target
= control target key end

     0   :  { %s904_s24 = smov 0   ;;  %s906_s25 = smov 0   ;;  %s1004_s0 = inlined_call_operand.vmem [shape: f32[2,4,8,134], index: 0, kind: input, shape index: {}]   ;;  %s1005_s1 = inlined_call_operand.vmem [shape: bf16[3,8,8], index: 1, kind: input, shape index: {}]   ;;  %s1006_s2 = inlined_call_operand.vmem [shape: f32[8,1], index: 2, kind: input, shape index: {}]   ;;  %s1007_s3 = inlined_call_operand.vmem [shape: bf16[8,8], index: 3, kind: input, shape index: {}]   ;;  %s1008_s4 = inlined_call_operand.vmem [shape: f32[8,1], index: 4, kind: input, shape index: {}]   ;;  %s1009_s5 = inlined_call_operand.vmem [shape: bf16[8,8], index: 5, kind: input, shape index: {}]   ;;  %s1010_s6 = inlined_call_operand.vmem [shape: f32[8,1], index: 6, kind: input, shape index: {}]   ;;  %s1011_s7 = inlined_call_operand.vmem [shape: f32[2,8,512], index: 7, kind: output, shape index: {}]  }
   0x1   :  { %s908_s26 = smov 0   ;;  %s910_s27 = smov 0  }
   0x2   :  { %s912_s28 = smov 0  }
   0x3 LB: > { %s26_s29 = sadd.s32 1, %s849_s26  ;;  %s29_s30 = sadd.s32 1, %s853_s27  ;;  %s857_s28 = sphi %s912_s28, %s17_s28   ;;  %s853_s27 = sphi %s910_s27, %s1015_s27   ;;  %s849_s26 = sphi %s908_s26, %s1014_s26   ;;  %s845_s25 = sphi %s906_s25, %s1013_s25   ;;  %s841_s24 = sphi %s904_s24, %s1012_s24  }
   0x4   : > { %p27_p0 = scmp.ge.s32.totalorder %s26_s29, 4  ;;  %p701_p1 = scmp.ge.s32.totalorder %s857_s28, 1 }
   0x5   : > { %p257_p2 = scmp.lt.s32.totalorder %s857_s28, 9 }
   0x6   : > { %s1017_s29 = smov (%p27_p0, %s26_s29), 0  ;;  %s1019_s30 = smov (!%p27_p0, %s29_s30), %s853_s27 }
   0x7   : > { %p258_p3 = pnand %p701_p1, %p257_p2  ;;  %p31_p4 = scmp.ge.s32.totalorder %s1019_s30, 2 }
   0x8   : > { %p296_p5 = scmp.lt.s32.totalorder (!%p258_p3), %s845_s25, 1  ;;  %p298_p6 = scmp.lt.s32.totalorder (!%p258_p3), %s841_s24, 3  ;;  %v859_v2 = vmov (!%p258_p3), 0.0   ;;  %vm860_vm0 = vmmov (!%p258_p3), 0   ;;  %v544_v11 = vld [vmem:[%s1006_s2] sm:$0xff] (!%p258_p3)  ;;  %v863_v12 = vmov (!%p258_p3), 0  }
   0x9   : > { %s1021_s30 = smov (%p31_p4, %s1019_s30), 0  ;;  %261 = sbr.rel (%p258_p3) target bundleno = 626 (0x272), region = 48 }
   0xa   : > { %726 = vmatprep.subr.bf16.mxu0 (!%p258_p3), %v859_v2  ;;  %732 = vmatprep.subr.bf16.mxu1 (!%p258_p3), %v859_v2  ;;  %s861_s15 = smov (!%p258_p3), 125   ;;  %s862_s16 = smov (!%p258_p3), 122   ;;  %vm333_vm1 = vcmask (!%p258_p3), 1022976   ;;  %vm339_vm2 = vcmask (!%p258_p3), 1043456   ;;  %v320_v17 = vld [vmem:[%s1009_s5] sm:$0xf] (!%p258_p3) }
   0xb   : > { %728 = vmatprep.mubr.msk.bf16.mxu0 (!%p258_p3), %vm860_vm0, %v859_v2  ;;  %734 = vmatprep.mubr.msk.bf16.mxu1 (!%p258_p3), %vm860_vm0, %v859_v2  ;;  %vm335_vm3 = vcmask (!%p258_p3), 64512   ;;  %v387_v21 = vld [vmem:[%s1005_s1] sm:$0xf] (!%p258_p3)  ;;  %vm495_vm4 = vcmask (!%p258_p3), 998400   ;;  %v708_v25 = vld [vmem:[%s1005_s1 + $0x4] sm:$0xf] (!%p258_p3) }
   0xc   : > { %807 = vset.pattern.permute.xlu0 (!%p258_p3), %v863_v12  ;;  %808 = vset.pattern.permute.xlu1 (!%p258_p3), %v863_v12  ;;  %v711_v29 = vld [vmem:[%s1005_s1 + $0x8] sm:$0xf] (!%p258_p3)  ;;  %v321_v30 = vld [vmem:[%s1010_s6] sm:$0xff] (!%p258_p3) }
   0xd   : > { %v554_v31 = vld [vmem:[%s1008_s4] sm:$0xff] (!%p258_p3) }
   0xe   : > { %v553_v51 = vld [vmem:[%s1007_s3] sm:$0xf] (!%p258_p3) }
  0x10   : > { %s1023_s25 = smov (!%p296_p5, %s845_s25), 1  ;;  %s1025_s24 = smov (!%p298_p6, %s841_s24), 3 }
  0x11   : > { %s703_s8 = sshll.u32 %s1023_s25, 3  ;;  %s702_s9 = sshll.u32 %s1025_s24, 1 }
  0x12   : > { %s302_s10 = sadd.s32 %s703_s8, %s702_s9  ;;  %s705_s17 = sshll.u32 %s1023_s25, 2 }
  0x13   : > { %s704_s11 = sshll.u32 %s302_s10, 3  ;;  %s310_s18 = sadd.s32 %s705_s17, %s1025_s24 }
  0x14   : > { %s304_s14 = scalar_lea.vmem %s1004_s0, %s704_s11  ;;  %s706_s19 = sshll.u32 %s310_s18, 3 }
  0x15   : > { %v314_v0 = vld [vmem:[%s304_s14] sm:$0xff]  ;;  %v315_v1 = vld [vmem:[%s304_s14 + $0x8] sm:$0xff]  ;;  %s312_s22 = scalar_lea.vmem %s1011_s7, %s706_s19 }
  0x16   : > { %809 = vtanh.f32 %v314_v0 }
  0x17   : > { %811 = vtanh.f32 %v315_v1 }
  0x20   : > { %v810_v3 = vpop.eup %809 }
  0x21   : > { %v812_v4 = vpop.eup %811  ;;  %v318_v5 = vpack.c.bf16 %v810_v3, %v810_v3  ;;  %813 = vtanh.f32 %v810_v3 }
  0x22   : > { %815 = vtanh.f32 %v812_v4  ;;  %v319_v6 = vpack.c.bf16 %v812_v4, %v812_v4 }
  0x23   : > { %329 = vrot.lane.b32.xlu0 %v318_v5, %s861_s15 }
  0x27   : > { %331 = vrot.lane.b32.xlu0 %v319_v6, %s861_s15 }
  0x2b   : > { %v814_v7 = vpop.eup %813 }
  0x2c   : > { %v816_v8 = vpop.eup %815  ;;  %v385_v9 = vpack.c.bf16 %v814_v7, %v814_v7 }
  0x2d   : > { %v386_v10 = vpack.c.bf16 %v816_v8, %v816_v8 }
  0x2e   : > { %392 = vrot.lane.b32.xlu1 %v385_v9, %s861_s15  ;;  %491 = vrot.lane.b32.xlu0 %v385_v9, %s862_s16  ;;  %v447_v18 = vsel %vm339_vm2, %v385_v9, 0 }
  0x32   : > { %394 = vrot.lane.b32.xlu1 %v386_v10, %s861_s15  ;;  %547 = vperm.xlu0 %807, %v544_v11  }
  0x36   : > { %493 = vrot.lane.b32.xlu1 %v386_v10, %s862_s16 }
  0x3a   : > { %324 = vperm.xlu1 %808, %v321_v30  }
  0x3e   : > { %557 = vperm.xlu1 %808, %v554_v31  }
  0x95   : > { %v330_v13 = vpop.permute.xlu0 %329 }
  0x99   : > { %v332_v14 = vpop.permute.xlu0 %331 }
  0x9a   : > { %v334_v15 = vsel %vm333_vm1, %v330_v13, %v332_v14 }
  0x9b   : > { %v341_v16 = vsel %vm339_vm2, %v334_v15, 0 }
  0x9c   : > { %727 = vmatpush3.bf16.msra.mxu0 %v341_v16 }
  0x9d   : > { %738 = vmatprep.subr.bf16.mxu0 %v859_v2 }
  0x9f   : > { %729 = vmatmul.mubr.msk.bf16.vlgmr.msra.gmra.mrb[0].mxu0 %vm335_vm3, %v320_v17 }
  0xa0   : > { %v393_v19 = vpop.permute.xlu1 %392  ;;  %739 = vmatpush3.bf16.msra.mxu0 %v447_v18  ;;  %740 = vmatprep.mubr.msk.bf16.mxu0 %vm860_vm0, %v859_v2  ;;  %v492_v24 = vpop.permute.xlu0 %491 }
  0xa1   : > { %750 = vmatprep.subr.bf16.mxu0 %v859_v2 }
  0xa4   : > { %v395_v20 = vpop.permute.xlu1 %394 }
  0xa5   : > { %v396_v22 = vsel %vm333_vm1, %v393_v19, %v395_v20 }
  0xa6   : > { %v401_v23 = vsel %vm339_vm2, %v396_v22, 0 }
  0xa7   : > { %733 = vmatpush3.bf16.msra.mxu1 %v401_v23  ;;  %741 = vmatmul.mubr.msk.bf16.vlgmr.msra.gmra.mrb[4].mxu0 %vm335_vm3, %v387_v21 }
  0xa8   : > { %v494_v26 = vpop.permute.xlu1 %493  ;;  %744 = vmatprep.subr.bf16.mxu1 %v859_v2  ;;  %752 = vmatprep.mubr.msk.bf16.mxu0 %vm860_vm0, %v859_v2 }
  0xa9   : > { %v496_v27 = vsel %vm495_vm4, %v492_v24, %v494_v26 }
  0xaa   : > { %735 = vmatmul.mubr.msk.bf16.vlgmr.msra.gmra.mrb[0].mxu1 %vm335_vm3, %v708_v25  ;;  %v501_v28 = vsel %vm339_vm2, %v496_v27, 0 }
  0xab   : > { %745 = vmatpush3.bf16.msra.mxu1 %v501_v28  ;;  %746 = vmatprep.mubr.msk.bf16.mxu1 %vm860_vm0, %v859_v2 }
  0xb1   : > { %v548_v42 = vpop.permute.xlu0 %547 }
  0xb2   : > { %747 = vmatmul.mubr.msk.bf16.vlgmr.msra.gmra.mrb[4].mxu1 %vm335_vm3, %v711_v29 }
  0xb9   : > { %v325_v52 = vpop.permute.xlu1 %324 }
  0xbd   : > { %v558_v53 = vpop.permute.xlu1 %557 }
  0xbe   : > { %v756_v54 = vadd.f32 %v558_v53, %v325_v52 }
 0x17a   : > { %v483_v32 = vpop.f32.mrb[4].mxu0 }
 0x17b   : > { %v742_v33 = vpop.f32.mrb[5].mxu0 }
 0x17c   : > { %v486_v34 = vpop.f32.mrb[6].mxu0 }
 0x17d   : > { %v437_v35 = vpop.f32.mrb[0].mxu1  ;;  %v743_v36 = vpop.f32.mrb[7].mxu0 }
 0x17e   : > { %v484_v37 = vadd.f32 %v483_v32, %v437_v35  ;;  %v736_v38 = vpop.f32.mrb[1].mxu1 }
 0x17f   : > { %v440_v39 = vpop.f32.mrb[2].mxu1 }
 0x180   : > { %v737_v40 = vpop.f32.mrb[3].mxu1 }
 0x185   : > { %v537_v41 = vpop.f32.mrb[4].mxu1 }
 0x186   : > { %v543_v43 = vadd.f32 %v537_v41, %v484_v37  ;;  %v748_v44 = vpop.f32.mrb[5].mxu1 }
 0x187   : > { %v540_v45 = vpop.f32.mrb[6].mxu1 }
 0x188   : > { %v550_v46 = vadd.f32 %v548_v42, %v543_v43  ;;  %v749_v47 = vpop.f32.mrb[7].mxu1 }
 0x18a   : > { %817 = vtanh.f32 %v550_v46 }
 0x194   : > { %v818_v48 = vpop.eup %817 }
 0x195   : > { %v552_v49 = vpack.c.bf16 %v818_v48, %v818_v48 }
 0x197   : > { %v564_v50 = vsel %vm339_vm2, %v552_v49, 0 }
 0x198   : > { %751 = vmatpush3.bf16.msra.mxu0 %v564_v50 }
 0x19b   : > { %753 = vmatmul.mubr.msk.bf16.vlgmr.msra.gmra.mrb[0].mxu0 %vm335_vm3, %v553_v51 }
 0x26e   : > { %v600_v55 = vpop.f32.mrb[0].mxu0 }
 0x26f   : > { %v757_v56 = vadd.f32 %v756_v54, %v600_v55  ;;  %v754_v57 = vpop.f32.mrb[1].mxu0 }
 0x270   : > { %v603_v58 = vpop.f32.mrb[2].mxu0 }
 0x271   : > { %607 = vst [vmem:[%s312_s22] sm:$0xff] %v757_v56  ;;  %v755_v59 = vpop.f32.mrb[3].mxu0 }
 0x272 PF: > { %s17_s28 = sadd.s32 1, %s857_s28   ;;  %s1012_s24 = smov %s849_s26 }
 0x273   : > { %p14_p7 = scmp.ge.s32.totalorder %s17_s28, 10   ;;  %s1013_s25 = smov %s853_s27 }
 0x274   : > { %s1014_s26 = smov %s1017_s29  ;;  %s1015_s27 = smov %s1021_s30 }
 0x275   :  { %16 = sbr.rel (!%p14_p7) target bundleno = 3 (0x3), region = 80 }

// kernel: forward_pallas.16
= control target key start
LH: loop header
LB: loop body
LE: loop exit
PB: predicated region body
PF: predicated region fallthrough
CT: control target
= control target key end

     0   :  { %s898_s24 = smov 0   ;;  %s900_s25 = smov 0   ;;  %s1008_s0 = inlined_call_operand.vmem [shape: f32[2,4,8,130], index: 0, kind: input, shape index: {}]   ;;  %s1009_s1 = inlined_call_operand.vmem [shape: bf16[3,8,8], index: 1, kind: input, shape index: {}]   ;;  %s1010_s2 = inlined_call_operand.vmem [shape: f32[8,1], index: 2, kind: input, shape index: {}]   ;;  %s1011_s3 = inlined_call_operand.vmem [shape: bf16[8,8], index: 3, kind: input, shape index: {}]   ;;  %s1012_s4 = inlined_call_operand.vmem [shape: f32[8,1], index: 4, kind: input, shape index: {}]   ;;  %s1013_s5 = inlined_call_operand.vmem [shape: bf16[8,8], index: 5, kind: input, shape index: {}]   ;;  %s1014_s6 = inlined_call_operand.vmem [shape: f32[8,1], index: 6, kind: input, shape index: {}]   ;;  %s1015_s7 = inlined_call_operand.vmem [shape: f32[2,8,512], index: 7, kind: output, shape index: {}]  }
   0x1   :  { %s902_s26 = smov 0   ;;  %s904_s27 = smov 0  }
   0x2   :  { %s906_s28 = smov 0  }
   0x3 LB: > { %s26_s29 = sadd.s32 1, %s843_s26  ;;  %s29_s30 = sadd.s32 1, %s847_s27  ;;  %s851_s28 = sphi %s906_s28, %s17_s28   ;;  %s847_s27 = sphi %s904_s27, %s1019_s27   ;;  %s843_s26 = sphi %s902_s26, %s1018_s26   ;;  %s839_s25 = sphi %s900_s25, %s1017_s25   ;;  %s835_s24 = sphi %s898_s24, %s1016_s24  }
   0x4   : > { %p27_p0 = scmp.ge.s32.totalorder %s26_s29, 4  ;;  %p699_p1 = scmp.ge.s32.totalorder %s851_s28, 1 }
   0x5   : > { %p257_p2 = scmp.lt.s32.totalorder %s851_s28, 9 }
   0x6   : > { %s1021_s29 = smov (%p27_p0, %s26_s29), 0  ;;  %s1023_s30 = smov (!%p27_p0, %s29_s30), %s847_s27 }
   0x7   : > { %p258_p3 = pnand %p699_p1, %p257_p2  ;;  %p31_p4 = scmp.ge.s32.totalorder %s1023_s30, 2 }
   0x8   : > { %p296_p5 = scmp.lt.s32.totalorder (!%p258_p3), %s839_s25, 1  ;;  %p298_p6 = scmp.lt.s32.totalorder (!%p258_p3), %s835_s24, 3  ;;  %v853_v0 = vmov (!%p258_p3), 0.0   ;;  %vm854_vm0 = vmmov (!%p258_p3), 0   ;;  %v542_v9 = vld [vmem:[%s1010_s2] sm:$0xff] (!%p258_p3)  ;;  %v857_v10 = vmov (!%p258_p3), 0  }
   0x9   : > { %s1025_s30 = smov (%p31_p4, %s1023_s30), 0  ;;  %261 = sbr.rel (%p258_p3) target bundleno = 615 (0x267), region = 48 }
   0xa   : > { %724 = vmatprep.subr.bf16.mxu0 (!%p258_p3), %v853_v0  ;;  %730 = vmatprep.subr.bf16.mxu1 (!%p258_p3), %v853_v0  ;;  %s855_s15 = smov (!%p258_p3), 127   ;;  %s856_s16 = smov (!%p258_p3), 126   ;;  %vm331_vm1 = vcmask (!%p258_p3), 1039360   ;;  %vm337_vm2 = vcmask (!%p258_p3), 1043456   ;;  %v318_v15 = vld [vmem:[%s1013_s5] sm:$0xf] (!%p258_p3) }
   0xb   : > { %726 = vmatprep.mubr.msk.bf16.mxu0 (!%p258_p3), %vm854_vm0, %v853_v0  ;;  %732 = vmatprep.mubr.msk.bf16.mxu1 (!%p258_p3), %vm854_vm0, %v853_v0  ;;  %vm333_vm3 = vcmask (!%p258_p3), 64512   ;;  %v385_v19 = vld [vmem:[%s1009_s1] sm:$0xf] (!%p258_p3)  ;;  %vm493_vm4 = vcmask (!%p258_p3), 1031168   ;;  %v706_v23 = vld [vmem:[%s1009_s1 + $0x4] sm:$0xf] (!%p258_p3) }
   0xc   : > { %805 = vset.pattern.permute.xlu0 (!%p258_p3), %v857_v10  ;;  %806 = vset.pattern.permute.xlu1 (!%p258_p3), %v857_v10  ;;  %v709_v27 = vld [vmem:[%s1009_s1 + $0x8] sm:$0xf] (!%p258_p3)  ;;  %v319_v28 = vld [vmem:[%s1014_s6] sm:$0xff] (!%p258_p3) }
   0xd   : > { %v552_v29 = vld [vmem:[%s1012_s4] sm:$0xff] (!%p258_p3) }
   0xe   : > { %v551_v49 = vld [vmem:[%s1011_s3] sm:$0xf] (!%p258_p3) }
  0x10   : > { %s1027_s25 = smov (!%p296_p5, %s839_s25), 1  ;;  %s1029_s24 = smov (!%p298_p6, %s835_s24), 3 }
  0x11   : > { %s701_s8 = sshll.u32 %s1027_s25, 3  ;;  %s700_s9 = sshll.u32 %s1029_s24, 1 }
  0x12   : > { %s302_s10 = sadd.s32 %s701_s8, %s700_s9  ;;  %s703_s17 = sshll.u32 %s1027_s25, 2 }
  0x13   : > { %s702_s11 = sshll.u32 %s302_s10, 3  ;;  %s310_s18 = sadd.s32 %s703_s17, %s1029_s24 }
  0x14   : > { %s304_s14 = scalar_lea.vmem %s1008_s0, %s702_s11  ;;  %s704_s19 = sshll.u32 %s310_s18, 3 }
  0x15   : > { %v314_v1 = vld [vmem:[%s304_s14] sm:$0xff]  ;;  %v315_v2 = vld [vmem:[%s304_s14 + $0x8] sm:$0xff]  ;;  %s312_s22 = scalar_lea.vmem %s1015_s7, %s704_s19 }
  0x16   : > { %v316_v3 = vpack.c.bf16 %v314_v1, %v314_v1  ;;  %807 = vtanh.f32 %v314_v1  ;;  %v317_v4 = vpack.c.bf16 %v315_v2, %v315_v2 }
  0x17   : > { %809 = vtanh.f32 %v315_v2 }
  0x18   : > { %327 = vrot.lane.b32.xlu0 %v316_v3, %s855_s15 }
  0x1c   : > { %329 = vrot.lane.b32.xlu0 %v317_v4, %s855_s15 }
  0x20   : > { %v808_v5 = vpop.eup %807 }
  0x21   : > { %v810_v6 = vpop.eup %809  ;;  %v383_v7 = vpack.c.bf16 %v808_v5, %v808_v5 }
  0x22   : > { %v384_v8 = vpack.c.bf16 %v810_v6, %v810_v6 }
  0x23   : > { %390 = vrot.lane.b32.xlu1 %v383_v7, %s855_s15  ;;  %489 = vrot.lane.b32.xlu0 %v383_v7, %s856_s16  ;;  %v445_v16 = vsel %vm337_vm2, %v383_v7, 0 }
  0x27   : > { %392 = vrot.lane.b32.xlu1 %v384_v8, %s855_s15  ;;  %545 = vperm.xlu0 %805, %v542_v9  }
  0x2b   : > { %491 = vrot.lane.b32.xlu1 %v384_v8, %s856_s16 }
  0x2f   : > { %322 = vperm.xlu1 %806, %v319_v28  }
  0x33   : > { %555 = vperm.xlu1 %806, %v552_v29  }
  0x8a   : > { %v328_v11 = vpop.permute.xlu0 %327 }
  0x8e   : > { %v330_v12 = vpop.permute.xlu0 %329 }
  0x8f   : > { %v332_v13 = vsel %vm331_vm1, %v328_v11, %v330_v12 }
  0x90   : > { %v339_v14 = vsel %vm337_vm2, %v332_v13, 0 }
  0x91   : > { %725 = vmatpush3.bf16.msra.mxu0 %v339_v14 }
  0x92   : > { %736 = vmatprep.subr.bf16.mxu0 %v853_v0 }
  0x94   : > { %727 = vmatmul.mubr.msk.bf16.vlgmr.msra.gmra.mrb[0].mxu0 %vm333_vm3, %v318_v15 }
  0x95   : > { %v391_v17 = vpop.permute.xlu1 %390  ;;  %737 = vmatpush3.bf16.msra.mxu0 %v445_v16  ;;  %738 = vmatprep.mubr.msk.bf16.mxu0 %vm854_vm0, %v853_v0  ;;  %v490_v22 = vpop.permute.xlu0 %489 }
  0x96   : > { %748 = vmatprep.subr.bf16.mxu0 %v853_v0 }
  0x99   : > { %v393_v18 = vpop.permute.xlu1 %392 }
  0x9a   : > { %v394_v20 = vsel %vm331_vm1, %v391_v17, %v393_v18 }
  0x9b   : > { %v399_v21 = vsel %vm337_vm2, %v394_v20, 0 }
  0x9c   : > { %731 = vmatpush3.bf16.msra.mxu1 %v399_v21  ;;  %739 = vmatmul.mubr.msk.bf16.vlgmr.msra.gmra.mrb[4].mxu0 %vm333_vm3, %v385_v19 }
  0x9d   : > { %v492_v24 = vpop.permute.xlu1 %491  ;;  %742 = vmatprep.subr.bf16.mxu1 %v853_v0  ;;  %750 = vmatprep.mubr.msk.bf16.mxu0 %vm854_vm0, %v853_v0 }
  0x9e   : > { %v494_v25 = vsel %vm493_vm4, %v490_v22, %v492_v24 }
  0x9f   : > { %733 = vmatmul.mubr.msk.bf16.vlgmr.msra.gmra.mrb[0].mxu1 %vm333_vm3, %v706_v23  ;;  %v499_v26 = vsel %vm337_vm2, %v494_v25, 0 }
  0xa0   : > { %743 = vmatpush3.bf16.msra.mxu1 %v499_v26  ;;  %744 = vmatprep.mubr.msk.bf16.mxu1 %vm854_vm0, %v853_v0 }
  0xa6   : > { %v546_v40 = vpop.permute.xlu0 %545 }
  0xa7   : > { %745 = vmatmul.mubr.msk.bf16.vlgmr.msra.gmra.mrb[4].mxu1 %vm333_vm3, %v709_v27 }
  0xae   : > { %v323_v50 = vpop.permute.xlu1 %322 }
  0xb2   : > { %v556_v51 = vpop.permute.xlu1 %555 }
  0xb3   : > { %v754_v52 = vadd.f32 %v556_v51, %v323_v50 }
 0x16f   : > { %v481_v30 = vpop.f32.mrb[4].mxu0 }
 0x170   : > { %v740_v31 = vpop.f32.mrb[5].mxu0 }
 0x171   : > { %v484_v32 = vpop.f32.mrb[6].mxu0 }
 0x172   : > { %v435_v33 = vpop.f32.mrb[0].mxu1  ;;  %v741_v34 = vpop.f32.mrb[7].mxu0 }
 0x173   : > { %v482_v35 = vadd.f32 %v481_v30, %v435_v33  ;;  %v734_v36 = vpop.f32.mrb[1].mxu1 }
 0x174   : > { %v438_v37 = vpop.f32.mrb[2].mxu1 }
 0x175   : > { %v735_v38 = vpop.f32.mrb[3].mxu1 }
 0x17a   : > { %v535_v39 = vpop.f32.mrb[4].mxu1 }
 0x17b   : > { %v541_v41 = vadd.f32 %v535_v39, %v482_v35  ;;  %v746_v42 = vpop.f32.mrb[5].mxu1 }
 0x17c   : > { %v538_v43 = vpop.f32.mrb[6].mxu1 }
 0x17d   : > { %v548_v44 = vadd.f32 %v546_v40, %v541_v41  ;;  %v747_v45 = vpop.f32.mrb[7].mxu1 }
 0x17f   : > { %811 = vtanh.f32 %v548_v44 }
 0x189   : > { %v812_v46 = vpop.eup %811 }
 0x18a   : > { %v550_v47 = vpack.c.bf16 %v812_v46, %v812_v46 }
 0x18c   : > { %v562_v48 = vsel %vm337_vm2, %v550_v47, 0 }
 0x18d   : > { %749 = vmatpush3.bf16.msra.mxu0 %v562_v48 }
 0x190   : > { %751 = vmatmul.mubr.msk.bf16.vlgmr.msra.gmra.mrb[0].mxu0 %vm333_vm3, %v551_v49 }
 0x263   : > { %v598_v53 = vpop.f32.mrb[0].mxu0 }
 0x264   : > { %v755_v54 = vadd.f32 %v754_v52, %v598_v53  ;;  %v752_v55 = vpop.f32.mrb[1].mxu0 }
 0x265   : > { %v601_v56 = vpop.f32.mrb[2].mxu0 }
 0x266   : > { %605 = vst [vmem:[%s312_s22] sm:$0xff] %v755_v54  ;;  %v753_v57 = vpop.f32.mrb[3].mxu0 }
 0x267 PF: > { %s17_s28 = sadd.s32 1, %s851_s28   ;;  %s1016_s24 = smov %s843_s26 }
 0x268   : > { %p14_p7 = scmp.ge.s32.totalorder %s17_s28, 10   ;;  %s1017_s25 = smov %s847_s27 }
 0x269   : > { %s1018_s26 = smov %s1021_s29  ;;  %s1019_s27 = smov %s1025_s30 }
 0x26a   :  { %16 = sbr.rel (!%p14_p7) target bundleno = 3 (0x3), region = 80 }

// kernel: forward_pallas.17
= control target key start
LH: loop header
LB: loop body
LE: loop exit
PB: predicated region body
PF: predicated region fallthrough
CT: control target
= control target key end

     0   :  { %s641_s12 = smov 0   ;;  %s643_s13 = smov 0   ;;  %s748_s0 = inlined_call_operand.vmem [shape: f32[2,2,16,129], index: 0, kind: input, shape index: {}]   ;;  %s749_s1 = inlined_call_operand.vmem [shape: bf16[2,16,16], index: 1, kind: input, shape index: {}]   ;;  %s750_s2 = inlined_call_operand.vmem [shape: f32[16,1], index: 2, kind: input, shape index: {}]   ;;  %s751_s3 = inlined_call_operand.vmem [shape: f32[2,16,256], index: 3, kind: output, shape index: {}]  }
   0x1   :  { %s645_s14 = smov 0   ;;  %s647_s15 = smov 0  }
   0x2   :  { %s649_s16 = smov 0   ;;  %s651_s17 = smov 0  }
   0x3   :  { %s653_s18 = smov 0  }
   0x4 LB: > { %s22_s19 = sadd.s32 1, %s607_s16  ;;  %s25_s20 = sadd.s32 1, %s611_s17  ;;  %s615_s18 = sphi %s653_s18, %s13_s18   ;;  %s611_s17 = sphi %s651_s17, %s758_s17   ;;  %s607_s16 = sphi %s649_s16, %s757_s16   ;;  %s603_s15 = sphi %s647_s15, %s756_s15   ;;  %s599_s14 = sphi %s645_s14, %s755_s14   ;;  %s595_s13 = sphi %s643_s13, %s754_s13   ;;  %s591_s12 = sphi %s641_s12, %s753_s12  }
   0x5   : > { %p23_p0 = scmp.ge.s32.totalorder %s22_s19, 2  ;;  %s453_s21 = sadd.s32 4294967295, %s615_s18  }
   0x6   : > { %p114_p1 = scmp.ne.s32.totalorder %s595_s13, %s591_s12  ;;  %p115_p2 = scmp.eq.s32.totalorder %s453_s21, 3 }
   0x7   : > { %s760_s19 = smov (%p23_p0, %s22_s19), 0  ;;  %s762_s20 = smov (!%p23_p0, %s25_s20), %s611_s17 }
   0x8   : > { %s100_s22 = ssub.s32 %s607_s16, %s760_s19  ;;  %p27_p3 = scmp.ge.s32.totalorder %s762_s20, 2 }
   0x9   : > { %p457_p4 = scmp.ge.s32.totalorder %s615_s18, 1  ;;  %p687_p5 = por %p115_p2, %p114_p1 }
   0xa   : > { %p157_p6 = scmp.lt.s32.totalorder %s615_s18, 5  ;;  %s764_s20 = smov (%p27_p3, %s762_s20), 0 }
   0xb   : > { %s99_s24 = ssub.s32 %s611_s17, %s764_s20  ;;  %s104_s26 = sadd.s32 1, %s595_s13 }
   0xc   : > { %p158_p7 = pnand %p457_p4, %p157_p6  ;;  %s101_s25 = sor.u32 %s100_s22, %s99_s24 }
   0xd   : > { %p102_p8 = scmp.eq.s32.totalorder %s101_s25, 0  ;;  %p184_p9 = scmp.lt.s32.totalorder (!%p158_p7), %s603_s15, 1  ;;  %v617_v4 = vmov (!%p158_p7), 0.0   ;;  %vm618_vm0 = vmmov (!%p158_p7), 0   ;;  %v317_v5 = vld [vmem:[%s750_s2] sm:$0xff] (!%p158_p7)  ;;  %v619_v7 = vmov (!%p158_p7), 0  }
   0xe   : > { %161 = sbr.rel (%p158_p7) target bundleno = 393 (0x189), region = 32  ;;  %p186_p10 = scmp.lt.s32.totalorder (!%p158_p7), %s599_s14, 1  ;;  %483 = vmatprep.subr.bf16.mxu1 (!%p158_p7), %v617_v4  ;;  %477 = vmatprep.subr.bf16.mxu0 (!%p158_p7), %v617_v4  ;;  %v318_v11 = vld [vmem:[%s750_s2 + $0x8] sm:$0xff] (!%p158_p7)  ;;  %v551_v13 = vld [vmem:[%s749_s1] sm:$0xff] (!%p158_p7)   ;;  %vm223_vm1 = vcmask (!%p158_p7), 130048   ;;  %vm220_vm2 = vcmask (!%p158_p7), 1039360  }
   0xf   : > { %s698_s27 = scalar_select %p102_p8, %s595_s13, %s104_s26  }
  0x10   : > { %485 = vmatprep.mubr.msk.bf16.mxu1 (!%p158_p7), %vm618_vm0, %v617_v4  ;;  %479 = vmatprep.mubr.msk.bf16.mxu0 (!%p158_p7), %vm618_vm0, %v617_v4  ;;  %s620_s26 = smov (!%p158_p7), 127   ;;  %v552_v18 = vld [vmem:[%s749_s1 + $0x8] sm:$0xff] (!%p158_p7)  }
  0x11   : > { %549 = vset.pattern.permute.xlu1 (!%p158_p7), %v619_v7  ;;  %550 = vset.pattern.permute.xlu0 (!%p158_p7), %v619_v7 }
  0x12   : > { %321 = vperm.xlu1 (!%p158_p7), %549, %v317_v5  }
  0x15   : > { %s185_s28 = scalar_select %p184_p9, %s603_s15, 1 }
  0x16   : > { %s187_s29 = scalar_select %p186_p10, %s599_s14, 1  ;;  %326 = vperm.xlu1 %549, %v318_v11  }
  0x17   : > { %s460_s30 = sshll.u32 %s185_s28, 3 }
  0x18   : > { %s459_s4 = sshll.u32 %s187_s29, 2 }
  0x19   : > { %s190_s5 = sadd.s32 %s460_s30, %s459_s4  ;;  %s181_s30 = sand.u32 1, %s591_s12  }
  0x1a   : > { %s461_s6 = sshll.u32 %s190_s5, 3  ;;  %s458_s4 = sshll.u32 %s181_s30, 4 }
  0x1b   : > { %s192_s9 = scalar_lea.vmem %s748_s0, %s461_s6  ;;  %s183_s5 = scalar_lea.vmem [#allocation2], %s458_s4 }
  0x1c   : > { %v194_v0 = vld [vmem:[%s192_s9] sm:$0xff]  ;;  %v196_v1 = vld [vmem:[%s192_s9 + $0x10] sm:$0xff]  ;;  %v195_v2 = vld [vmem:[%s192_s9 + $0x8] sm:$0xff]  ;;  %s469_s12 = sshll.u32 (%p687_p5), %s603_s15, 2 }
  0x1d   : > { %553 = vtanh.f32 %v194_v0  ;;  %v197_v3 = vld [vmem:[%s192_s9 + $0x18] sm:$0xff]  ;;  %s341_s6 = sadd.s32 (%p687_p5), %s599_s14, %s469_s12 }
  0x1e   : > { %555 = vtanh.f32 %v196_v1  ;;  %s470_s7 = sshll.u32 (%p687_p5), %s341_s6, 3 }
  0x1f   : > { %557 = vtanh.f32 %v195_v2  ;;  %s343_s10 = scalar_lea.vmem (%p687_p5), %s751_s3, %s470_s7 }
  0x20   : > { %559 = vtanh.f32 %v197_v3 }
  0x27   : > { %v554_v6 = vpop.eup %553 }
  0x28   : > { %v556_v8 = vpop.eup %555 }
  0x29   : > { %v558_v9 = vpop.eup %557  ;;  %v202_v10 = vpack.c.bf16 %v556_v8, %v554_v6 }
  0x2a   : > { %v560_v12 = vpop.eup %559 }
  0x2b   : > { %216 = vrot.lane.b32.xlu0 %v202_v10, %s620_s26  ;;  %v203_v14 = vpack.c.bf16 %v560_v12, %v558_v9  ;;  %484 = vmatpush3.bf16.msra.mxu1 %v202_v10 }
  0x2e   : > { %486 = vmatmul.mubr.msk.bf16.vlgmr.msra.gmra.mrb[0].mxu1 %vm223_vm1, %v551_v13 }
  0x2f   : > { %218 = vrot.lane.b32.xlu0 %v203_v14, %s620_s26 }
  0x91   : > { %v322_v23 = vpop.permute.xlu1 %321 }
  0x95   : > { %v327_v31 = vpop.permute.xlu1 %326 }
  0x9d   : > { %v217_v15 = vpop.permute.xlu0 %216 }
  0xa1   : > { %v219_v16 = vpop.permute.xlu0 %218 }
  0xa2   : > { %v221_v17 = vsel %vm220_vm2, %v217_v15, %v219_v16 }
  0xa3   : > { %478 = vmatpush3.bf16.msra.mxu0 %v221_v17 }
  0xa6   : > { %480 = vmatmul.mubr.msk.bf16.vlgmr.msra.gmra.mrb[0].mxu0 %vm223_vm1, %v552_v18 }
 0x101   : > { %v310_v19 = vpop.f32.mrb[0].mxu1 }
 0x102   : > { %v487_v20 = vpop.f32.mrb[1].mxu1 }
 0x103   : > { %v313_v21 = vpop.f32.mrb[2].mxu1 }
 0x104   : > { %v488_v22 = vpop.f32.mrb[3].mxu1 }
 0x179   : > { %v261_v24 = vpop.f32.mrb[0].mxu0 }
 0x17a   : > { %v311_v25 = vadd.f32 %v310_v19, %v261_v24  ;;  %v481_v26 = vpop.f32.mrb[1].mxu0  ;;  %339 = sbr.rel (!%p687_p5) target bundleno = 393 (0x189), region = 36 }
 0x17b   : > { %v264_v27 = vpop.f32.mrb[2].mxu0 }
 0x17c   : > { %v329_v28 = vadd.f32 %v322_v23, %v311_v25  ;;  %v314_v29 = vadd.f32 %v313_v21, %v264_v27  ;;  %v482_v30 = vpop.f32.mrb[3].mxu0 }
 0x17e   : > { %331 = vst [vmem:[%s183_s5] sm:$0xff] %v329_v28  ;;  %v330_v32 = vadd.f32 %v327_v31, %v314_v29 }
 0x180   : > { %332 = vst [vmem:[%s183_s5 + $0x8] sm:$0xff] %v330_v32 }
 0x185   : > { %v373_v33 = vld [vmem:[%s183_s5] sm:$0xff] }
 0x186   : > { %374 = vst [vmem:[%s343_s10] sm:$0xff] %v373_v33 }
 0x187   : > { %v375_v34 = vld [vmem:[%s183_s5 + $0x8] sm:$0xff] }
 0x188   : > { %376 = vst [vmem:[%s343_s10 + $0x10] sm:$0xff] %v375_v34 }
 0x189 PF: > { %s13_s18 = sadd.s32 1, %s615_s18   ;;  %s753_s12 = smov %s595_s13 }
 0x18a   : > { %p10_p11 = scmp.ge.s32.totalorder %s13_s18, 6   ;;  %s754_s13 = smov %s698_s27 }
 0x18b   : > { %s755_s14 = smov %s607_s16  ;;  %s756_s15 = smov %s611_s17 }
 0x18c   : > { %s757_s16 = smov %s760_s19  ;;  %s758_s17 = smov %s764_s20 }
 0x18d   :  { %12 = sbr.rel (!%p10_p11) target bundleno = 4 (0x4), region = 101 }

// kernel: forward_pallas.18
= control target key start
LH: loop header
LB: loop body
LE: loop exit
PB: predicated region body
PF: predicated region fallthrough
CT: control target
= control target key end

     0   :  { %s1020_s24 = smov 0   ;;  %s1022_s25 = smov 0   ;;  %s1168_s0 = inlined_call_operand.vmem [shape: f32[2,2,16,134], index: 0, kind: input, shape index: {}]   ;;  %s1169_s1 = inlined_call_operand.vmem [shape: bf16[3,16,16], index: 1, kind: input, shape index: {}]   ;;  %s1170_s2 = inlined_call_operand.vmem [shape: f32[16,1], index: 2, kind: input, shape index: {}]   ;;  %s1171_s3 = inlined_call_operand.vmem [shape: bf16[16,16], index: 3, kind: input, shape index: {}]   ;;  %s1172_s4 = inlined_call_operand.vmem [shape: f32[16,1], index: 4, kind: input, shape index: {}]   ;;  %s1173_s5 = inlined_call_operand.vmem [shape: bf16[16,16], index: 5, kind: input, shape index: {}]   ;;  %s1174_s6 = inlined_call_operand.vmem [shape: f32[16,1], index: 6, kind: input, shape index: {}]   ;;  %s1175_s7 = inlined_call_operand.vmem [shape: f32[2,16,256], index: 7, kind: output, shape index: {}]  }
   0x1   :  { %s1024_s26 = smov 0   ;;  %s1026_s27 = smov 0  }
   0x2   :  { %s1028_s28 = smov 0   ;;  %s1030_s29 = smov 0  }
   0x3   :  { %s1032_s30 = smov 0  }
   0x4 LB: > { %s26_s8 = sadd.s32 1, %s965_s28  ;;  %s29_s9 = sadd.s32 1, %s969_s29  ;;  %s973_s30 = sphi %s1032_s30, %s17_s30   ;;  %s969_s29 = sphi %s1030_s29, %s1182_s29   ;;  %s965_s28 = sphi %s1028_s28, %s1181_s28   ;;  %s961_s27 = sphi %s1026_s27, %s1180_s27   ;;  %s957_s26 = sphi %s1024_s26, %s1179_s26   ;;  %s953_s25 = sphi %s1022_s25, %s1178_s25   ;;  %s949_s24 = sphi %s1020_s24, %s1177_s24  }
   0x5   : > { %p27_p0 = scmp.ge.s32.totalorder %s26_s8, 2  ;;  %s763_s10 = sadd.s32 4294967295, %s973_s30  }
   0x6   : > { %p202_p1 = scmp.ne.s32.totalorder %s953_s25, %s949_s24  ;;  %p203_p2 = scmp.eq.s32.totalorder %s763_s10, 3 }
   0x7   : > { %s1184_s8 = smov (%p27_p0, %s26_s8), 0  ;;  %s1186_s9 = smov (!%p27_p0, %s29_s9), %s969_s29 }
   0x8   : > { %s188_s11 = ssub.s32 %s965_s28, %s1184_s8  ;;  %p31_p3 = scmp.ge.s32.totalorder %s1186_s9, 2 }
   0x9   : > { %p767_p4 = scmp.ge.s32.totalorder %s973_s30, 1  ;;  %p1066_p5 = por %p203_p2, %p202_p1 }
   0xa   : > { %p257_p6 = scmp.lt.s32.totalorder %s973_s30, 5  ;;  %s1188_s9 = smov (%p31_p3, %s1186_s9), 0 }
   0xb   : > { %s187_s13 = ssub.s32 %s969_s29, %s1188_s9  ;;  %s192_s15 = sadd.s32 1, %s953_s25 }
   0xc   : > { %p258_p7 = pnand %p767_p4, %p257_p6  ;;  %s189_s14 = sor.u32 %s188_s11, %s187_s13 }
   0xd   : > { %p190_p8 = scmp.eq.s32.totalorder %s189_s14, 0  ;;  %p292_p9 = scmp.lt.s32.totalorder (!%p258_p7), %s961_s27, 1  ;;  %v975_v0 = vmov (!%p258_p7), 0.0   ;;  %vm976_vm0 = vmmov (!%p258_p7), 0   ;;  %v559_v13 = vld [vmem:[%s1170_s2] sm:$0xff] (!%p258_p7)  ;;  %v979_v14 = vmov (!%p258_p7), 0  }
   0xe   : > { %261 = sbr.rel (%p258_p7) target bundleno = 633 (0x279), region = 48  ;;  %p294_p10 = scmp.lt.s32.totalorder (!%p258_p7), %s957_s26, 1  ;;  %801 = vmatprep.subr.bf16.mxu0 (!%p258_p7), %v975_v0  ;;  %807 = vmatprep.subr.bf16.mxu1 (!%p258_p7), %v975_v0  ;;  %v311_v15 = vld [vmem:[%s1174_s6 + $0x8] sm:$0xff] (!%p258_p7)  ;;  %v310_v18 = vld [vmem:[%s1174_s6] sm:$0xff] (!%p258_p7)  ;;  %vm333_vm1 = vcmask (!%p258_p7), 1022976   ;;  %vm336_vm2 = vcmask (!%p258_p7), 130048  }
   0xf   : > { %s1077_s16 = scalar_select %p190_p8, %s953_s25, %s192_s15  }
  0x10   : > { %803 = vmatprep.mubr.msk.bf16.mxu0 (!%p258_p7), %vm976_vm0, %v975_v0  ;;  %809 = vmatprep.mubr.msk.bf16.mxu1 (!%p258_p7), %vm976_vm0, %v975_v0  ;;  %s977_s13 = smov (!%p258_p7), 125   ;;  %s978_s14 = smov (!%p258_p7), 122   ;;  %v560_v16 = vld [vmem:[%s1170_s2 + $0x8] sm:$0xff] (!%p258_p7)  ;;  %v578_v19 = vld [vmem:[%s1172_s4] sm:$0xff] (!%p258_p7)  ;;  %vm510_vm3 = vcmask (!%p258_p7), 998400   ;;  %v905_v32 = vld [vmem:[%s1169_s1 + $0x10] sm:$0xff] (!%p258_p7)  }
  0x11   : > { %900 = vset.pattern.permute.xlu0 (!%p258_p7), %v979_v14  ;;  %901 = vset.pattern.permute.xlu1 (!%p258_p7), %v979_v14  ;;  %v579_v17 = vld [vmem:[%s1172_s4 + $0x8] sm:$0xff] (!%p258_p7)  ;;  %v902_v23 = vld [vmem:[%s1173_s5] sm:$0xff] (!%p258_p7)  }
  0x12   : > { %v904_v25 = vld [vmem:[%s1169_s1] sm:$0xff] (!%p258_p7)   ;;  %v903_v28 = vld [vmem:[%s1169_s1 + $0x8] sm:$0xff] (!%p258_p7)  }
  0x13   : > { %v906_v56 = vld [vmem:[%s1171_s3] sm:$0xff] (!%p258_p7)  }
  0x15   : > { %s293_s17 = scalar_select %p292_p9, %s961_s27, 1 }
  0x16   : > { %s295_s18 = scalar_select %p294_p10, %s957_s26, 1 }
  0x17   : > { %s770_s19 = sshll.u32 %s293_s17, 3 }
  0x18   : > { %s769_s20 = sshll.u32 %s295_s18, 2 }
  0x19   : > { %s298_s21 = sadd.s32 %s770_s19, %s769_s20 }
  0x1a   : > { %s771_s22 = sshll.u32 %s298_s21, 3 }
  0x1b   : > { %s300_s11 = scalar_lea.vmem %s1168_s0, %s771_s22 }
  0x1c   : > { %v302_v1 = vld [vmem:[%s300_s11] sm:$0xff]  ;;  %v304_v2 = vld [vmem:[%s300_s11 + $0x10] sm:$0xff]  ;;  %v303_v3 = vld [vmem:[%s300_s11 + $0x8] sm:$0xff] }
  0x1d   : > { %v306_v4 = vpack.c.bf16 %v304_v2, %v302_v1  ;;  %907 = vtanh.f32 %v302_v1  ;;  %v305_v5 = vld [vmem:[%s300_s11 + $0x18] sm:$0xff] }
  0x1e   : > { %909 = vtanh.f32 %v304_v2  ;;  %v307_v6 = vpack.c.bf16 %v305_v5, %v303_v3 }
  0x1f   : > { %329 = vrot.lane.b32.xlu0 %v306_v4, %s977_s13  ;;  %911 = vtanh.f32 %v303_v3 }
  0x20   : > { %913 = vtanh.f32 %v305_v5 }
  0x23   : > { %331 = vrot.lane.b32.xlu0 %v307_v6, %s977_s13 }
  0x27   : > { %v908_v7 = vpop.eup %907 }
  0x28   : > { %v910_v8 = vpop.eup %909 }
  0x29   : > { %v912_v9 = vpop.eup %911  ;;  %v385_v10 = vpack.c.bf16 %v910_v8, %v908_v7 }
  0x2a   : > { %v914_v11 = vpop.eup %913 }
  0x2b   : > { %399 = vrot.lane.b32.xlu1 %v385_v10, %s977_s13  ;;  %v386_v12 = vpack.c.bf16 %v914_v11, %v912_v9  ;;  %506 = vrot.lane.b32.xlu0 %v385_v10, %s978_s14 }
  0x2f   : > { %401 = vrot.lane.b32.xlu1 %v386_v12, %s977_s13  ;;  %563 = vperm.xlu0 %900, %v559_v13   ;;  %s289_s13 = sand.u32 1, %s949_s24   ;;  %s787_s24 = sshll.u32 (%p1066_p5), %s961_s27, 2 }
  0x30   : > { %s768_s15 = sshll.u32 %s289_s13, 4  ;;  %s651_s17 = sadd.s32 (%p1066_p5), %s957_s26, %s787_s24 }
  0x31   : > { %s788_s18 = sshll.u32 (%p1066_p5), %s651_s17, 3 }
  0x32   : > { %s653_s21 = scalar_lea.vmem (%p1066_p5), %s1175_s7, %s788_s18 }
  0x33   : > { %508 = vrot.lane.b32.xlu1 %v386_v12, %s978_s14  ;;  %319 = vperm.xlu0 %900, %v311_v15   ;;  %s291_s14 = scalar_lea.vmem [#allocation2], %s768_s15 }
  0x37   : > { %568 = vperm.xlu1 %901, %v560_v16   ;;  %587 = vperm.xlu0 %900, %v579_v17  }
  0x3b   : > { %314 = vperm.xlu1 %901, %v310_v18  }
  0x3f   : > { %582 = vperm.xlu1 %901, %v578_v19  }
  0x91   : > { %v330_v20 = vpop.permute.xlu0 %329 }
  0x95   : > { %v332_v21 = vpop.permute.xlu0 %331 }
  0x96   : > { %v334_v22 = vsel %vm333_vm1, %v330_v20, %v332_v21 }
  0x97   : > { %802 = vmatpush3.bf16.msra.mxu0 %v334_v22 }
  0x98   : > { %813 = vmatprep.subr.bf16.mxu0 %v975_v0 }
  0x9a   : > { %804 = vmatmul.mubr.msk.bf16.vlgmr.msra.gmra.mrb[0].mxu0 %vm336_vm2, %v902_v23 }
  0x9b   : > { %814 = vmatpush3.bf16.msra.mxu0 %v385_v10  ;;  %815 = vmatprep.mubr.msk.bf16.mxu0 %vm976_vm0, %v975_v0 }
  0x9c   : > { %825 = vmatprep.subr.bf16.mxu0 %v975_v0 }
  0x9d   : > { %v400_v24 = vpop.permute.xlu1 %399  ;;  %v507_v29 = vpop.permute.xlu0 %506 }
  0xa1   : > { %v402_v26 = vpop.permute.xlu1 %401 }
  0xa2   : > { %v403_v27 = vsel %vm333_vm1, %v400_v24, %v402_v26  ;;  %816 = vmatmul.mubr.msk.bf16.vlgmr.msra.gmra.mrb[4].mxu0 %vm336_vm2, %v904_v25 }
  0xa3   : > { %808 = vmatpush3.bf16.msra.mxu1 %v403_v27  ;;  %827 = vmatprep.mubr.msk.bf16.mxu0 %vm976_vm0, %v975_v0 }
  0xa4   : > { %819 = vmatprep.subr.bf16.mxu1 %v975_v0 }
  0xa5   : > { %v509_v30 = vpop.permute.xlu1 %508 }
  0xa6   : > { %810 = vmatmul.mubr.msk.bf16.vlgmr.msra.gmra.mrb[0].mxu1 %vm336_vm2, %v903_v28  ;;  %v511_v31 = vsel %vm510_vm3, %v507_v29, %v509_v30 }
  0xa7   : > { %820 = vmatpush3.bf16.msra.mxu1 %v511_v31  ;;  %821 = vmatprep.mubr.msk.bf16.mxu1 %vm976_vm0, %v975_v0 }
  0xae   : > { %822 = vmatmul.mubr.msk.bf16.vlgmr.msra.gmra.mrb[4].mxu1 %vm336_vm2, %v905_v32  ;;  %v564_v46 = vpop.permute.xlu0 %563 }
  0xb2   : > { %v320_v58 = vpop.permute.xlu0 %319 }
  0xb6   : > { %v569_v51 = vpop.permute.xlu1 %568  ;;  %v588_v60 = vpop.permute.xlu0 %587 }
  0xb7   : > { %v833_v63 = vadd.f32 %v588_v60, %v320_v58 }
  0xba   : > { %v315_v57 = vpop.permute.xlu1 %314 }
  0xbe   : > { %v583_v59 = vpop.permute.xlu1 %582 }
  0xbf   : > { %v831_v61 = vadd.f32 %v583_v59, %v315_v57 }
 0x175   : > { %v491_v33 = vpop.f32.mrb[4].mxu0 }
 0x176   : > { %v817_v34 = vpop.f32.mrb[5].mxu0 }
 0x177   : > { %v494_v35 = vpop.f32.mrb[6].mxu0 }
 0x178   : > { %v818_v36 = vpop.f32.mrb[7].mxu0 }
 0x179   : > { %v442_v37 = vpop.f32.mrb[0].mxu1 }
 0x17a   : > { %v492_v38 = vadd.f32 %v491_v33, %v442_v37  ;;  %v811_v39 = vpop.f32.mrb[1].mxu1 }
 0x17b   : > { %v445_v40 = vpop.f32.mrb[2].mxu1 }
 0x17c   : > { %v495_v41 = vadd.f32 %v494_v35, %v445_v40  ;;  %v812_v42 = vpop.f32.mrb[3].mxu1 }
 0x181   : > { %v550_v43 = vpop.f32.mrb[4].mxu1 }
 0x182   : > { %v557_v44 = vadd.f32 %v550_v43, %v492_v38  ;;  %v823_v45 = vpop.f32.mrb[5].mxu1 }
 0x183   : > { %v553_v47 = vpop.f32.mrb[6].mxu1 }
 0x184   : > { %v571_v48 = vadd.f32 %v564_v46, %v557_v44  ;;  %v558_v49 = vadd.f32 %v553_v47, %v495_v41  ;;  %v824_v50 = vpop.f32.mrb[7].mxu1 }
 0x186   : > { %v572_v52 = vadd.f32 %v569_v51, %v558_v49  ;;  %915 = vtanh.f32 %v571_v48 }
 0x188   : > { %917 = vtanh.f32 %v572_v52 }
 0x190   : > { %v916_v53 = vpop.eup %915 }
 0x192   : > { %v918_v54 = vpop.eup %917 }
 0x193   : > { %v575_v55 = vpack.c.bf16 %v918_v54, %v916_v53 }
 0x195   : > { %826 = vmatpush3.bf16.msra.mxu0 %v575_v55 }
 0x198   : > { %828 = vmatmul.mubr.msk.bf16.vlgmr.msra.gmra.mrb[0].mxu0 %vm336_vm2, %v906_v56 }
 0x26a   : > { %649 = sbr.rel (!%p1066_p5) target bundleno = 633 (0x279), region = 52 }
 0x26b   : > { %v632_v62 = vpop.f32.mrb[0].mxu0 }
 0x26c   : > { %v832_v0 = vadd.f32 %v831_v61, %v632_v62  ;;  %v829_v1 = vpop.f32.mrb[1].mxu0 }
 0x26d   : > { %v635_v2 = vpop.f32.mrb[2].mxu0 }
 0x26e   : > { %641 = vst [vmem:[%s291_s14] sm:$0xff] %v832_v0  ;;  %v834_v3 = vadd.f32 %v833_v63, %v635_v2  ;;  %v830_v4 = vpop.f32.mrb[3].mxu0 }
 0x270   : > { %642 = vst [vmem:[%s291_s14 + $0x8] sm:$0xff] %v834_v3 }
 0x275   : > { %v683_v5 = vld [vmem:[%s291_s14] sm:$0xff] }
 0x276   : > { %684 = vst [vmem:[%s653_s21] sm:$0xff] %v683_v5 }
 0x277   : > { %v685_v6 = vld [vmem:[%s291_s14 + $0x8] sm:$0xff] }
 0x278   : > { %686 = vst [vmem:[%s653_s21 + $0x10] sm:$0xff] %v685_v6 }
 0x279 PF: > { %s17_s30 = sadd.s32 1, %s973_s30   ;;  %s1177_s24 = smov %s953_s25 }
 0x27a   : > { %p14_p11 = scmp.ge.s32.totalorder %s17_s30, 6   ;;  %s1178_s25 = smov %s1077_s16 }
 0x27b   : > { %s1179_s26 = smov %s965_s28  ;;  %s1180_s27 = smov %s969_s29 }
 0x27c   : > { %s1181_s28 = smov %s1184_s8  ;;  %s1182_s29 = smov %s1188_s9 }
 0x27d   :  { %16 = sbr.rel (!%p14_p11) target bundleno = 4 (0x4), region = 118 }

// kernel: forward_pallas.19
= control target key start
LH: loop header
LB: loop body
LE: loop exit
PB: predicated region body
PF: predicated region fallthrough
CT: control target
= control target key end

     0   :  { %s1020_s24 = smov 0   ;;  %s1022_s25 = smov 0   ;;  %s1168_s0 = inlined_call_operand.vmem [shape: f32[2,2,16,130], index: 0, kind: input, shape index: {}]   ;;  %s1169_s1 = inlined_call_operand.vmem [shape: bf16[3,16,16], index: 1, kind: input, shape index: {}]   ;;  %s1170_s2 = inlined_call_operand.vmem [shape: f32[16,1], index: 2, kind: input, shape index: {}]   ;;  %s1171_s3 = inlined_call_operand.vmem [shape: bf16[16,16], index: 3, kind: input, shape index: {}]   ;;  %s1172_s4 = inlined_call_operand.vmem [shape: f32[16,1], index: 4, kind: input, shape index: {}]   ;;  %s1173_s5 = inlined_call_operand.vmem [shape: bf16[16,16], index: 5, kind: input, shape index: {}]   ;;  %s1174_s6 = inlined_call_operand.vmem [shape: f32[16,1], index: 6, kind: input, shape index: {}]   ;;  %s1175_s7 = inlined_call_operand.vmem [shape: f32[2,16,256], index: 7, kind: output, shape index: {}]  }
   0x1   :  { %s1024_s26 = smov 0   ;;  %s1026_s27 = smov 0  }
   0x2   :  { %s1028_s28 = smov 0   ;;  %s1030_s29 = smov 0  }
   0x3   :  { %s1032_s30 = smov 0  }
   0x4 LB: > { %s26_s8 = sadd.s32 1, %s965_s28  ;;  %s29_s9 = sadd.s32 1, %s969_s29  ;;  %s973_s30 = sphi %s1032_s30, %s17_s30   ;;  %s969_s29 = sphi %s1030_s29, %s1182_s29   ;;  %s965_s28 = sphi %s1028_s28, %s1181_s28   ;;  %s961_s27 = sphi %s1026_s27, %s1180_s27   ;;  %s957_s26 = sphi %s1024_s26, %s1179_s26   ;;  %s953_s25 = sphi %s1022_s25, %s1178_s25   ;;  %s949_s24 = sphi %s1020_s24, %s1177_s24  }
   0x5   : > { %p27_p0 = scmp.ge.s32.totalorder %s26_s8, 2  ;;  %s763_s10 = sadd.s32 4294967295, %s973_s30  }
   0x6   : > { %p202_p1 = scmp.ne.s32.totalorder %s953_s25, %s949_s24  ;;  %p203_p2 = scmp.eq.s32.totalorder %s763_s10, 3 }
   0x7   : > { %s1184_s8 = smov (%p27_p0, %s26_s8), 0  ;;  %s1186_s9 = smov (!%p27_p0, %s29_s9), %s969_s29 }
   0x8   : > { %s188_s11 = ssub.s32 %s965_s28, %s1184_s8  ;;  %p31_p3 = scmp.ge.s32.totalorder %s1186_s9, 2 }
   0x9   : > { %p767_p4 = scmp.ge.s32.totalorder %s973_s30, 1  ;;  %p1066_p5 = por %p203_p2, %p202_p1 }
   0xa   : > { %p257_p6 = scmp.lt.s32.totalorder %s973_s30, 5  ;;  %s1188_s9 = smov (%p31_p3, %s1186_s9), 0 }
   0xb   : > { %s187_s13 = ssub.s32 %s969_s29, %s1188_s9  ;;  %s192_s15 = sadd.s32 1, %s953_s25 }
   0xc   : > { %p258_p7 = pnand %p767_p4, %p257_p6  ;;  %s189_s14 = sor.u32 %s188_s11, %s187_s13 }
   0xd   : > { %p190_p8 = scmp.eq.s32.totalorder %s189_s14, 0  ;;  %p292_p9 = scmp.lt.s32.totalorder (!%p258_p7), %s961_s27, 1  ;;  %v975_v0 = vmov (!%p258_p7), 0.0   ;;  %vm976_vm0 = vmmov (!%p258_p7), 0   ;;  %v559_v13 = vld [vmem:[%s1170_s2] sm:$0xff] (!%p258_p7)  ;;  %v979_v14 = vmov (!%p258_p7), 0  }
   0xe   : > { %261 = sbr.rel (%p258_p7) target bundleno = 633 (0x279), region = 48  ;;  %p294_p10 = scmp.lt.s32.totalorder (!%p258_p7), %s957_s26, 1  ;;  %801 = vmatprep.subr.bf16.mxu0 (!%p258_p7), %v975_v0  ;;  %807 = vmatprep.subr.bf16.mxu1 (!%p258_p7), %v975_v0  ;;  %v311_v15 = vld [vmem:[%s1174_s6 + $0x8] sm:$0xff] (!%p258_p7)  ;;  %v310_v18 = vld [vmem:[%s1174_s6] sm:$0xff] (!%p258_p7)  ;;  %vm333_vm1 = vcmask (!%p258_p7), 1039360   ;;  %vm336_vm2 = vcmask (!%p258_p7), 130048  }
   0xf   : > { %s1077_s16 = scalar_select %p190_p8, %s953_s25, %s192_s15  }
  0x10   : > { %803 = vmatprep.mubr.msk.bf16.mxu0 (!%p258_p7), %vm976_vm0, %v975_v0  ;;  %809 = vmatprep.mubr.msk.bf16.mxu1 (!%p258_p7), %vm976_vm0, %v975_v0  ;;  %s977_s13 = smov (!%p258_p7), 127   ;;  %s978_s14 = smov (!%p258_p7), 126   ;;  %v560_v16 = vld [vmem:[%s1170_s2 + $0x8] sm:$0xff] (!%p258_p7)  ;;  %v578_v19 = vld [vmem:[%s1172_s4] sm:$0xff] (!%p258_p7)  ;;  %vm510_vm3 = vcmask (!%p258_p7), 1031168   ;;  %v905_v32 = vld [vmem:[%s1169_s1 + $0x10] sm:$0xff] (!%p258_p7)  }
  0x11   : > { %900 = vset.pattern.permute.xlu0 (!%p258_p7), %v979_v14  ;;  %901 = vset.pattern.permute.xlu1 (!%p258_p7), %v979_v14  ;;  %v579_v17 = vld [vmem:[%s1172_s4 + $0x8] sm:$0xff] (!%p258_p7)  ;;  %v902_v23 = vld [vmem:[%s1173_s5] sm:$0xff] (!%p258_p7)  }
  0x12   : > { %v904_v25 = vld [vmem:[%s1169_s1] sm:$0xff] (!%p258_p7)   ;;  %v903_v28 = vld [vmem:[%s1169_s1 + $0x8] sm:$0xff] (!%p258_p7)  }
  0x13   : > { %v906_v56 = vld [vmem:[%s1171_s3] sm:$0xff] (!%p258_p7)  }
  0x15   : > { %s293_s17 = scalar_select %p292_p9, %s961_s27, 1 }
  0x16   : > { %s295_s18 = scalar_select %p294_p10, %s957_s26, 1 }
  0x17   : > { %s770_s19 = sshll.u32 %s293_s17, 3 }
  0x18   : > { %s769_s20 = sshll.u32 %s295_s18, 2 }
  0x19   : > { %s298_s21 = sadd.s32 %s770_s19, %s769_s20 }
  0x1a   : > { %s771_s22 = sshll.u32 %s298_s21, 3 }
  0x1b   : > { %s300_s11 = scalar_lea.vmem %s1168_s0, %s771_s22 }
  0x1c   : > { %v302_v1 = vld [vmem:[%s300_s11] sm:$0xff]  ;;  %v304_v2 = vld [vmem:[%s300_s11 + $0x10] sm:$0xff]  ;;  %v303_v3 = vld [vmem:[%s300_s11 + $0x8] sm:$0xff] }
  0x1d   : > { %v306_v4 = vpack.c.bf16 %v304_v2, %v302_v1  ;;  %907 = vtanh.f32 %v302_v1  ;;  %v305_v5 = vld [vmem:[%s300_s11 + $0x18] sm:$0xff] }
  0x1e   : > { %909 = vtanh.f32 %v304_v2  ;;  %v307_v6 = vpack.c.bf16 %v305_v5, %v303_v3 }
  0x1f   : > { %329 = vrot.lane.b32.xlu0 %v306_v4, %s977_s13  ;;  %911 = vtanh.f32 %v303_v3 }
  0x20   : > { %913 = vtanh.f32 %v305_v5 }
  0x23   : > { %331 = vrot.lane.b32.xlu0 %v307_v6, %s977_s13 }
  0x27   : > { %v908_v7 = vpop.eup %907 }
  0x28   : > { %v910_v8 = vpop.eup %909 }
  0x29   : > { %v912_v9 = vpop.eup %911  ;;  %v385_v10 = vpack.c.bf16 %v910_v8, %v908_v7 }
  0x2a   : > { %v914_v11 = vpop.eup %913 }
  0x2b   : > { %399 = vrot.lane.b32.xlu1 %v385_v10, %s977_s13  ;;  %v386_v12 = vpack.c.bf16 %v914_v11, %v912_v9  ;;  %506 = vrot.lane.b32.xlu0 %v385_v10, %s978_s14 }
  0x2f   : > { %401 = vrot.lane.b32.xlu1 %v386_v12, %s977_s13  ;;  %563 = vperm.xlu0 %900, %v559_v13   ;;  %s289_s13 = sand.u32 1, %s949_s24   ;;  %s787_s24 = sshll.u32 (%p1066_p5), %s961_s27, 2 }
  0x30   : > { %s768_s15 = sshll.u32 %s289_s13, 4  ;;  %s651_s17 = sadd.s32 (%p1066_p5), %s957_s26, %s787_s24 }
  0x31   : > { %s788_s18 = sshll.u32 (%p1066_p5), %s651_s17, 3 }
  0x32   : > { %s653_s21 = scalar_lea.vmem (%p1066_p5), %s1175_s7, %s788_s18 }
  0x33   : > { %508 = vrot.lane.b32.xlu1 %v386_v12, %s978_s14  ;;  %319 = vperm.xlu0 %900, %v311_v15   ;;  %s291_s14 = scalar_lea.vmem [#allocation2], %s768_s15 }
  0x37   : > { %568 = vperm.xlu1 %901, %v560_v16   ;;  %587 = vperm.xlu0 %900, %v579_v17  }
  0x3b   : > { %314 = vperm.xlu1 %901, %v310_v18  }
  0x3f   : > { %582 = vperm.xlu1 %901, %v578_v19  }
  0x91   : > { %v330_v20 = vpop.permute.xlu0 %329 }
  0x95   : > { %v332_v21 = vpop.permute.xlu0 %331 }
  0x96   : > { %v334_v22 = vsel %vm333_vm1, %v330_v20, %v332_v21 }
  0x97   : > { %802 = vmatpush3.bf16.msra.mxu0 %v334_v22 }
  0x98   : > { %813 = vmatprep.subr.bf16.mxu0 %v975_v0 }
  0x9a   : > { %804 = vmatmul.mubr.msk.bf16.vlgmr.msra.gmra.mrb[0].mxu0 %vm336_vm2, %v902_v23 }
  0x9b   : > { %814 = vmatpush3.bf16.msra.mxu0 %v385_v10  ;;  %815 = vmatprep.mubr.msk.bf16.mxu0 %vm976_vm0, %v975_v0 }
  0x9c   : > { %825 = vmatprep.subr.bf16.mxu0 %v975_v0 }
  0x9d   : > { %v400_v24 = vpop.permute.xlu1 %399  ;;  %v507_v29 = vpop.permute.xlu0 %506 }
  0xa1   : > { %v402_v26 = vpop.permute.xlu1 %401 }
  0xa2   : > { %v403_v27 = vsel %vm333_vm1, %v400_v24, %v402_v26  ;;  %816 = vmatmul.mubr.msk.bf16.vlgmr.msra.gmra.mrb[4].mxu0 %vm336_vm2, %v904_v25 }
  0xa3   : > { %808 = vmatpush3.bf16.msra.mxu1 %v403_v27  ;;  %827 = vmatprep.mubr.msk.bf16.mxu0 %vm976_vm0, %v975_v0 }
  0xa4   : > { %819 = vmatprep.subr.bf16.mxu1 %v975_v0 }
  0xa5   : > { %v509_v30 = vpop.permute.xlu1 %508 }
  0xa6   : > { %810 = vmatmul.mubr.msk.bf16.vlgmr.msra.gmra.mrb[0].mxu1 %vm336_vm2, %v903_v28  ;;  %v511_v31 = vsel %vm510_vm3, %v507_v29, %v509_v30 }
  0xa7   : > { %820 = vmatpush3.bf16.msra.mxu1 %v511_v31  ;;  %821 = vmatprep.mubr.msk.bf16.mxu1 %vm976_vm0, %v975_v0 }
  0xae   : > { %822 = vmatmul.mubr.msk.bf16.vlgmr.msra.gmra.mrb[4].mxu1 %vm336_vm2, %v905_v32  ;;  %v564_v46 = vpop.permute.xlu0 %563 }
  0xb2   : > { %v320_v58 = vpop.permute.xlu0 %319 }
  0xb6   : > { %v569_v51 = vpop.permute.xlu1 %568  ;;  %v588_v60 = vpop.permute.xlu0 %587 }
  0xb7   : > { %v833_v63 = vadd.f32 %v588_v60, %v320_v58 }
  0xba   : > { %v315_v57 = vpop.permute.xlu1 %314 }
  0xbe   : > { %v583_v59 = vpop.permute.xlu1 %582 }
  0xbf   : > { %v831_v61 = vadd.f32 %v583_v59, %v315_v57 }
 0x175   : > { %v491_v33 = vpop.f32.mrb[4].mxu0 }
 0x176   : > { %v817_v34 = vpop.f32.mrb[5].mxu0 }
 0x177   : > { %v494_v35 = vpop.f32.mrb[6].mxu0 }
 0x178   : > { %v818_v36 = vpop.f32.mrb[7].mxu0 }
 0x179   : > { %v442_v37 = vpop.f32.mrb[0].mxu1 }
 0x17a   : > { %v492_v38 = vadd.f32 %v491_v33, %v442_v37  ;;  %v811_v39 = vpop.f32.mrb[1].mxu1 }
 0x17b   : > { %v445_v40 = vpop.f32.mrb[2].mxu1 }
 0x17c   : > { %v495_v41 = vadd.f32 %v494_v35, %v445_v40  ;;  %v812_v42 = vpop.f32.mrb[3].mxu1 }
 0x181   : > { %v550_v43 = vpop.f32.mrb[4].mxu1 }
 0x182   : > { %v557_v44 = vadd.f32 %v550_v43, %v492_v38  ;;  %v823_v45 = vpop.f32.mrb[5].mxu1 }
 0x183   : > { %v553_v47 = vpop.f32.mrb[6].mxu1 }
 0x184   : > { %v571_v48 = vadd.f32 %v564_v46, %v557_v44  ;;  %v558_v49 = vadd.f32 %v553_v47, %v495_v41  ;;  %v824_v50 = vpop.f32.mrb[7].mxu1 }
 0x186   : > { %v572_v52 = vadd.f32 %v569_v51, %v558_v49  ;;  %915 = vtanh.f32 %v571_v48 }
 0x188   : > { %917 = vtanh.f32 %v572_v52 }
 0x190   : > { %v916_v53 = vpop.eup %915 }
 0x192   : > { %v918_v54 = vpop.eup %917 }
 0x193   : > { %v575_v55 = vpack.c.bf16 %v918_v54, %v916_v53 }
 0x195   : > { %826 = vmatpush3.bf16.msra.mxu0 %v575_v55 }
 0x198   : > { %828 = vmatmul.mubr.msk.bf16.vlgmr.msra.gmra.mrb[0].mxu0 %vm336_vm2, %v906_v56 }
 0x26a   : > { %649 = sbr.rel (!%p1066_p5) target bundleno = 633 (0x279), region = 52 }
 0x26b   : > { %v632_v62 = vpop.f32.mrb[0].mxu0 }
 0x26c   : > { %v832_v0 = vadd.f32 %v831_v61, %v632_v62  ;;  %v829_v1 = vpop.f32.mrb[1].mxu0 }
 0x26d   : > { %v635_v2 = vpop.f32.mrb[2].mxu0 }
 0x26e   : > { %641 = vst [vmem:[%s291_s14] sm:$0xff] %v832_v0  ;;  %v834_v3 = vadd.f32 %v833_v63, %v635_v2  ;;  %v830_v4 = vpop.f32.mrb[3].mxu0 }
 0x270   : > { %642 = vst [vmem:[%s291_s14 + $0x8] sm:$0xff] %v834_v3 }
 0x275   : > { %v683_v5 = vld [vmem:[%s291_s14] sm:$0xff] }
 0x276   : > { %684 = vst [vmem:[%s653_s21] sm:$0xff] %v683_v5 }
 0x277   : > { %v685_v6 = vld [vmem:[%s291_s14 + $0x8] sm:$0xff] }
 0x278   : > { %686 = vst [vmem:[%s653_s21 + $0x10] sm:$0xff] %v685_v6 }
 0x279 PF: > { %s17_s30 = sadd.s32 1, %s973_s30   ;;  %s1177_s24 = smov %s953_s25 }
 0x27a   : > { %p14_p11 = scmp.ge.s32.totalorder %s17_s30, 6   ;;  %s1178_s25 = smov %s1077_s16 }
 0x27b   : > { %s1179_s26 = smov %s965_s28  ;;  %s1180_s27 = smov %s969_s29 }
 0x27c   : > { %s1181_s28 = smov %s1184_s8  ;;  %s1182_s29 = smov %s1188_s9 }
 0x27d   :  { %16 = sbr.rel (!%p14_p11) target bundleno = 4 (0x4), region = 118 }

// kernel: forward_pallas.20
= control target key start
LH: loop header
LB: loop body
LE: loop exit
PB: predicated region body
PF: predicated region fallthrough
CT: control target
= control target key end

     0   :  { %s660_s12 = smov 0   ;;  %s662_s13 = smov 0   ;;  %s725_s0 = inlined_call_operand.vmem [shape: f32[2,1,32,129], index: 0, kind: input, shape index: {}]   ;;  %s726_s1 = inlined_call_operand.vmem [shape: bf16[2,32,32], index: 1, kind: input, shape index: {}]   ;;  %s727_s2 = inlined_call_operand.vmem [shape: f32[32,1], index: 2, kind: input, shape index: {}]   ;;  %s728_s3 = inlined_call_operand.vmem [shape: f32[2,32,128], index: 3, kind: output, shape index: {}]  }
   0x1   :  { %s664_s14 = smov 0  }
   0x2 LB: > { %s25_s15 = sadd.s32 1, %s632_s13  ;;  %p509_p0 = scmp.ge.s32.totalorder %s636_s14, 1  ;;  %s636_s14 = sphi %s664_s14, %s13_s14   ;;  %s632_s13 = sphi %s662_s13, %s730_s13   ;;  %s628_s12 = sphi %s660_s12, %s729_s12  }
   0x3   : > { %p27_p1 = scmp.ge.s32.totalorder %s25_s15, 2  ;;  %p157_p2 = scmp.lt.s32.totalorder %s636_s14, 3 }
   0x5   : > { %s732_s15 = smov (%p27_p1, %s25_s15), 0  ;;  %p158_p3 = pnand %p509_p0, %p157_p2 }
   0x6   : > { %p188_p4 = scmp.lt.s32.totalorder (!%p158_p3), %s628_s12, 1  ;;  %vm262_vm0 = vcmask (!%p158_p3), 261120   ;;  %v586_v9 = vld [vmem:[%s726_s1] sm:$0xff] (!%p158_p3)   ;;  %v588_v14 = vld [vmem:[%s726_s1 + $0x10] sm:$0xff] (!%p158_p3)   ;;  %s638_s24 = smov (!%p158_p3), 127   ;;  %v639_v21 = vmov (!%p158_p3), 0  }
   0x7   : > { %161 = sbr.rel (%p158_p3) target bundleno = 393 (0x189), region = 32  ;;  %550 = vmatprep.mubr.msk.bf16.mxu0 (!%p158_p3), %vm262_vm0, %v586_v9  ;;  %542 = vmatprep.mubr.msk.bf16.mxu1 (!%p158_p3), %vm262_vm0, %v588_v14  ;;  %v384_v23 = vld [vmem:[%s727_s2 + $0x8] sm:$0xff] (!%p158_p3)  ;;  %v383_v25 = vld [vmem:[%s727_s2] sm:$0xff] (!%p158_p3)  ;;  %v385_v26 = vld [vmem:[%s727_s2 + $0x10] sm:$0xff] (!%p158_p3)  ;;  %vm257_vm1 = vcmask (!%p158_p3), 1039360  }
   0x8   : > { %585 = vset.pattern.permute.xlu1 (!%p158_p3), %v639_v21  ;;  %584 = vset.pattern.permute.xlu0 (!%p158_p3), %v639_v21  ;;  %v587_v24 = vld [vmem:[%s726_s1 + $0x8] sm:$0xff] (!%p158_p3)   ;;  %v386_v27 = vld [vmem:[%s727_s2 + $0x18] sm:$0xff] (!%p158_p3) }
   0x9   : > { %v589_v34 = vld [vmem:[%s726_s1 + $0x18] sm:$0xff] (!%p158_p3)  }
   0xe   : > { %s734_s12 = smov (!%p188_p4, %s628_s12), 1 }
   0xf   : > { %s528_s16 = sshll.u32 %s734_s12, 6  ;;  %s529_s10 = sshll.u32 %s734_s12, 5 }
  0x10   : > { %s196_s19 = scalar_lea.vmem %s725_s0, %s528_s16  ;;  %s204_s17 = scalar_lea.vmem %s728_s3, %s529_s10 }
  0x11   : > { %v210_v0 = vld [vmem:[%s196_s19 + $0x20] sm:$0xff]  ;;  %v212_v1 = vld [vmem:[%s196_s19 + $0x30] sm:$0xff]  ;;  %v211_v4 = vld [vmem:[%s196_s19 + $0x28] sm:$0xff] }
  0x12   : > { %v206_v2 = vld [vmem:[%s196_s19] sm:$0xff]  ;;  %590 = vtanh.f32 %v210_v0  ;;  %v208_v3 = vld [vmem:[%s196_s19 + $0x10] sm:$0xff]  ;;  %v213_v5 = vld [vmem:[%s196_s19 + $0x38] sm:$0xff] }
  0x13   : > { %592 = vtanh.f32 %v212_v1  ;;  %v207_v6 = vld [vmem:[%s196_s19 + $0x8] sm:$0xff]  ;;  %v209_v7 = vld [vmem:[%s196_s19 + $0x18] sm:$0xff] }
  0x14   : > { %594 = vtanh.f32 %v206_v2 }
  0x15   : > { %596 = vtanh.f32 %v208_v3 }
  0x16   : > { %598 = vtanh.f32 %v211_v4 }
  0x17   : > { %600 = vtanh.f32 %v213_v5 }
  0x18   : > { %602 = vtanh.f32 %v207_v6 }
  0x19   : > { %604 = vtanh.f32 %v209_v7 }
  0x1c   : > { %v591_v8 = vpop.eup %590 }
  0x1d   : > { %v593_v10 = vpop.eup %592 }
  0x1e   : > { %v595_v11 = vpop.eup %594  ;;  %v224_v12 = vpack.c.bf16 %v593_v10, %v591_v8 }
  0x1f   : > { %v597_v13 = vpop.eup %596 }
  0x20   : > { %v599_v15 = vpop.eup %598  ;;  %253 = vrot.lane.b32.xlu1 %v224_v12, %s638_s24  ;;  %v222_v16 = vpack.c.bf16 %v597_v13, %v595_v11 }
  0x21   : > { %v601_v17 = vpop.eup %600 }
  0x22   : > { %v603_v18 = vpop.eup %602  ;;  %249 = vrot.lane.b32.xlu0 %v222_v16, %s638_s24  ;;  %v225_v19 = vpack.c.bf16 %v601_v17, %v599_v15  ;;  %546 = vmatprep.subr.bf16.mxu0 %v222_v16 }
  0x23   : > { %v605_v20 = vpop.eup %604  ;;  %547 = vmatpush3.bf16.msra.mxu0 %v222_v16 }
  0x24   : > { %255 = vrot.lane.b32.xlu1 %v225_v19, %s638_s24  ;;  %v223_v22 = vpack.c.bf16 %v605_v20, %v603_v18  ;;  %548 = vmatprep.subr.bf16.mxu0 %v224_v12 }
  0x26   : > { %251 = vrot.lane.b32.xlu0 %v223_v22, %s638_s24 }
  0x27   : > { %549 = vmatpush3.bf16.msra.mxu0 %v224_v12 }
  0x28   : > { %394 = vperm.xlu1 %585, %v384_v23  }
  0x2a   : > { %551 = vmatmul.mubr.msk.bf16.vlgmr.msra.gmra.mrb[0].mxu0 %vm262_vm0, %v587_v24  ;;  %389 = vperm.xlu0 %584, %v383_v25  }
  0x2c   : > { %399 = vperm.xlu1 %585, %v385_v26  }
  0x2e   : > { %404 = vperm.xlu0 %584, %v386_v27  }
  0x92   : > { %v254_v28 = vpop.permute.xlu1 %253 }
  0x94   : > { %v250_v29 = vpop.permute.xlu0 %249 }
  0x96   : > { %v256_v30 = vpop.permute.xlu1 %255 }
  0x97   : > { %v259_v33 = vsel %vm257_vm1, %v254_v28, %v256_v30 }
  0x98   : > { %v252_v31 = vpop.permute.xlu0 %251 }
  0x99   : > { %v258_v32 = vsel %vm257_vm1, %v250_v29, %v252_v31 }
  0x9a   : > { %538 = vmatprep.subr.bf16.mxu1 %v258_v32 }
  0x9b   : > { %539 = vmatpush3.bf16.msra.mxu1 %v258_v32 }
  0x9c   : > { %540 = vmatprep.subr.bf16.mxu1 %v259_v33 }
  0x9f   : > { %541 = vmatpush3.bf16.msra.mxu1 %v259_v33 }
  0xa2   : > { %543 = vmatmul.mubr.msk.bf16.vlgmr.msra.gmra.mrb[0].mxu1 %vm262_vm0, %v589_v34 }
  0xa7   : > { %v395_v39 = vpop.permute.xlu1 %394 }
  0xa9   : > { %v390_v40 = vpop.permute.xlu0 %389 }
  0xab   : > { %v400_v42 = vpop.permute.xlu1 %399 }
  0xad   : > { %v405_v51 = vpop.permute.xlu0 %404 }
  0xfd   : > { %v552_v35 = vpop.f32.mrb[0].mxu0 }
  0xfe   : > { %v368_v36 = vpop.f32.mrb[1].mxu0 }
  0xff   : > { %v553_v37 = vpop.f32.mrb[2].mxu0 }
 0x100   : > { %v371_v38 = vpop.f32.mrb[3].mxu0 }
 0x175   : > { %v544_v41 = vpop.f32.mrb[0].mxu1 }
 0x176   : > { %v377_v43 = vadd.f32 %v552_v35, %v544_v41  ;;  %v303_v44 = vpop.f32.mrb[1].mxu1 }
 0x177   : > { %v369_v45 = vadd.f32 %v368_v36, %v303_v44  ;;  %v545_v46 = vpop.f32.mrb[2].mxu1 }
 0x178   : > { %v409_v47 = vadd.f32 %v400_v42, %v377_v43  ;;  %v380_v48 = vadd.f32 %v553_v37, %v545_v46  ;;  %v306_v49 = vpop.f32.mrb[3].mxu1 }
 0x179   : > { %v407_v50 = vadd.f32 %v390_v40, %v369_v45  ;;  %v372_v52 = vadd.f32 %v371_v38, %v306_v49 }
 0x17a   : > { %606 = vtanh.f32 %v409_v47  ;;  %v410_v53 = vadd.f32 %v405_v51, %v380_v48 }
 0x17b   : > { %608 = vtanh.f32 %v407_v50  ;;  %v408_v54 = vadd.f32 %v395_v39, %v372_v52 }
 0x17c   : > { %610 = vtanh.f32 %v410_v53 }
 0x17d   : > { %612 = vtanh.f32 %v408_v54 }
 0x184   : > { %v607_v55 = vpop.eup %606 }
 0x185   : > { %v609_v56 = vpop.eup %608  ;;  %417 = vst [vmem:[%s204_s17 + $0x10] sm:$0xff] %v607_v55 }
 0x186   : > { %v611_v57 = vpop.eup %610  ;;  %415 = vst [vmem:[%s204_s17] sm:$0xff] %v609_v56 }
 0x187   : > { %v613_v58 = vpop.eup %612  ;;  %418 = vst [vmem:[%s204_s17 + $0x18] sm:$0xff] %v611_v57 }
 0x188   : > { %416 = vst [vmem:[%s204_s17 + $0x8] sm:$0xff] %v613_v58 }
 0x189 PF: > { %s13_s14 = sadd.s32 1, %s636_s14   ;;  %s729_s12 = smov %s632_s13 }
 0x18a   : > { %p10_p5 = scmp.ge.s32.totalorder %s13_s14, 4   ;;  %s730_s13 = smov %s732_s15 }
 0x18c   :  { %12 = sbr.rel (!%p10_p5) target bundleno = 2 (0x2), region = 63 }

// kernel: forward_pallas.21
= control target key start
LH: loop header
LB: loop body
LE: loop exit
PB: predicated region body
PF: predicated region fallthrough
CT: control target
= control target key end

     0   :  { %s756_s12 = smov 0   ;;  %s758_s13 = smov 0   ;;  %s831_s0 = inlined_call_operand.vmem [shape: f32[2,1,32,130], index: 0, kind: input, shape index: {}]   ;;  %s832_s1 = inlined_call_operand.vmem [shape: bf16[4,16,32], index: 1, kind: input, shape index: {}]   ;;  %s833_s2 = inlined_call_operand.vmem [shape: f32[16,1], index: 2, kind: input, shape index: {}]   ;;  %s834_s3 = inlined_call_operand.vmem [shape: f32[2,2,16,128], index: 3, kind: output, shape index: {}]  }
   0x1   :  { %s760_s14 = smov 0  }
   0x2 LB: > { %s25_s15 = sadd.s32 1, %s725_s13  ;;  %p587_p0 = scmp.ge.s32.totalorder %s729_s14, 1  ;;  %s729_s14 = sphi %s760_s14, %s13_s14   ;;  %s725_s13 = sphi %s758_s13, %s836_s13   ;;  %s721_s12 = sphi %s756_s12, %s835_s12  }
   0x3   : > { %p27_p1 = scmp.ge.s32.totalorder %s25_s15, 2  ;;  %p157_p2 = scmp.lt.s32.totalorder %s729_s14, 3 }
   0x5   : > { %s838_s15 = smov (%p27_p1, %s25_s15), 0  ;;  %p158_p3 = pnand %p587_p0, %p157_p2 }
   0x6   : > { %p188_p4 = scmp.lt.s32.totalorder (!%p158_p3), %s721_s12, 1  ;;  %v731_v0 = vmov (!%p158_p3), 0.0   ;;  %vm732_vm0 = vmmov (!%p158_p3), 0   ;;  %s733_s20 = smov (!%p158_p3), 127   ;;  %v687_v21 = vld [vmem:[%s832_s1] sm:$0xff] (!%p158_p3)   ;;  %vm253_vm1 = vcmask (!%p158_p3), 261120  }
   0x7   : > { %161 = sbr.rel (%p158_p3) target bundleno = 388 (0x184), region = 32  ;;  %632 = vmatprep.subr.bf16.mxu1 (!%p158_p3), %v731_v0  ;;  %624 = vmatprep.subr.bf16.mxu0 (!%p158_p3), %v731_v0  ;;  %s734_s23 = smov (!%p158_p3), 126   ;;  %v735_v22 = vmov (!%p158_p3), 0   ;;  %v348_v23 = vld [vmem:[%s833_s2 + $0x8] sm:$0xff] (!%p158_p3)  ;;  %v347_v24 = vld [vmem:[%s833_s2] sm:$0xff] (!%p158_p3)  ;;  %vm248_vm2 = vcmask (!%p158_p3), 1039360  }
   0x8   : > { %636 = vmatprep.mubr.msk.bf16.mxu1 (!%p158_p3), %vm732_vm0, %v731_v0  ;;  %628 = vmatprep.mubr.msk.bf16.mxu0 (!%p158_p3), %vm732_vm0, %v731_v0  ;;  %vm382_vm3 = vcmask (!%p158_p3), 1031168   ;;  %v688_v33 = vld [vmem:[%s832_s1 + $0x8] sm:$0xff] (!%p158_p3)   ;;  %v689_v34 = vld [vmem:[%s832_s1 + $0x10] sm:$0xff] (!%p158_p3)   ;;  %v690_v39 = vld [vmem:[%s832_s1 + $0x18] sm:$0xff] (!%p158_p3)  }
   0x9   : > { %685 = vset.pattern.permute.xlu0 (!%p158_p3), %v735_v22  ;;  %686 = vset.pattern.permute.xlu1 (!%p158_p3), %v735_v22 }
   0xe   : > { %s840_s12 = smov (!%p188_p4, %s721_s12), 1 }
   0xf   : > { %s610_s16 = sshll.u32 %s840_s12, 6  ;;  %s611_s7 = sshll.u32 %s840_s12, 5 }
  0x10   : > { %s196_s19 = scalar_lea.vmem %s831_s0, %s610_s16  ;;  %s204_s10 = scalar_lea.vmem %s834_s3, %s611_s7 }
  0x11   : > { %v210_v1 = vld [vmem:[%s196_s19 + $0x20] sm:$0xff]  ;;  %v212_v2 = vld [vmem:[%s196_s19 + $0x30] sm:$0xff]  ;;  %v211_v5 = vld [vmem:[%s196_s19 + $0x28] sm:$0xff] }
  0x12   : > { %v206_v3 = vld [vmem:[%s196_s19] sm:$0xff]  ;;  %691 = vtanh.f32 %v210_v1  ;;  %v208_v4 = vld [vmem:[%s196_s19 + $0x10] sm:$0xff]  ;;  %v213_v6 = vld [vmem:[%s196_s19 + $0x38] sm:$0xff] }
  0x13   : > { %693 = vtanh.f32 %v212_v2  ;;  %v207_v7 = vld [vmem:[%s196_s19 + $0x8] sm:$0xff]  ;;  %v209_v8 = vld [vmem:[%s196_s19 + $0x18] sm:$0xff] }
  0x14   : > { %695 = vtanh.f32 %v206_v3 }
  0x15   : > { %697 = vtanh.f32 %v208_v4 }
  0x16   : > { %699 = vtanh.f32 %v211_v5 }
  0x17   : > { %701 = vtanh.f32 %v213_v6 }
  0x18   : > { %703 = vtanh.f32 %v207_v7 }
  0x19   : > { %705 = vtanh.f32 %v209_v8 }
  0x1c   : > { %v692_v9 = vpop.eup %691 }
  0x1d   : > { %v694_v10 = vpop.eup %693 }
  0x1e   : > { %v696_v11 = vpop.eup %695  ;;  %v224_v12 = vpack.c.bf16 %v694_v10, %v692_v9 }
  0x1f   : > { %v698_v13 = vpop.eup %697 }
  0x20   : > { %v700_v14 = vpop.eup %699  ;;  %244 = vrot.lane.b32.xlu1 %v224_v12, %s733_s20  ;;  %v222_v15 = vpack.c.bf16 %v698_v13, %v696_v11 }
  0x21   : > { %v702_v16 = vpop.eup %701 }
  0x22   : > { %v704_v17 = vpop.eup %703  ;;  %240 = vrot.lane.b32.xlu0 %v222_v15, %s733_s20  ;;  %v225_v18 = vpack.c.bf16 %v702_v16, %v700_v14  ;;  %633 = vmatpush3.bf16.msra.mxu1 %v222_v15 }
  0x23   : > { %v706_v19 = vpop.eup %705  ;;  %634 = vmatprep.subr.bf16.mxu1 %v731_v0 }
  0x24   : > { %246 = vrot.lane.b32.xlu1 %v225_v18, %s733_s20  ;;  %v223_v20 = vpack.c.bf16 %v706_v19, %v704_v17 }
  0x26   : > { %242 = vrot.lane.b32.xlu0 %v223_v20, %s733_s20  ;;  %635 = vmatpush3.bf16.msra.mxu1 %v224_v12 }
  0x27   : > { %648 = vmatprep.subr.bf16.mxu1 %v731_v0 }
  0x28   : > { %376 = vrot.lane.b32.xlu1 %v223_v20, %s734_s23 }
  0x29   : > { %637 = vmatmul.mubr.msk.bf16.vlgmr.msra.gmra.mrb[0].mxu1 %vm253_vm1, %v687_v21 }
  0x2a   : > { %374 = vrot.lane.b32.xlu0 %v222_v15, %s734_s23  ;;  %652 = vmatprep.mubr.msk.bf16.mxu1 %vm732_vm0, %v731_v0 }
  0x2c   : > { %380 = vrot.lane.b32.xlu1 %v225_v18, %s734_s23 }
  0x2e   : > { %378 = vrot.lane.b32.xlu0 %v224_v12, %s734_s23 }
  0x30   : > { %356 = vperm.xlu1 %686, %v348_v23  }
  0x32   : > { %351 = vperm.xlu0 %685, %v347_v24  }
  0x34   : > { %484 = vperm.xlu1 %686, %v347_v24  }
  0x36   : > { %489 = vperm.xlu0 %685, %v348_v23  }
  0x92   : > { %v245_v25 = vpop.permute.xlu1 %244 }
  0x94   : > { %v241_v26 = vpop.permute.xlu0 %240 }
  0x96   : > { %v247_v27 = vpop.permute.xlu1 %246 }
  0x97   : > { %v250_v32 = vsel %vm248_vm2, %v245_v25, %v247_v27 }
  0x98   : > { %v243_v28 = vpop.permute.xlu0 %242 }
  0x99   : > { %v249_v29 = vsel %vm248_vm2, %v241_v26, %v243_v28 }
  0x9a   : > { %625 = vmatpush3.bf16.msra.mxu0 %v249_v29  ;;  %649 = vmatpush3.bf16.msra.mxu1 %v249_v29  ;;  %v377_v30 = vpop.permute.xlu1 %376 }
  0x9b   : > { %626 = vmatprep.subr.bf16.mxu0 %v731_v0  ;;  %650 = vmatprep.subr.bf16.mxu1 %v731_v0 }
  0x9c   : > { %v375_v31 = vpop.permute.xlu0 %374 }
  0x9d   : > { %v383_v35 = vsel %vm382_vm3, %v375_v31, %v377_v30 }
  0x9e   : > { %627 = vmatpush3.bf16.msra.mxu0 %v250_v32  ;;  %651 = vmatpush3.bf16.msra.mxu1 %v250_v32  ;;  %v381_v36 = vpop.permute.xlu1 %380 }
  0x9f   : > { %640 = vmatprep.subr.bf16.mxu0 %v731_v0 }
  0xa0   : > { %v379_v37 = vpop.permute.xlu0 %378 }
  0xa1   : > { %629 = vmatmul.mubr.msk.bf16.vlgmr.msra.gmra.mrb[0].mxu0 %vm253_vm1, %v688_v33  ;;  %653 = vmatmul.mubr.msk.bf16.vlgmr.msra.gmra.mrb[4].mxu1 %vm253_vm1, %v689_v34  ;;  %v384_v38 = vsel %vm382_vm3, %v379_v37, %v381_v36 }
  0xa2   : > { %641 = vmatpush3.bf16.msra.mxu0 %v383_v35  ;;  %644 = vmatprep.mubr.msk.bf16.mxu0 %vm732_vm0, %v731_v0 }
  0xa3   : > { %642 = vmatprep.subr.bf16.mxu0 %v731_v0 }
  0xa6   : > { %643 = vmatpush3.bf16.msra.mxu0 %v384_v38 }
  0xa9   : > { %645 = vmatmul.mubr.msk.bf16.vlgmr.msra.gmra.mrb[4].mxu0 %vm253_vm1, %v690_v39 }
  0xaf   : > { %v357_v45 = vpop.permute.xlu1 %356 }
  0xb1   : > { %v352_v44 = vpop.permute.xlu0 %351 }
  0xb3   : > { %v485_v61 = vpop.permute.xlu1 %484 }
  0xb5   : > { %v490_v2 = vpop.permute.xlu0 %489 }
  0xfc   : > { %v340_v40 = vpop.f32.mrb[0].mxu1 }
  0xfd   : > { %v638_v41 = vpop.f32.mrb[1].mxu1 }
  0xfe   : > { %v343_v42 = vpop.f32.mrb[2].mxu1 }
  0xff   : > { %v639_v43 = vpop.f32.mrb[3].mxu1 }
 0x174   : > { %v291_v46 = vpop.f32.mrb[0].mxu0  ;;  %v473_v47 = vpop.f32.mrb[4].mxu1 }
 0x175   : > { %v341_v48 = vadd.f32 %v340_v40, %v291_v46  ;;  %v630_v49 = vpop.f32.mrb[1].mxu0  ;;  %v654_v50 = vpop.f32.mrb[5].mxu1 }
 0x176   : > { %v294_v51 = vpop.f32.mrb[2].mxu0  ;;  %v476_v52 = vpop.f32.mrb[6].mxu1 }
 0x177   : > { %v344_v53 = vadd.f32 %v343_v42, %v294_v51  ;;  %v631_v54 = vpop.f32.mrb[3].mxu0  ;;  %v359_v55 = vadd.f32 %v352_v44, %v341_v48  ;;  %v655_v56 = vpop.f32.mrb[7].mxu1 }
 0x179   : > { %361 = vst [vmem:[%s204_s10] sm:$0xff] %v359_v55  ;;  %v360_v57 = vadd.f32 %v357_v45, %v344_v53 }
 0x17b   : > { %362 = vst [vmem:[%s204_s10 + $0x8] sm:$0xff] %v360_v57 }
 0x17c   : > { %v424_v58 = vpop.f32.mrb[4].mxu0 }
 0x17d   : > { %v474_v59 = vadd.f32 %v473_v47, %v424_v58  ;;  %v646_v60 = vpop.f32.mrb[5].mxu0 }
 0x17e   : > { %v427_v62 = vpop.f32.mrb[6].mxu0 }
 0x17f   : > { %v492_v63 = vadd.f32 %v485_v61, %v474_v59  ;;  %v477_v0 = vadd.f32 %v476_v52, %v427_v62  ;;  %v647_v1 = vpop.f32.mrb[7].mxu0 }
 0x181   : > { %606 = vst [vmem:[%s204_s10 + $0x10] sm:$0xff] %v492_v63  ;;  %v493_v3 = vadd.f32 %v490_v2, %v477_v0 }
 0x183   : > { %607 = vst [vmem:[%s204_s10 + $0x18] sm:$0xff] %v493_v3 }
 0x184 PF: > { %s13_s14 = sadd.s32 1, %s729_s14   ;;  %s835_s12 = smov %s725_s13 }
 0x185   : > { %p10_p5 = scmp.ge.s32.totalorder %s13_s14, 4   ;;  %s836_s13 = smov %s838_s15 }
 0x187   :  { %12 = sbr.rel (!%p10_p5) target bundleno = 2 (0x2), region = 66 }

// kernel: forward_pallas.24
= control target key start
LH: loop header
LB: loop body
LE: loop exit
PB: predicated region body
PF: predicated region fallthrough
CT: control target
= control target key end

     0   :  { %s743_s12 = smov 0   ;;  %s745_s13 = smov 0   ;;  %s861_s0 = inlined_call_operand.vmem [shape: f32[2,2,16,130], index: 0, kind: input, shape index: {}]   ;;  %s862_s1 = inlined_call_operand.vmem [shape: bf16[4,8,16], index: 1, kind: input, shape index: {}]   ;;  %s863_s2 = inlined_call_operand.vmem [shape: f32[8,1], index: 2, kind: input, shape index: {}]   ;;  %s864_s3 = inlined_call_operand.vmem [shape: f32[2,2,8,256], index: 3, kind: output, shape index: {}]  }
   0x1   :  { %s747_s14 = smov 0   ;;  %s749_s15 = smov 0  }
   0x2   :  { %s751_s16 = smov 0   ;;  %s753_s17 = smov 0  }
   0x3   :  { %s755_s18 = smov 0  }
   0x4 LB: > { %s22_s19 = sadd.s32 1, %s708_s16  ;;  %s25_s20 = sadd.s32 1, %s712_s17  ;;  %s716_s18 = sphi %s755_s18, %s13_s18   ;;  %s712_s17 = sphi %s753_s17, %s871_s17   ;;  %s708_s16 = sphi %s751_s16, %s870_s16   ;;  %s704_s15 = sphi %s749_s15, %s869_s15   ;;  %s700_s14 = sphi %s747_s14, %s868_s14   ;;  %s696_s13 = sphi %s745_s13, %s867_s13   ;;  %s692_s12 = sphi %s743_s12, %s866_s12  }
   0x5   : > { %p23_p0 = scmp.ge.s32.totalorder %s22_s19, 2  ;;  %s537_s21 = sadd.s32 4294967295, %s716_s18  }
   0x6   : > { %p114_p1 = scmp.ne.s32.totalorder %s696_s13, %s692_s12  ;;  %p115_p2 = scmp.eq.s32.totalorder %s537_s21, 3 }
   0x7   : > { %s873_s19 = smov (%p23_p0, %s22_s19), 0  ;;  %s875_s20 = smov (!%p23_p0, %s25_s20), %s712_s17 }
   0x8   : > { %s100_s22 = ssub.s32 %s708_s16, %s873_s19  ;;  %p27_p3 = scmp.ge.s32.totalorder %s875_s20, 2 }
   0x9   : > { %p541_p4 = scmp.ge.s32.totalorder %s716_s18, 1  ;;  %p789_p5 = por %p115_p2, %p114_p1 }
   0xa   : > { %p157_p6 = scmp.lt.s32.totalorder %s716_s18, 5  ;;  %s877_s20 = smov (%p27_p3, %s875_s20), 0 }
   0xb   : > { %s99_s24 = ssub.s32 %s712_s17, %s877_s20  ;;  %s104_s26 = sadd.s32 1, %s696_s13 }
   0xc   : > { %p158_p7 = pnand %p541_p4, %p157_p6  ;;  %s101_s25 = sor.u32 %s100_s22, %s99_s24 }
   0xd   : > { %p102_p8 = scmp.eq.s32.totalorder %s101_s25, 0  ;;  %p184_p9 = scmp.lt.s32.totalorder (!%p158_p7), %s704_s15, 1  ;;  %v718_v4 = vmov (!%p158_p7), 0.0   ;;  %vm719_vm0 = vmmov (!%p158_p7), 0   ;;  %v204_v11 = vld [vmem:[%s862_s1] sm:$0xf] (!%p158_p7) }
   0xe   : > { %161 = sbr.rel (%p158_p7) target bundleno = 399 (0x18f), region = 32  ;;  %p186_p10 = scmp.lt.s32.totalorder (!%p158_p7), %s700_s14, 1  ;;  %573 = vmatprep.subr.bf16.mxu1 (!%p158_p7), %v718_v4  ;;  %567 = vmatprep.subr.bf16.mxu0 (!%p158_p7), %v718_v4  ;;  %vm216_vm1 = vcmask (!%p158_p7), 130048   ;;  %v722_v12 = vmov (!%p158_p7), 0   ;;  %v303_v13 = vld [vmem:[%s863_s2] sm:$0xff] (!%p158_p7)  ;;  %vm213_vm2 = vcmask (!%p158_p7), 1039360  }
   0xf   : > { %s800_s27 = scalar_select %p102_p8, %s696_s13, %s104_s26  }
  0x10   : > { %575 = vmatprep.mubr.msk.bf16.mxu1 (!%p158_p7), %vm719_vm0, %v718_v4  ;;  %569 = vmatprep.mubr.msk.bf16.mxu0 (!%p158_p7), %vm719_vm0, %v718_v4  ;;  %s720_s10 = smov (!%p158_p7), 126   ;;  %s721_s11 = smov (!%p158_p7), 127   ;;  %vm319_vm3 = vcmask (!%p158_p7), 1031168   ;;  %v546_v19 = vld [vmem:[%s862_s1 + $0x4] sm:$0xf] (!%p158_p7) }
  0x11   : > { %652 = vset.pattern.permute.xlu0 (!%p158_p7), %v722_v12  ;;  %653 = vset.pattern.permute.xlu1 (!%p158_p7), %v722_v12  ;;  %v549_v20 = vld [vmem:[%s862_s1 + $0x8] sm:$0xf] (!%p158_p7)  ;;  %v550_v22 = vld [vmem:[%s862_s1 + $0xc] sm:$0xf] (!%p158_p7) }
  0x15   : > { %s185_s28 = scalar_select %p184_p9, %s704_s15, 1 }
  0x16   : > { %s187_s29 = scalar_select %p186_p10, %s700_s14, 1 }
  0x17   : > { %s544_s30 = sshll.u32 %s185_s28, 3 }
  0x18   : > { %s543_s4 = sshll.u32 %s187_s29, 2 }
  0x19   : > { %s190_s5 = sadd.s32 %s544_s30, %s543_s4 }
  0x1a   : > { %s545_s6 = sshll.u32 %s190_s5, 3 }
  0x1b   : > { %s192_s9 = scalar_lea.vmem %s861_s0, %s545_s6  ;;  %s181_s6 = sand.u32 1, %s692_s12  }
  0x1c   : > { %v194_v0 = vld [vmem:[%s192_s9] sm:$0xff]  ;;  %v196_v1 = vld [vmem:[%s192_s9 + $0x10] sm:$0xff]  ;;  %v195_v2 = vld [vmem:[%s192_s9 + $0x8] sm:$0xff]  ;;  %s542_s7 = sshll.u32 %s181_s6, 4  ;;  %s555_s12 = sshll.u32 (%p789_p5), %s704_s15, 2 }
  0x1d   : > { %654 = vtanh.f32 %v194_v0  ;;  %v197_v3 = vld [vmem:[%s192_s9 + $0x18] sm:$0xff]  ;;  %s183_s8 = scalar_lea.vmem [#allocation2], %s542_s7  ;;  %s425_s9 = sadd.s32 (%p789_p5), %s700_s14, %s555_s12 }
  0x1e   : > { %656 = vtanh.f32 %v196_v1 }
  0x1f   : > { %658 = vtanh.f32 %v195_v2 }
  0x20   : > { %660 = vtanh.f32 %v197_v3 }
  0x27   : > { %v655_v5 = vpop.eup %654 }
  0x28   : > { %v657_v6 = vpop.eup %656 }
  0x29   : > { %v659_v7 = vpop.eup %658  ;;  %v202_v8 = vpack.c.bf16 %v657_v6, %v655_v5 }
  0x2a   : > { %v661_v9 = vpop.eup %660 }
  0x2b   : > { %315 = vrot.lane.b32.xlu1 %v202_v8, %s720_s10  ;;  %209 = vrot.lane.b32.xlu0 %v202_v8, %s721_s11  ;;  %v203_v10 = vpack.c.bf16 %v661_v9, %v659_v7 }
  0x2c   : > { %574 = vmatpush3.bf16.msra.mxu1 %v202_v8 }
  0x2d   : > { %585 = vmatprep.subr.bf16.mxu1 %v718_v4 }
  0x2f   : > { %317 = vrot.lane.b32.xlu1 %v203_v10, %s720_s10  ;;  %211 = vrot.lane.b32.xlu0 %v203_v10, %s721_s11  ;;  %s556_s10 = sshll.u32 (%p789_p5), %s425_s9, 3 }
  0x30   : > { %576 = vmatmul.mubr.msk.bf16.vlgmr.msra.gmra.mrb[0].mxu1 %vm216_vm1, %v204_v11  ;;  %s427_s22 = scalar_lea.vmem (%p789_p5), %s864_s3, %s556_s10 }
  0x31   : > { %587 = vmatprep.mubr.msk.bf16.mxu1 %vm719_vm0, %v718_v4 }
  0x33   : > { %306 = vperm.xlu0 %652, %v303_v13   ;;  %411 = vperm.xlu1 %653, %v303_v13  }
  0x9d   : > { %v316_v14 = vpop.permute.xlu1 %315  ;;  %v210_v15 = vpop.permute.xlu0 %209 }
  0xa1   : > { %v318_v16 = vpop.permute.xlu1 %317  ;;  %v212_v17 = vpop.permute.xlu0 %211 }
  0xa2   : > { %v214_v18 = vsel %vm213_vm2, %v210_v15, %v212_v17  ;;  %v320_v21 = vsel %vm319_vm3, %v316_v14, %v318_v16 }
  0xa3   : > { %568 = vmatpush3.bf16.msra.mxu0 %v214_v18  ;;  %586 = vmatpush3.bf16.msra.mxu1 %v214_v18 }
  0xa4   : > { %579 = vmatprep.subr.bf16.mxu0 %v718_v4 }
  0xa6   : > { %570 = vmatmul.mubr.msk.bf16.vlgmr.msra.gmra.mrb[0].mxu0 %vm216_vm1, %v546_v19  ;;  %588 = vmatmul.mubr.msk.bf16.vlgmr.msra.gmra.mrb[4].mxu1 %vm216_vm1, %v549_v20 }
  0xa7   : > { %580 = vmatpush3.bf16.msra.mxu0 %v320_v21  ;;  %581 = vmatprep.mubr.msk.bf16.mxu0 %vm719_vm0, %v718_v4 }
  0xae   : > { %582 = vmatmul.mubr.msk.bf16.vlgmr.msra.gmra.mrb[4].mxu0 %vm216_vm1, %v550_v22 }
  0xb2   : > { %v307_v27 = vpop.permute.xlu0 %306  ;;  %v412_v39 = vpop.permute.xlu1 %411 }
 0x103   : > { %v297_v23 = vpop.f32.mrb[0].mxu1 }
 0x104   : > { %v577_v24 = vpop.f32.mrb[1].mxu1 }
 0x105   : > { %v300_v25 = vpop.f32.mrb[2].mxu1 }
 0x106   : > { %v578_v26 = vpop.f32.mrb[3].mxu1 }
 0x179   : > { %v254_v28 = vpop.f32.mrb[0].mxu0  ;;  %v402_v29 = vpop.f32.mrb[4].mxu1 }
 0x17a   : > { %v298_v30 = vadd.f32 %v297_v23, %v254_v28  ;;  %v571_v31 = vpop.f32.mrb[1].mxu0  ;;  %v589_v32 = vpop.f32.mrb[5].mxu1 }
 0x17b   : > { %v257_v33 = vpop.f32.mrb[2].mxu0  ;;  %v405_v34 = vpop.f32.mrb[6].mxu1 }
 0x17c   : > { %v572_v35 = vpop.f32.mrb[3].mxu0  ;;  %v309_v36 = vadd.f32 %v307_v27, %v298_v30  ;;  %v590_v37 = vpop.f32.mrb[7].mxu1 }
 0x17e   : > { %310 = vst [vmem:[%s183_s8] sm:$0xff] %v309_v36 }
 0x180   : > { %423 = sbr.rel (!%p789_p5) target bundleno = 399 (0x18f), region = 36 }
 0x181   : > { %v359_v38 = vpop.f32.mrb[4].mxu0 }
 0x182   : > { %v403_v40 = vadd.f32 %v402_v29, %v359_v38  ;;  %v583_v41 = vpop.f32.mrb[5].mxu0 }
 0x183   : > { %v362_v42 = vpop.f32.mrb[6].mxu0 }
 0x184   : > { %v414_v43 = vadd.f32 %v412_v39, %v403_v40  ;;  %v584_v44 = vpop.f32.mrb[7].mxu0 }
 0x185   : > { %v457_v45 = vld [vmem:[%s183_s8] sm:$0xff] (%p789_p5) }
 0x186   : > { %553 = vst [vmem:[%s183_s8 + $0x8] sm:$0xff] %v414_v43  ;;  %458 = vst [vmem:[%s427_s22] sm:$0xff] (%p789_p5), %v457_v45 }
 0x18d   : > { %v459_v46 = vld [vmem:[%s183_s8 + $0x8] sm:$0xff] }
 0x18e   : > { %460 = vst [vmem:[%s427_s22 + $0x10] sm:$0xff] %v459_v46 }
 0x18f PF: > { %s13_s18 = sadd.s32 1, %s716_s18   ;;  %s866_s12 = smov %s696_s13 }
 0x190   : > { %p10_p11 = scmp.ge.s32.totalorder %s13_s18, 6   ;;  %s867_s13 = smov %s800_s27 }
 0x191   : > { %s868_s14 = smov %s708_s16  ;;  %s869_s15 = smov %s712_s17 }
 0x192   : > { %s870_s16 = smov %s873_s19  ;;  %s871_s17 = smov %s877_s20 }
 0x193   :  { %12 = sbr.rel (!%p10_p11) target bundleno = 4 (0x4), region = 104 }

// kernel: forward_pallas.26
= control target key start
LH: loop header
LB: loop body
LE: loop exit
PB: predicated region body
PF: predicated region fallthrough
CT: control target
= control target key end

     0   :  { %s898_s24 = smov 0   ;;  %s900_s25 = smov 0   ;;  %s1008_s0 = inlined_call_operand.vmem [shape: f32[2,4,8,134], index: 0, kind: input, shape index: {}]   ;;  %s1009_s1 = inlined_call_operand.vmem [shape: bf16[3,8,8], index: 1, kind: input, shape index: {}]   ;;  %s1010_s2 = inlined_call_operand.vmem [shape: f32[8,1], index: 2, kind: input, shape index: {}]   ;;  %s1011_s3 = inlined_call_operand.vmem [shape: bf16[8,8], index: 3, kind: input, shape index: {}]   ;;  %s1012_s4 = inlined_call_operand.vmem [shape: f32[8,1], index: 4, kind: input, shape index: {}]   ;;  %s1013_s5 = inlined_call_operand.vmem [shape: bf16[8,8], index: 5, kind: input, shape index: {}]   ;;  %s1014_s6 = inlined_call_operand.vmem [shape: f32[8,1], index: 6, kind: input, shape index: {}]   ;;  %s1015_s7 = inlined_call_operand.vmem [shape: f32[2,8,512], index: 7, kind: output, shape index: {}]  }
   0x1   :  { %s902_s26 = smov 0   ;;  %s904_s27 = smov 0  }
   0x2   :  { %s906_s28 = smov 0  }
   0x3 LB: > { %s26_s29 = sadd.s32 1, %s843_s26  ;;  %s29_s30 = sadd.s32 1, %s847_s27  ;;  %s851_s28 = sphi %s906_s28, %s17_s28   ;;  %s847_s27 = sphi %s904_s27, %s1019_s27   ;;  %s843_s26 = sphi %s902_s26, %s1018_s26   ;;  %s839_s25 = sphi %s900_s25, %s1017_s25   ;;  %s835_s24 = sphi %s898_s24, %s1016_s24  }
   0x4   : > { %p27_p0 = scmp.ge.s32.totalorder %s26_s29, 4  ;;  %p699_p1 = scmp.ge.s32.totalorder %s851_s28, 1 }
   0x5   : > { %p257_p2 = scmp.lt.s32.totalorder %s851_s28, 9 }
   0x6   : > { %s1021_s29 = smov (%p27_p0, %s26_s29), 0  ;;  %s1023_s30 = smov (!%p27_p0, %s29_s30), %s847_s27 }
   0x7   : > { %p258_p3 = pnand %p699_p1, %p257_p2  ;;  %p31_p4 = scmp.ge.s32.totalorder %s1023_s30, 2 }
   0x8   : > { %p296_p5 = scmp.lt.s32.totalorder (!%p258_p3), %s839_s25, 1  ;;  %p298_p6 = scmp.lt.s32.totalorder (!%p258_p3), %s835_s24, 3  ;;  %v853_v0 = vmov (!%p258_p3), 0.0   ;;  %vm854_vm0 = vmmov (!%p258_p3), 0   ;;  %v542_v9 = vld [vmem:[%s1010_s2] sm:$0xff] (!%p258_p3)  ;;  %v857_v10 = vmov (!%p258_p3), 0  }
   0x9   : > { %s1025_s30 = smov (%p31_p4, %s1023_s30), 0  ;;  %261 = sbr.rel (%p258_p3) target bundleno = 615 (0x267), region = 48 }
   0xa   : > { %724 = vmatprep.subr.bf16.mxu0 (!%p258_p3), %v853_v0  ;;  %730 = vmatprep.subr.bf16.mxu1 (!%p258_p3), %v853_v0  ;;  %s855_s15 = smov (!%p258_p3), 125   ;;  %s856_s16 = smov (!%p258_p3), 122   ;;  %vm331_vm1 = vcmask (!%p258_p3), 1022976   ;;  %vm337_vm2 = vcmask (!%p258_p3), 1043456   ;;  %v318_v15 = vld [vmem:[%s1013_s5] sm:$0xf] (!%p258_p3) }
   0xb   : > { %726 = vmatprep.mubr.msk.bf16.mxu0 (!%p258_p3), %vm854_vm0, %v853_v0  ;;  %732 = vmatprep.mubr.msk.bf16.mxu1 (!%p258_p3), %vm854_vm0, %v853_v0  ;;  %vm333_vm3 = vcmask (!%p258_p3), 64512   ;;  %v385_v19 = vld [vmem:[%s1009_s1] sm:$0xf] (!%p258_p3)  ;;  %vm493_vm4 = vcmask (!%p258_p3), 998400   ;;  %v706_v23 = vld [vmem:[%s1009_s1 + $0x4] sm:$0xf] (!%p258_p3) }
   0xc   : > { %805 = vset.pattern.permute.xlu0 (!%p258_p3), %v857_v10  ;;  %806 = vset.pattern.permute.xlu1 (!%p258_p3), %v857_v10  ;;  %v709_v27 = vld [vmem:[%s1009_s1 + $0x8] sm:$0xf] (!%p258_p3)  ;;  %v319_v28 = vld [vmem:[%s1014_s6] sm:$0xff] (!%p258_p3) }
   0xd   : > { %v552_v29 = vld [vmem:[%s1012_s4] sm:$0xff] (!%p258_p3) }
   0xe   : > { %v551_v49 = vld [vmem:[%s1011_s3] sm:$0xf] (!%p258_p3) }
  0x10   : > { %s1027_s25 = smov (!%p296_p5, %s839_s25), 1  ;;  %s1029_s24 = smov (!%p298_p6, %s835_s24), 3 }
  0x11   : > { %s701_s8 = sshll.u32 %s1027_s25, 3  ;;  %s700_s9 = sshll.u32 %s1029_s24, 1 }
  0x12   : > { %s302_s10 = sadd.s32 %s701_s8, %s700_s9  ;;  %s703_s17 = sshll.u32 %s1027_s25, 2 }
  0x13   : > { %s702_s11 = sshll.u32 %s302_s10, 3  ;;  %s310_s18 = sadd.s32 %s703_s17, %s1029_s24 }
  0x14   : > { %s304_s14 = scalar_lea.vmem %s1008_s0, %s702_s11  ;;  %s704_s19 = sshll.u32 %s310_s18, 3 }
  0x15   : > { %v314_v1 = vld [vmem:[%s304_s14] sm:$0xff]  ;;  %v315_v2 = vld [vmem:[%s304_s14 + $0x8] sm:$0xff]  ;;  %s312_s22 = scalar_lea.vmem %s1015_s7, %s704_s19 }
  0x16   : > { %v316_v3 = vpack.c.bf16 %v314_v1, %v314_v1  ;;  %807 = vtanh.f32 %v314_v1  ;;  %v317_v4 = vpack.c.bf16 %v315_v2, %v315_v2 }
  0x17   : > { %809 = vtanh.f32 %v315_v2 }
  0x18   : > { %327 = vrot.lane.b32.xlu0 %v316_v3, %s855_s15 }
  0x1c   : > { %329 = vrot.lane.b32.xlu0 %v317_v4, %s855_s15 }
  0x20   : > { %v808_v5 = vpop.eup %807 }
  0x21   : > { %v810_v6 = vpop.eup %809  ;;  %v383_v7 = vpack.c.bf16 %v808_v5, %v808_v5 }
  0x22   : > { %v384_v8 = vpack.c.bf16 %v810_v6, %v810_v6 }
  0x23   : > { %390 = vrot.lane.b32.xlu1 %v383_v7, %s855_s15  ;;  %489 = vrot.lane.b32.xlu0 %v383_v7, %s856_s16  ;;  %v445_v16 = vsel %vm337_vm2, %v383_v7, 0 }
  0x27   : > { %392 = vrot.lane.b32.xlu1 %v384_v8, %s855_s15  ;;  %545 = vperm.xlu0 %805, %v542_v9  }
  0x2b   : > { %491 = vrot.lane.b32.xlu1 %v384_v8, %s856_s16 }
  0x2f   : > { %322 = vperm.xlu1 %806, %v319_v28  }
  0x33   : > { %555 = vperm.xlu1 %806, %v552_v29  }
  0x8a   : > { %v328_v11 = vpop.permute.xlu0 %327 }
  0x8e   : > { %v330_v12 = vpop.permute.xlu0 %329 }
  0x8f   : > { %v332_v13 = vsel %vm331_vm1, %v328_v11, %v330_v12 }
  0x90   : > { %v339_v14 = vsel %vm337_vm2, %v332_v13, 0 }
  0x91   : > { %725 = vmatpush3.bf16.msra.mxu0 %v339_v14 }
  0x92   : > { %736 = vmatprep.subr.bf16.mxu0 %v853_v0 }
  0x94   : > { %727 = vmatmul.mubr.msk.bf16.vlgmr.msra.gmra.mrb[0].mxu0 %vm333_vm3, %v318_v15 }
  0x95   : > { %v391_v17 = vpop.permute.xlu1 %390  ;;  %737 = vmatpush3.bf16.msra.mxu0 %v445_v16  ;;  %738 = vmatprep.mubr.msk.bf16.mxu0 %vm854_vm0, %v853_v0  ;;  %v490_v22 = vpop.permute.xlu0 %489 }
  0x96   : > { %748 = vmatprep.subr.bf16.mxu0 %v853_v0 }
  0x99   : > { %v393_v18 = vpop.permute.xlu1 %392 }
  0x9a   : > { %v394_v20 = vsel %vm331_vm1, %v391_v17, %v393_v18 }
  0x9b   : > { %v399_v21 = vsel %vm337_vm2, %v394_v20, 0 }
  0x9c   : > { %731 = vmatpush3.bf16.msra.mxu1 %v399_v21  ;;  %739 = vmatmul.mubr.msk.bf16.vlgmr.msra.gmra.mrb[4].mxu0 %vm333_vm3, %v385_v19 }
  0x9d   : > { %v492_v24 = vpop.permute.xlu1 %491  ;;  %742 = vmatprep.subr.bf16.mxu1 %v853_v0  ;;  %750 = vmatprep.mubr.msk.bf16.mxu0 %vm854_vm0, %v853_v0 }
  0x9e   : > { %v494_v25 = vsel %vm493_vm4, %v490_v22, %v492_v24 }
  0x9f   : > { %733 = vmatmul.mubr.msk.bf16.vlgmr.msra.gmra.mrb[0].mxu1 %vm333_vm3, %v706_v23  ;;  %v499_v26 = vsel %vm337_vm2, %v494_v25, 0 }
  0xa0   : > { %743 = vmatpush3.bf16.msra.mxu1 %v499_v26  ;;  %744 = vmatprep.mubr.msk.bf16.mxu1 %vm854_vm0, %v853_v0 }
  0xa6   : > { %v546_v40 = vpop.permute.xlu0 %545 }
  0xa7   : > { %745 = vmatmul.mubr.msk.bf16.vlgmr.msra.gmra.mrb[4].mxu1 %vm333_vm3, %v709_v27 }
  0xae   : > { %v323_v50 = vpop.permute.xlu1 %322 }
  0xb2   : > { %v556_v51 = vpop.permute.xlu1 %555 }
  0xb3   : > { %v754_v52 = vadd.f32 %v556_v51, %v323_v50 }
 0x16f   : > { %v481_v30 = vpop.f32.mrb[4].mxu0 }
 0x170   : > { %v740_v31 = vpop.f32.mrb[5].mxu0 }
 0x171   : > { %v484_v32 = vpop.f32.mrb[6].mxu0 }
 0x172   : > { %v435_v33 = vpop.f32.mrb[0].mxu1  ;;  %v741_v34 = vpop.f32.mrb[7].mxu0 }
 0x173   : > { %v482_v35 = vadd.f32 %v481_v30, %v435_v33  ;;  %v734_v36 = vpop.f32.mrb[1].mxu1 }
 0x174   : > { %v438_v37 = vpop.f32.mrb[2].mxu1 }
 0x175   : > { %v735_v38 = vpop.f32.mrb[3].mxu1 }
 0x17a   : > { %v535_v39 = vpop.f32.mrb[4].mxu1 }
 0x17b   : > { %v541_v41 = vadd.f32 %v535_v39, %v482_v35  ;;  %v746_v42 = vpop.f32.mrb[5].mxu1 }
 0x17c   : > { %v538_v43 = vpop.f32.mrb[6].mxu1 }
 0x17d   : > { %v548_v44 = vadd.f32 %v546_v40, %v541_v41  ;;  %v747_v45 = vpop.f32.mrb[7].mxu1 }
 0x17f   : > { %811 = vtanh.f32 %v548_v44 }
 0x189   : > { %v812_v46 = vpop.eup %811 }
 0x18a   : > { %v550_v47 = vpack.c.bf16 %v812_v46, %v812_v46 }
 0x18c   : > { %v562_v48 = vsel %vm337_vm2, %v550_v47, 0 }
 0x18d   : > { %749 = vmatpush3.bf16.msra.mxu0 %v562_v48 }
 0x190   : > { %751 = vmatmul.mubr.msk.bf16.vlgmr.msra.gmra.mrb[0].mxu0 %vm333_vm3, %v551_v49 }
 0x263   : > { %v598_v53 = vpop.f32.mrb[0].mxu0 }
 0x264   : > { %v755_v54 = vadd.f32 %v754_v52, %v598_v53  ;;  %v752_v55 = vpop.f32.mrb[1].mxu0 }
 0x265   : > { %v601_v56 = vpop.f32.mrb[2].mxu0 }
 0x266   : > { %605 = vst [vmem:[%s312_s22] sm:$0xff] %v755_v54  ;;  %v753_v57 = vpop.f32.mrb[3].mxu0 }
 0x267 PF: > { %s17_s28 = sadd.s32 1, %s851_s28   ;;  %s1016_s24 = smov %s843_s26 }
 0x268   : > { %p14_p7 = scmp.ge.s32.totalorder %s17_s28, 10   ;;  %s1017_s25 = smov %s847_s27 }
 0x269   : > { %s1018_s26 = smov %s1021_s29  ;;  %s1019_s27 = smov %s1025_s30 }
 0x26a   :  { %16 = sbr.rel (!%p14_p7) target bundleno = 3 (0x3), region = 80 }

// kernel: forward_pallas.27
= control target key start
LH: loop header
LB: loop body
LE: loop exit
PB: predicated region body
PF: predicated region fallthrough
CT: control target
= control target key end

     0   :  { %s1180_s0 = inlined_call_operand.vmem [shape: f32[2,4,8,134], index: 0, kind: input, shape index: {}]   ;;  %s1181_s1 = inlined_call_operand.vmem [shape: bf16[7,1,8], index: 1, kind: input, shape index: {}]   ;;  %s1182_s2 = inlined_call_operand.<no memory space> [shape: f32[1,1], index: 2, kind: input, shape index: {}]   ;;  %s1183_s3 = inlined_call_operand.hbm [shape: f32[2,1,512], index: 3, kind: output, shape index: {}]  }
   0x1   :  { %v8_v0 = vstv %s1182_s2 }
   0x2   :  { %9 = vst [vmem:[#allocation2] sm:$0x1] %v8_v0 }
   0x3   :  { %10 = vsyncpa [#allocation4], 0 }
   0x4   :  { %12 = vsyncpa [#allocation4 + $0x1], 0  ;;  %s987_s14 = smov 0   ;;  %s989_s15 = smov 0  }
   0x5   :  { %s991_s16 = smov 0   ;;  %s993_s17 = smov 0  }
   0x6   :  { %s995_s18 = smov 0   ;;  %s997_s19 = smov 0  }
   0x7   :  { %s999_s20 = smov 0   ;;  %s1001_s21 = smov 0  }
   0x8 LB: > { %s690_s2 = sadd.s32 4294967295, %s952_s21   ;;  %s691_s22 = sadd.s32 4294967294, %s952_s21   ;;  %s952_s21 = sphi %s1001_s21, %s18_s21   ;;  %s948_s20 = sphi %s999_s20, %s1192_s20   ;;  %s944_s19 = sphi %s997_s19, %s1191_s19   ;;  %s940_s18 = sphi %s995_s18, %s1190_s18   ;;  %s936_s17 = sphi %s993_s17, %s1189_s17   ;;  %s932_s16 = sphi %s991_s16, %s1188_s16   ;;  %s928_s15 = sphi %s989_s15, %s1187_s15   ;;  %s924_s14 = sphi %s987_s14, %s1186_s14  }
   0x9   : > { %s27_s23 = sadd.s32 1, %s944_s19  ;;  %s30_s24 = sadd.s32 1, %s948_s20 }
   0xa   : > { %p28_p0 = scmp.ge.s32.totalorder %s27_s23, 4  ;;  %p119_p1 = scmp.ne.s32.totalorder %s932_s16, %s928_s15 }
   0xb   : > { %p120_p2 = scmp.eq.s32.totalorder %s690_s2, 7  ;;  %p125_p5 = scmp.ne.s32.totalorder %s928_s15, %s924_s14 }
   0xc   : > { %s1194_s23 = smov (%p28_p0, %s27_s23), 0  ;;  %s1196_s24 = smov (!%p28_p0, %s30_s24), %s948_s20 }
   0xd   : > { %s105_s25 = ssub.s32 %s944_s19, %s1194_s23  ;;  %p1038_p3 = por %p120_p2, %p119_p1 }
   0xe   : > { %p32_p4 = scmp.ge.s32.totalorder %s1196_s24, 2  ;;  %p126_p6 = scmp.eq.s32.totalorder %s691_s22, 7 }
   0xf   : > { %p694_p7 = scmp.ge.s32.totalorder %s952_s21, 1  ;;  %p162_p9 = scmp.lt.s32.totalorder %s952_s21, 9 }
  0x10   : > { %s1198_s24 = smov (%p32_p4, %s1196_s24), 0  ;;  %p1047_p8 = por %p126_p6, %p125_p5 }
  0x11   : > { %s104_s28 = ssub.s32 %s948_s20, %s1198_s24  ;;  %s109_s29 = sadd.s32 1, %s932_s16 }
  0x12   : > { %s106_s30 = sor.u32 %s105_s25, %s104_s28  ;;  %p163_p10 = pnand %p694_p7, %p162_p9 }
  0x13   : > { %p107_p11 = scmp.eq.s32.totalorder %s106_s30, 0  ;;  %p189_p12 = scmp.lt.s32.totalorder (!%p163_p10), %s940_s18, 1  ;;  %v954_v3 = vmov (!%p163_p10), 0.0   ;;  %vm955_vm0 = vmmov (!%p163_p10), 0   ;;  %vm220_vm1 = vcmask (!%p163_p10), 1043456   ;;  %vm216_vm2 = vcmask (!%p163_p10), 64512  }
  0x14   : > { %166 = sbr.rel (%p163_p10) target bundleno = 437 (0x1b5), region = 32  ;;  %p191_p13 = scmp.lt.s32.totalorder (!%p163_p10), %s936_s17, 3  ;;  %729 = vmatprep.subr.bf16.mxu0 (!%p163_p10), %v954_v3  ;;  %735 = vmatprep.subr.bf16.mxu1 (!%p163_p10), %v954_v3  ;;  %v205_v9 = vld [vmem:[%s1181_s1] sm:$0x1] (!%p163_p10)  ;;  %v962_v10 = vmov (!%p163_p10), 0   ;;  %vm316_vm3 = vcmask (!%p163_p10), 1031168   ;;  %v591_v61 = vlaneseq (!%p163_p10) }
  0x15   : > { %s1056_s4 = scalar_select %p107_p11, %s932_s16, %s109_s29  }
  0x16   : > { %731 = vmatprep.mubr.msk.bf16.mxu0 (!%p163_p10), %vm955_vm0, %v954_v3  ;;  %737 = vmatprep.mubr.msk.bf16.mxu1 (!%p163_p10), %vm955_vm0, %v954_v3  ;;  %s956_s2 = smov (!%p163_p10), 126   ;;  %s957_s22 = smov (!%p163_p10), 127   ;;  %v585_v11 = vld [vmem:[#allocation2] sm:$0x1] (!%p163_p10)  ;;  %vm214_vm4 = vcmask (!%p163_p10), 1039360   ;;  %vm371_vm5 = vcmask (!%p163_p10), 1022976  }
  0x17   : > { %s958_s29 = smov (!%p163_p10), 125   ;;  %s959_s30 = smov (!%p163_p10), 124   ;;  %851 = vset.pattern.permute.xlu0 (!%p163_p10), %v962_v10  ;;  %v698_v19 = vld [vmem:[%s1181_s1 + $0x1] sm:$0x1] (!%p163_p10)  ;;  %vm426_vm6 = vcmask (!%p163_p10), 1014784   ;;  %vm481_vm7 = vcmask (!%p163_p10), 1006592  }
  0x18   : > { %v703_v25 = vld [vmem:[%s1181_s1 + $0x3] sm:$0x1] (!%p163_p10)  ;;  %v701_v29 = vld [vmem:[%s1181_s1 + $0x2] sm:$0x1] (!%p163_p10)  ;;  %vm536_vm8 = vcmask (!%p163_p10), 998400  }
  0x19   : > { %v707_v35 = vld [vmem:[%s1181_s1 + $0x5] sm:$0x1] (!%p163_p10)  ;;  %v705_v39 = vld [vmem:[%s1181_s1 + $0x4] sm:$0x1] (!%p163_p10)  ;;  %v709_v41 = vld [vmem:[%s1181_s1 + $0x6] sm:$0x1] (!%p163_p10) }
  0x1b   : > { %s190_s5 = scalar_select %p189_p12, %s940_s18, 1 }
  0x1c   : > { %s192_s6 = scalar_select %p191_p13, %s936_s17, 3 }
  0x1d   : > { %s696_s7 = sshll.u32 %s190_s5, 3  ;;  %s960_s5 = smov 123  }
  0x1e   : > { %s695_s8 = sshll.u32 %s192_s6, 1  ;;  %s961_s6 = smov 122  }
  0x1f   : > { %s195_s9 = sadd.s32 %s696_s7, %s695_s8 }
  0x20   : > { %s697_s10 = sshll.u32 %s195_s9, 3 }
  0x21   : > { %s197_s13 = scalar_lea.vmem %s1180_s0, %s697_s10 }
  0x22   : > { %v199_v1 = vld [vmem:[%s197_s13] sm:$0xff]  ;;  %v200_v2 = vld [vmem:[%s197_s13 + $0x8] sm:$0xff] }
  0x23   : > { %852 = vtanh.f32 %v199_v1 }
  0x24   : > { %854 = vtanh.f32 %v200_v2  ;;  %v592_v2 = vshrl.u32 %v591_v61, 7 }
  0x2d   : > { %v853_v4 = vpop.eup %852 }
  0x2e   : > { %v855_v5 = vpop.eup %854  ;;  %v203_v6 = vpack.c.bf16 %v853_v4, %v853_v4 }
  0x2f   : > { %v204_v7 = vpack.c.bf16 %v855_v5, %v855_v5 }
  0x30   : > { %312 = vrot.lane.b32.xlu1 %v203_v6, %s956_s2  ;;  %210 = vrot.lane.b32.xlu0 %v203_v6, %s957_s22  ;;  %v268_v8 = vsel %vm220_vm1, %v203_v6, 0 }
  0x31   : > { %736 = vmatpush3.bf16.msra.mxu1 %v268_v8 }
  0x32   : > { %747 = vmatprep.subr.bf16.mxu1 %v954_v3 }
  0x34   : > { %314 = vrot.lane.b32.xlu1 %v204_v7, %s956_s2  ;;  %212 = vrot.lane.b32.xlu0 %v204_v7, %s957_s22 }
  0x35   : > { %738 = vmatmul.mubr.msk.bf16.vlgmr.msra.gmra.mrb[0].mxu1 %vm216_vm2, %v205_v9  ;;  %v593_v9 = vsub.s32 0, %v592_v2 }
  0x36   : > { %749 = vmatprep.mubr.msk.bf16.mxu1 %vm955_vm0, %v954_v3 }
  0x38   : > { %369 = vrot.lane.b32.xlu1 %v204_v7, %s958_s29  ;;  %367 = vrot.lane.b32.xlu0 %v203_v6, %s958_s29 }
  0x3c   : > { %424 = vrot.lane.b32.xlu1 %v204_v7, %s959_s30  ;;  %422 = vrot.lane.b32.xlu0 %v203_v6, %s959_s30  ;;  %s187_s30 = sand.u32 1, %s928_s15  }
  0x3d   : > { %s188_s8 = scalar_lea.vmem [#allocation3], %s187_s30  ;;  %s599_s13 = scalar_lea.sflag [#allocation4], %s187_s30 }
  0x3e   : > { %s613_s9 = sshll.u32 %s188_s8, 4  ;;  %s1129_s9 = int_to_ptr.vmem [resolvable:$true] %s613_s9 }
  0x3f   : > { %s858_s2 = scalar_lea.vmem %s1129_s9, 16 }
  0x40   : > { %479 = vrot.lane.b32.xlu1 %v204_v7, %s960_s5  ;;  %477 = vrot.lane.b32.xlu0 %v203_v6, %s960_s5  ;;  %s711_s5 = sshll.u32 %s940_s18, 2  ;;  %p859_p0 = scmp.ne.s32.totalorder %s1129_s9, %s858_s2 }
  0x42   : > { %p860_p1 = pnand %p859_p0, %p1038_p3 }
  0x44   : > { %534 = vrot.lane.b32.xlu1 %v204_v7, %s961_s6  ;;  %532 = vrot.lane.b32.xlu0 %v203_v6, %s961_s6  ;;  %s609_s6 = sadd.s32 %s936_s17, %s711_s5  ;;  %p861_p2 = pneg %p860_p1 }
  0x45   : > { %s712_s7 = sshll.u32 %s609_s6, 4  ;;  %s963_s17 = smov [#allocation3]  }
  0x46   : > { %s1127_s12 = scalar_lea.hbm %s1183_s3, %s712_s7  ;;  %s862_s18 = sshll.u32 %s963_s17, 4  ;;  %s863_s18 = int_to_ptr.vmem [resolvable:$false] %s862_s18 }
  0x47   : > { %s864_s22 = scalar_lea.vmem %s863_s18, 32  ;;  %p865_p4 = scmp.lt.s32.totalorder %s1129_s9, %s863_s18 }
  0x48   : > { %588 = vperm.xlu0 %851, %v585_v11   ;;  %p866_p5 = scmp.lt.s32.totalorder %s864_s22, %s858_s2 }
  0x4a   : > { %p867_p6 = por %p866_p5, %p865_p4 }
  0x4c   : > { %p868_p7 = pnand %p867_p6, %p861_p2 }
  0xa2   : > { %v313_v12 = vpop.permute.xlu1 %312  ;;  %v211_v13 = vpop.permute.xlu0 %210 }
  0xa6   : > { %v315_v14 = vpop.permute.xlu1 %314  ;;  %v213_v15 = vpop.permute.xlu0 %212 }
  0xa7   : > { %v317_v16 = vsel %vm316_vm3, %v313_v12, %v315_v14  ;;  %v215_v17 = vsel %vm214_vm4, %v211_v13, %v213_v15 }
  0xa8   : > { %v222_v18 = vsel %vm220_vm1, %v215_v17, 0  ;;  %v322_v20 = vsel %vm220_vm1, %v317_v16, 0 }
  0xa9   : > { %730 = vmatpush3.bf16.msra.mxu0 %v222_v18 }
  0xaa   : > { %741 = vmatprep.subr.bf16.mxu0 %v954_v3  ;;  %v370_v21 = vpop.permute.xlu1 %369  ;;  %v368_v22 = vpop.permute.xlu0 %367 }
  0xab   : > { %v372_v23 = vsel %vm371_vm5, %v368_v22, %v370_v21 }
  0xac   : > { %732 = vmatmul.mubr.msk.bf16.vlgmr.msra.gmra.mrb[0].mxu0 %vm216_vm2, %v698_v19  ;;  %v377_v24 = vsel %vm220_vm1, %v372_v23, 0 }
  0xad   : > { %742 = vmatpush3.bf16.msra.mxu0 %v322_v20  ;;  %748 = vmatpush3.bf16.msra.mxu1 %v377_v24 }
  0xae   : > { %v425_v26 = vpop.permute.xlu1 %424  ;;  %v423_v27 = vpop.permute.xlu0 %422  ;;  %743 = vmatprep.mubr.msk.bf16.mxu0 %vm955_vm0, %v954_v3  ;;  %753 = vmatprep.subr.bf16.mxu0 %v954_v3 }
  0xaf   : > { %v427_v28 = vsel %vm426_vm6, %v423_v27, %v425_v26  ;;  %759 = vmatprep.subr.bf16.mxu1 %v954_v3 }
  0xb0   : > { %750 = vmatmul.mubr.msk.bf16.vlgmr.msra.gmra.mrb[4].mxu1 %vm216_vm2, %v703_v25  ;;  %v432_v30 = vsel %vm220_vm1, %v427_v28, 0 }
  0xb1   : > { %761 = vmatprep.mubr.msk.bf16.mxu1 %vm955_vm0, %v954_v3 }
  0xb2   : > { %v480_v31 = vpop.permute.xlu1 %479  ;;  %v478_v32 = vpop.permute.xlu0 %477 }
  0xb3   : > { %v482_v33 = vsel %vm481_vm7, %v478_v32, %v480_v31 }
  0xb4   : > { %744 = vmatmul.mubr.msk.bf16.vlgmr.msra.gmra.mrb[4].mxu0 %vm216_vm2, %v701_v29  ;;  %v487_v34 = vsel %vm220_vm1, %v482_v33, 0 }
  0xb5   : > { %754 = vmatpush3.bf16.msra.mxu0 %v432_v30  ;;  %760 = vmatpush3.bf16.msra.mxu1 %v487_v34 }
  0xb6   : > { %v535_v36 = vpop.permute.xlu1 %534  ;;  %v533_v37 = vpop.permute.xlu0 %532  ;;  %755 = vmatprep.mubr.msk.bf16.mxu0 %vm955_vm0, %v954_v3  ;;  %765 = vmatprep.subr.bf16.mxu0 %v954_v3 }
  0xb7   : > { %v537_v38 = vsel %vm536_vm8, %v533_v37, %v535_v36 }
  0xb8   : > { %762 = vmatmul.mubr.msk.bf16.vlgmr.msra.gmra.mrb[8].mxu1 %vm216_vm2, %v707_v35  ;;  %v542_v40 = vsel %vm220_vm1, %v537_v38, 0 }
  0xbc   : > { %756 = vmatmul.mubr.msk.bf16.vlgmr.msra.gmra.mrb[8].mxu0 %vm216_vm2, %v705_v39 }
  0xbd   : > { %766 = vmatpush3.bf16.msra.mxu0 %v542_v40  ;;  %767 = vmatprep.mubr.msk.bf16.mxu0 %vm955_vm0, %v954_v3 }
  0xc4   : > { %768 = vmatmul.mubr.msk.bf16.vlgmr.msra.gmra.mrb[12].mxu0 %vm216_vm2, %v709_v41 }
  0xc7   : > { %v589_v10 = vpop.permute.xlu0 %588 }
  0xc8   : > { %v594_v11 = vrot.slane %v589_v10, %v593_v9 }
 0x108   : > { %v304_v42 = vpop.f32.mrb[0].mxu1 }
 0x109   : > { %v739_v43 = vpop.f32.mrb[1].mxu1 }
 0x10a   : > { %v307_v44 = vpop.f32.mrb[2].mxu1 }
 0x10b   : > { %v740_v45 = vpop.f32.mrb[3].mxu1 }
 0x17f   : > { %v258_v46 = vpop.f32.mrb[0].mxu0 }
 0x180   : > { %v733_v47 = vpop.f32.mrb[1].mxu0  ;;  %v305_v48 = vadd.f32 %v304_v42, %v258_v46 }
 0x181   : > { %v261_v49 = vpop.f32.mrb[2].mxu0 }
 0x182   : > { %v734_v50 = vpop.f32.mrb[3].mxu0 }
 0x183   : > { %v413_v51 = vpop.f32.mrb[4].mxu1 }
 0x184   : > { %v751_v52 = vpop.f32.mrb[5].mxu1 }
 0x185   : > { %v416_v53 = vpop.f32.mrb[6].mxu1 }
 0x186   : > { %v752_v54 = vpop.f32.mrb[7].mxu1 }
 0x187   : > { %v358_v55 = vpop.f32.mrb[4].mxu0 }
 0x188   : > { %v364_v56 = vadd.f32 %v358_v55, %v305_v48  ;;  %v745_v57 = vpop.f32.mrb[5].mxu0 }
 0x189   : > { %v361_v58 = vpop.f32.mrb[6].mxu0 }
 0x18a   : > { %v419_v59 = vadd.f32 %v413_v51, %v364_v56  ;;  %v746_v60 = vpop.f32.mrb[7].mxu0 }
 0x18b   : > { %v523_v62 = vpop.f32.mrb[8].mxu1 }
 0x18c   : > { %v763_v63 = vpop.f32.mrb[9].mxu1 }
 0x18d   : > { %v526_v0 = vpop.f32.mrb[10].mxu1 }
 0x18e   : > { %v764_v1 = vpop.f32.mrb[11].mxu1 }
 0x18f   : > { %v468_v3 = vpop.f32.mrb[8].mxu0 }
 0x190   : > { %v474_v4 = vadd.f32 %v468_v3, %v419_v59  ;;  %v757_v5 = vpop.f32.mrb[9].mxu0 }
 0x191   : > { %v471_v6 = vpop.f32.mrb[10].mxu0 }
 0x192   : > { %v529_v7 = vadd.f32 %v523_v62, %v474_v4  ;;  %v758_v8 = vpop.f32.mrb[11].mxu0 }
 0x197   : > { %v578_v12 = vpop.f32.mrb[12].mxu0 }
 0x198   : > { %v584_v13 = vadd.f32 %v578_v12, %v529_v7  ;;  %v769_v14 = vpop.f32.mrb[13].mxu0 }
 0x199   : > { %v581_v15 = vpop.f32.mrb[14].mxu0 }
 0x19a   : > { %v595_v16 = vadd.f32 %v594_v11, %v584_v13  ;;  %v770_v17 = vpop.f32.mrb[15].mxu0 }
 0x19c   : > { %856 = vtanh.f32 %v595_v16 }
 0x1a6   : > { %v857_v18 = vpop.eup %856 }
 0x1a7   : > { %597 = vst [vmem:[%s188_s8] sm:$0x1] %v857_v18 }
 0x1a8   : > { %871 = shalt.err (!%p868_p7)
}
 0x1a9   : > { %s872_s25 = scalar_lea.hbm %s1127_s12, 16  ;;  %s876_s30 = scalar_lea.hbm %s1183_s3, 128 }
 0x1aa   : > { %p873_p9 = scmp.ne.s32.totalorder %s1127_s12, %s872_s25  ;;  %p877_p12 = scmp.lt.u32.totalorder %s1127_s12, %s1183_s3 }
 0x1ab   : > { %p878_p13 = scmp.lt.u32.totalorder %s876_s30, %s872_s25  ;;  %p880_p1 = scmp.lt.u32.totalorder %s872_s25, %s1127_s12 }
 0x1ac   : > { %p874_p10 = pnand %p873_p9, %p1038_p3 }
 0x1ad   : > { %p879_p0 = por %p878_p13, %p877_p12 }
 0x1ae   : > { %p875_p11 = pneg %p874_p10 }
 0x1af   : > { %p881_p2 = por %p880_p1, %p879_p0 }
 0x1b1   : > { %p882_p4 = pnand %p881_p2, %p875_p11 }
 0x1b3   : > { %885 = shalt.err (!%p882_p4)
}
 0x1b4   : > { %771 = dma.vmem_to_hbm [thread:$0]  (%p1038_p3), %s1129_s9, 16, %s1127_s12, %s599_s13  }
 0x1b5 PF: > { %p777_p5 = scmp.ge.s32.totalorder %s952_s21, 2  ;;  %s625_s7 = sand.u32 1, %s924_s14  }
 0x1b6   : > { %s626_s8 = scalar_lea.sflag [#allocation4], %s625_s7 }
 0x1b7   : > { %p774_p6 = pnand %p777_p5, %p1047_p8 }
 0x1b9   : > { %919 = dma.done.wait (!%p774_p6), %s626_s8, 16  }
 0x1ba   : > { %921 = vsyncadd (!%p774_p6), %s626_s8, 4294967280  ;;  %s18_s21 = sadd.s32 1, %s952_s21   ;;  %s1186_s14 = smov %s928_s15 }
 0x1bb   : > { %p15_p7 = scmp.ge.s32.totalorder %s18_s21, 10   ;;  %s1187_s15 = smov %s932_s16 }
 0x1bc   : > { %s1188_s16 = smov %s1056_s4  ;;  %s1189_s17 = smov %s944_s19 }
 0x1bd   : > { %s1190_s18 = smov %s948_s20  ;;  %s1191_s19 = smov %s1194_s23 }
 0x1be   : > { %s1192_s20 = smov %s1198_s24  ;;  %17 = sbr.rel (!%p15_p7) target bundleno = 8 (0x8), region = 73 }
 0x1c5   :  { %630 = vsyncpa [#allocation4], 1 }
 0x1c6   :  { %632 = vsyncpa [#allocation4 + $0x1], 1 }

</bundles_post_ra>
